<compile_context>
chip_gen: v6e
topology: v6e:2x2x1
jax: 0.10.0
libtpu: 0.0.40
codegen_flags: <defaults>
</compile_context>

<pallas_src>
import functools

import jax
import jax.numpy as jnp
import numpy as np
from jax.experimental import pallas as pl
from jax.experimental.pallas import tpu as pltpu


NUM_HIDDENS = 64
NUM_RES_HIDDENS = 32
EMBEDDING_DIM = 64
IN_CHANNELS = 7


# --------------------- trace-time constant matrices (numpy) ---------------------

def _interp_matrix(l_out, l_in):
    """F.interpolate(mode='linear', align_corners=True) as an (l_out, l_in) matrix."""
    m = np.zeros((l_out, l_in), np.float32)
    if l_in == 1:
        m[:, 0] = 1.0
        return m
    if l_out == 1:
        m[0, 0] = 1.0
        return m
    pos = np.arange(l_out, dtype=np.float64) * (l_in - 1) / (l_out - 1)
    lo = np.clip(np.floor(pos).astype(np.int64), 0, l_in - 2)
    frac = (pos - lo).astype(np.float32)
    rows = np.arange(l_out)
    m[rows, lo] += 1.0 - frac
    m[rows, lo + 1] += frac
    return m


def _upsample_pad_matrix(l_in, stride, pad):
    """ConvTranspose zero-insertion + (K-1-p) zero padding as a single left matrix."""
    l_up = (l_in - 1) * stride + 1
    m = np.zeros((l_up + 2 * pad, l_in), np.float32)
    m[pad + np.arange(l_in) * stride, np.arange(l_in)] = 1.0
    return m


def _block_diag(m, n):
    return np.kron(np.eye(n, dtype=np.float32), m).astype(np.float32)


# ---------------------------------- fused kernel ----------------------------------

def _make_kernel(BB, T, l1, l2, l_dec, l_t1, l_rec, SR):
    f32 = jnp.float32

    def kernel(x_ref,
               e_c1_W, e_c1_b, e_c2_W, e_c2_b, e_c3_W, e_c3_b,
               e_r0_W3, e_r0_W1, e_r1_W3, e_r1_W1,
               e_pre_W, e_pre_b,
               m_interp,
               d_c1_W, d_c1_b,
               d_r0_W3, d_r0_W1, d_r1_W3, d_r1_W1,
               pu1, d_t1_W, d_t1_b,
               pu2, d_t2_W, d_t2_b,
               recon_ref, after_ref,
               pad_scr):

        scr_cols = pad_scr.shape[1]

        def mm(a, b):
            return jnp.dot(a, b, preferred_element_type=f32)

        def im2col(a_all, L, C, pad, K, stride):
            """a_all: (BB*L, C).  Per element: zero-pad along length in the VMEM
            scratch window, read K (optionally stride-2) taps and concatenate them
            along lanes -> (BB*l_out, K*C).  No structural matmuls."""
            Lp = L + 2 * pad
            l_out = (Lp - K) // stride + 1
            pieces = []
            for bb in range(BB):
                base = bb * SR
                a = a_all[bb * L:(bb + 1) * L]
                if pad > 0:
                    pad_scr[base:base + pad, :] = jnp.zeros((pad, scr_cols), f32)
                    pad_scr[base + pad + L:base + Lp, :] = jnp.zeros((pad, scr_cols), f32)
                pad_scr[base + pad:base + pad + L, 0:C] = a
                taps = []
                for j in range(K):
                    if stride == 1:
                        t = pad_scr[base + j:base + j + l_out, :]
                    else:
                        t = pad_scr[pl.ds(base + j, l_out, stride=stride), :]
                    taps.append(t[:, 0:C] if C < scr_cols else t)
                pieces.append(jnp.concatenate(taps, axis=-1) if K > 1 else taps[0])
            return jnp.concatenate(pieces, axis=0) if BB > 1 else pieces[0]

        def conv(a_all, L, C, pad, K, stride, W_ref, b_ref=None):
            h = mm(im2col(a_all, L, C, pad, K, stride), W_ref[...])
            return h if b_ref is None else h + b_ref[...]

        def residual(a_all, L, W3_ref, W1_ref):
            # torch Residual with inplace ReLU: relu(a) + 1x1(relu(conv3(relu(a)))).
            r = jnp.maximum(a_all, 0.0)
            t = jnp.maximum(conv(r, L, NUM_HIDDENS, 1, 3, 1, W3_ref), 0.0)
            return r + mm(t, W1_ref[...])

        if BB > 1:
            x_all = jnp.concatenate([x_ref[bb].astype(f32) for bb in range(BB)], axis=0)
        else:
            x_all = x_ref[0].astype(f32)                       # (T, 7) channels-last

        # ------------------------------ encoder ------------------------------
        h = conv(x_all, T, IN_CHANNELS, 1, 4, 2, e_c1_W, e_c1_b)           # (BB*l1, 32)
        h = jnp.maximum(h, 0.0)
        h = conv(h, l1, NUM_HIDDENS // 2, 1, 4, 2, e_c2_W, e_c2_b)         # (BB*l2, 64)
        h = jnp.maximum(h, 0.0)
        h = conv(h, l2, NUM_HIDDENS, 1, 3, 1, e_c3_W, e_c3_b)              # (BB*l2, 64)
        h = residual(h, l2, e_r0_W3, e_r0_W1)
        h = residual(h, l2, e_r1_W3, e_r1_W1)
        h = jnp.maximum(h, 0.0)                                            # stack ReLU
        before = mm(h, e_pre_W[...]) + e_pre_b[...]                        # (BB*l2, 64)

        # F.interpolate(->30) followed by F.interpolate(->30//4), folded to one matrix.
        xd = mm(m_interp[...], before)                                     # (BB*l_dec, 64)

        # ------------------------------ decoder ------------------------------
        for bb in range(BB):
            after_ref[bb] = xd[bb * l_dec:(bb + 1) * l_dec].astype(after_ref.dtype)

        h = conv(xd, l_dec, EMBEDDING_DIM, 1, 3, 1, d_c1_W, d_c1_b)        # (BB*l_dec, 64)
        h = residual(h, l_dec, d_r0_W3, d_r0_W1)
        h = residual(h, l_dec, d_r1_W3, d_r1_W1)
        h = jnp.maximum(h, 0.0)

        # ConvTranspose1d(k4, s2, p1): tiny zero-insert+pad matrix, then one merged
        # K*Cin-deep contraction (256 on conv_trans_1, 128 on conv_trans_2).
        up1 = mm(pu1[...], h)                                              # (BB*(2*l_dec+3), 64)
        h = conv(up1, 2 * l_dec + 3, NUM_HIDDENS, 0, 4, 1, d_t1_W, d_t1_b)      # (BB*l_t1, 32)
        h = jnp.maximum(h, 0.0)
        up2 = mm(pu2[...], h)                                              # (BB*(2*l_t1+3), 32)
        h = conv(up2, 2 * l_t1 + 3, NUM_HIDDENS // 2, 0, 4, 1, d_t2_W, d_t2_b)  # (BB*l_rec, 7)

        for bb in range(BB):
            recon_ref[bb] = h[bb * l_rec:(bb + 1) * l_rec].astype(recon_ref.dtype)

    return kernel


# ------------------------------------ wrapper ------------------------------------

def vqvae_forward(params, x, *, batch_block=None):
    """x: (B, T, 7) channels-last (the torch input before its internal permute)."""
    f32 = jnp.float32
    B, T, c_in = x.shape
    assert c_in == IN_CHANNELS

    if batch_block is None:
        # Keep >=2 "parallel" grid steps (v7x has 2 TensorCores) while amortizing
        # per-step overhead by batching elements per step when B allows it.
        batch_block = B // 2 if (B % 2 == 0 and B > 2) else 1
    BB = batch_block
    assert B % BB == 0
    G = B // BB

    # Static length bookkeeping (Python ints, resolved at trace time).
    l1 = (T + 2 - 4) // 2 + 1             # encoder conv_1 (k4, s2, p1)
    l2 = (l1 + 2 - 4) // 2 + 1            # encoder conv_2 (k4, s2, p1)
    l_z = 30                              # F.interpolate(size=30)
    l_dec = l_z // 4                      # int(length / 4)
    l_t1 = (l_dec - 1) * 2 - 2 + 4        # ConvTranspose1d output lengths
    l_rec = (l_t1 - 1) * 2 - 2 + 4

    # Scratch rows needed per batch element (max padded length of any conv input).
    SR = max(T + 2, l1 + 2, l2 + 2, l_dec + 2, 2 * l_dec + 3, 2 * l_t1 + 3)
    SR = (SR + 7) // 8 * 8

    p = params

    def conv_W(w):     # torch Conv1d (Cout, Cin, K) -> merged-tap (K*Cin, Cout)
        co, ci, k = w.shape
        return jnp.transpose(w, (2, 1, 0)).reshape(k * ci, co).astype(f32)

    def convT_W(w):    # torch ConvTranspose1d (Cin, Cout, K) -> flipped merged (K*Cin, Cout)
        ci, co, k = w.shape
        return jnp.transpose(w[:, :, ::-1], (2, 0, 1)).reshape(k * ci, co).astype(f32)

    def mat1x1(w):     # torch (Cout, Cin, 1) -> (Cin, Cout)
        return jnp.transpose(w[:, :, 0]).astype(f32)

    def b2d(b):
        return b.reshape(1, -1).astype(f32)

    m_fold = _interp_matrix(l_dec, l_z) @ _interp_matrix(l_z, l2)   # (l_dec, l2)
    pu1 = _upsample_pad_matrix(l_dec, 2, 2)                          # (2*l_dec+3, l_dec)
    pu2 = _upsample_pad_matrix(l_t1, 2, 2)                           # (2*l_t1+3, l_t1)

    wargs = [
        conv_W(p["e_c1_w"]), b2d(p["e_c1_b"]),
        conv_W(p["e_c2_w"]), b2d(p["e_c2_b"]),
        conv_W(p["e_c3_w"]), b2d(p["e_c3_b"]),
        conv_W(p["e_r0_w3"]), mat1x1(p["e_r0_w1"]),
        conv_W(p["e_r1_w3"]), mat1x1(p["e_r1_w1"]),
        mat1x1(p["e_pre_w"]), b2d(p["e_pre_b"]),
        jnp.asarray(_block_diag(m_fold, BB)),
        conv_W(p["d_c1_w"]), b2d(p["d_c1_b"]),
        conv_W(p["d_r0_w3"]), mat1x1(p["d_r0_w1"]),
        conv_W(p["d_r1_w3"]), mat1x1(p["d_r1_w1"]),
        jnp.asarray(_block_diag(pu1, BB)), convT_W(p["d_t1_w"]), b2d(p["d_t1_b"]),
        jnp.asarray(_block_diag(pu2, BB)), convT_W(p["d_t2_w"]), b2d(p["d_t2_b"]),
    ]

    def resident_spec(shape):
        # Constant block index: weights stay resident in VMEM across grid steps.
        zeros = (0,) * len(shape)
        return pl.BlockSpec(shape, lambda g, _z=zeros: _z)

    in_specs = [pl.BlockSpec((BB, T, IN_CHANNELS), lambda g: (g, 0, 0))]
    in_specs += [resident_spec(tuple(a.shape)) for a in wargs]

    out_shape = (jax.ShapeDtypeStruct((B, l_rec, IN_CHANNELS), f32),
                 jax.ShapeDtypeStruct((B, l_dec, EMBEDDING_DIM), f32))
    out_specs = (pl.BlockSpec((BB, l_rec, IN_CHANNELS), lambda g: (g, 0, 0)),
                 pl.BlockSpec((BB, l_dec, EMBEDDING_DIM), lambda g: (g, 0, 0)))

    kernel = _make_kernel(BB, T, l1, l2, l_dec, l_t1, l_rec, SR)

    recon_ls, after_ls = pl.pallas_call(
        kernel,
        out_shape=out_shape,
        grid=(G,),
        in_specs=in_specs,
        out_specs=out_specs,
        scratch_shapes=[pltpu.VMEM((BB * SR, NUM_HIDDENS), f32)],
        compiler_params=pltpu.CompilerParams(dimension_semantics=("parallel",)),
    )(x.astype(f32), *wargs)

    # Back to torch NCL layout: decoder returns (torch.squeeze(x), after).
    recon = jnp.squeeze(jnp.transpose(recon_ls, (0, 2, 1)))
    after = jnp.transpose(after_ls, (0, 2, 1))
    return recon, after


# ------------------------------------ params ------------------------------------

def init_params(key):
    ks = jax.random.split(key, 22)
    w = lambda i, shape, s=0.1: (s * jax.random.normal(ks[i], shape)).astype(jnp.float32)
    return {
        # Encoder (torch Conv1d layout (C_out, C_in, K))
        "e_c1_w": w(0, (NUM_HIDDENS // 2, IN_CHANNELS, 4)), "e_c1_b": w(1, (NUM_HIDDENS // 2,)),
        "e_c2_w": w(2, (NUM_HIDDENS, NUM_HIDDENS // 2, 4)), "e_c2_b": w(3, (NUM_HIDDENS,)),
        "e_c3_w": w(4, (NUM_HIDDENS, NUM_HIDDENS, 3)), "e_c3_b": w(5, (NUM_HIDDENS,)),
        "e_r0_w3": w(6, (NUM_RES_HIDDENS, NUM_HIDDENS, 3)),
        "e_r0_w1": w(7, (NUM_HIDDENS, NUM_RES_HIDDENS, 1)),
        "e_r1_w3": w(8, (NUM_RES_HIDDENS, NUM_HIDDENS, 3)),
        "e_r1_w1": w(9, (NUM_HIDDENS, NUM_RES_HIDDENS, 1)),
        "e_pre_w": w(10, (EMBEDDING_DIM, NUM_HIDDENS, 1)), "e_pre_b": w(11, (EMBEDDING_DIM,)),
        # Decoder (ConvTranspose1d layout (C_in, C_out, K))
        "d_c1_w": w(12, (NUM_HIDDENS, EMBEDDING_DIM, 3)), "d_c1_b": w(13, (NUM_HIDDENS,)),
        "d_r0_w3": w(14, (NUM_RES_HIDDENS, NUM_HIDDENS, 3)),
        "d_r0_w1": w(15, (NUM_HIDDENS, NUM_RES_HIDDENS, 1)),
        "d_r1_w3": w(16, (NUM_RES_HIDDENS, NUM_HIDDENS, 3)),
        "d_r1_w1": w(17, (NUM_HIDDENS, NUM_RES_HIDDENS, 1)),
        "d_t1_w": w(18, (NUM_HIDDENS, NUM_HIDDENS // 2, 4)), "d_t1_b": w(19, (NUM_HIDDENS // 2,)),
        "d_t2_w": w(20, (NUM_HIDDENS // 2, IN_CHANNELS, 4)), "d_t2_b": w(21, (IN_CHANNELS,)),
    }


# ------------------------------------- main --------------------------------------

if __name__ == "__main__":
    key = jax.random.PRNGKey(0)
    pkey, xkey = jax.random.split(key)
    params = init_params(pkey)

    B, T, C = 2, 16, 7  # input (B, T, 7); T divisible by 4 for the strided convs
    x = jax.random.normal(xkey, (B, T, C), dtype=jnp.float32)

    recon, after = jax.jit(functools.partial(vqvae_forward, params))(x)
    jax.block_until_ready((recon, after))

    assert recon.shape == (B, 7, 28), recon.shape   # torch: squeeze((B, 7, 28))
    assert after.shape == (B, 64, 7), after.shape   # torch: interpolated decoder input (NCL)
    assert jnp.all(jnp.isfinite(recon)) and jnp.all(jnp.isfinite(after))
    print("KERNEL_OK")
</pallas_src>

<mosaic_0001>
module attributes {stable_mosaic.version = 11 : i64} {
  func.func @kernel(%arg0: i32, %arg1: memref<1x16x7xf32, #tpu.memory_space<vmem>>, %arg2: memref<28x32xf32, #tpu.memory_space<vmem>>, %arg3: memref<1x32xf32, #tpu.memory_space<vmem>>, %arg4: memref<128x64xf32, #tpu.memory_space<vmem>>, %arg5: memref<1x64xf32, #tpu.memory_space<vmem>>, %arg6: memref<192x64xf32, #tpu.memory_space<vmem>>, %arg7: memref<1x64xf32, #tpu.memory_space<vmem>>, %arg8: memref<192x32xf32, #tpu.memory_space<vmem>>, %arg9: memref<32x64xf32, #tpu.memory_space<vmem>>, %arg10: memref<192x32xf32, #tpu.memory_space<vmem>>, %arg11: memref<32x64xf32, #tpu.memory_space<vmem>>, %arg12: memref<64x64xf32, #tpu.memory_space<vmem>>, %arg13: memref<1x64xf32, #tpu.memory_space<vmem>>, %arg14: memref<7x4xf32, #tpu.memory_space<vmem>>, %arg15: memref<192x64xf32, #tpu.memory_space<vmem>>, %arg16: memref<1x64xf32, #tpu.memory_space<vmem>>, %arg17: memref<192x32xf32, #tpu.memory_space<vmem>>, %arg18: memref<32x64xf32, #tpu.memory_space<vmem>>, %arg19: memref<192x32xf32, #tpu.memory_space<vmem>>, %arg20: memref<32x64xf32, #tpu.memory_space<vmem>>, %arg21: memref<17x7xf32, #tpu.memory_space<vmem>>, %arg22: memref<256x32xf32, #tpu.memory_space<vmem>>, %arg23: memref<1x32xf32, #tpu.memory_space<vmem>>, %arg24: memref<31x14xf32, #tpu.memory_space<vmem>>, %arg25: memref<128x7xf32, #tpu.memory_space<vmem>>, %arg26: memref<1x7xf32, #tpu.memory_space<vmem>>, %arg27: memref<1x28x7xf32, #tpu.memory_space<vmem>>, %arg28: memref<1x7x64xf32, #tpu.memory_space<vmem>>, %arg29: memref<32x64xf32, #tpu.memory_space<vmem>>) attributes {dimension_semantics = [#tpu.dimension_semantics<parallel>], iteration_bounds = array<i64: 2>, scalar_prefetch = 0 : i64, scratch_operands = 1 : i64, tpu.core_type = #tpu.core_type<tc>, window_params = [{transform_indices = @transform_0, window_bounds = array<i64: 1, 16, 7>}, {pipeline_mode = #tpu.pipeline_mode<synchronous>, transform_indices = @transform_1, window_bounds = array<i64: 28, 32>}, {pipeline_mode = #tpu.pipeline_mode<synchronous>, transform_indices = @transform_2, window_bounds = array<i64: 1, 32>}, {pipeline_mode = #tpu.pipeline_mode<synchronous>, transform_indices = @transform_3, window_bounds = array<i64: 128, 64>}, {pipeline_mode = #tpu.pipeline_mode<synchronous>, transform_indices = @transform_4, window_bounds = array<i64: 1, 64>}, {pipeline_mode = #tpu.pipeline_mode<synchronous>, transform_indices = @transform_5, window_bounds = array<i64: 192, 64>}, {pipeline_mode = #tpu.pipeline_mode<synchronous>, transform_indices = @transform_6, window_bounds = array<i64: 1, 64>}, {pipeline_mode = #tpu.pipeline_mode<synchronous>, transform_indices = @transform_7, window_bounds = array<i64: 192, 32>}, {pipeline_mode = #tpu.pipeline_mode<synchronous>, transform_indices = @transform_8, window_bounds = array<i64: 32, 64>}, {pipeline_mode = #tpu.pipeline_mode<synchronous>, transform_indices = @transform_9, window_bounds = array<i64: 192, 32>}, {pipeline_mode = #tpu.pipeline_mode<synchronous>, transform_indices = @transform_10, window_bounds = array<i64: 32, 64>}, {pipeline_mode = #tpu.pipeline_mode<synchronous>, transform_indices = @transform_11, window_bounds = array<i64: 64, 64>}, {pipeline_mode = #tpu.pipeline_mode<synchronous>, transform_indices = @transform_12, window_bounds = array<i64: 1, 64>}, {pipeline_mode = #tpu.pipeline_mode<synchronous>, transform_indices = @transform_13, window_bounds = array<i64: 7, 4>}, {pipeline_mode = #tpu.pipeline_mode<synchronous>, transform_indices = @transform_14, window_bounds = array<i64: 192, 64>}, {pipeline_mode = #tpu.pipeline_mode<synchronous>, transform_indices = @transform_15, window_bounds = array<i64: 1, 64>}, {pipeline_mode = #tpu.pipeline_mode<synchronous>, transform_indices = @transform_16, window_bounds = array<i64: 192, 32>}, {pipeline_mode = #tpu.pipeline_mode<synchronous>, transform_indices = @transform_17, window_bounds = array<i64: 32, 64>}, {pipeline_mode = #tpu.pipeline_mode<synchronous>, transform_indices = @transform_18, window_bounds = array<i64: 192, 32>}, {pipeline_mode = #tpu.pipeline_mode<synchronous>, transform_indices = @transform_19, window_bounds = array<i64: 32, 64>}, {pipeline_mode = #tpu.pipeline_mode<synchronous>, transform_indices = @transform_20, window_bounds = array<i64: 17, 7>}, {pipeline_mode = #tpu.pipeline_mode<synchronous>, transform_indices = @transform_21, window_bounds = array<i64: 256, 32>}, {pipeline_mode = #tpu.pipeline_mode<synchronous>, transform_indices = @transform_22, window_bounds = array<i64: 1, 32>}, {pipeline_mode = #tpu.pipeline_mode<synchronous>, transform_indices = @transform_23, window_bounds = array<i64: 31, 14>}, {pipeline_mode = #tpu.pipeline_mode<synchronous>, transform_indices = @transform_24, window_bounds = array<i64: 128, 7>}, {pipeline_mode = #tpu.pipeline_mode<synchronous>, transform_indices = @transform_25, window_bounds = array<i64: 1, 7>}, {transform_indices = @transform_26, window_bounds = array<i64: 1, 28, 7>}, {transform_indices = @transform_27, window_bounds = array<i64: 1, 7, 64>}]} {
    %c0 = arith.constant 0 : index
    %c0_0 = arith.constant 0 : index
    %c0_1 = arith.constant 0 : index
    %0 = vector.load %arg1[%c0, %c0_0, %c0_1] : memref<1x16x7xf32, #tpu.memory_space<vmem>>, vector<1x16x7xf32>
    %1 = vector.shape_cast %0 : vector<1x16x7xf32> to vector<16x7xf32>
    %cst = arith.constant 0.000000e+00 : f32
    %2 = vector.broadcast %cst : f32 to vector<1x64xf32>
    %c0_2 = arith.constant 0 : index
    %c0_3 = arith.constant 0 : index
    %3 = vector.load %arg29[%c0_2, %c0_3] : memref<32x64xf32, #tpu.memory_space<vmem>>, vector<1x64xf32>
    tpu.vector_store %arg29[%c0_2, %c0_3], %2 {strides = array<i32>} : memref<32x64xf32, #tpu.memory_space<vmem>>, vector<1x64xf32>,
    %cst_4 = arith.constant 0.000000e+00 : f32
    %4 = vector.broadcast %cst_4 : f32 to vector<1x64xf32>
    %c17 = arith.constant 17 : index
    %c0_5 = arith.constant 0 : index
    %5 = vector.load %arg29[%c17, %c0_5] : memref<32x64xf32, #tpu.memory_space<vmem>>, vector<1x64xf32>
    tpu.vector_store %arg29[%c17, %c0_5], %4 {strides = array<i32>} : memref<32x64xf32, #tpu.memory_space<vmem>>, vector<1x64xf32>,
    %c1 = arith.constant 1 : index
    %c0_6 = arith.constant 0 : index
    %6 = vector.load %arg29[%c1, %c0_6] : memref<32x64xf32, #tpu.memory_space<vmem>>, vector<16x7xf32>
    tpu.vector_store %arg29[%c1, %c0_6], %1 {strides = array<i32>} : memref<32x64xf32, #tpu.memory_space<vmem>>, vector<16x7xf32>,
    %c0_7 = arith.constant 0 : index
    %c0_8 = arith.constant 0 : index
    %7 = tpu.strided_load %arg29[%c0_7, %c0_8] {strides = array<i32: 2, 1>} : memref<32x64xf32, #tpu.memory_space<vmem>>, vector<8x64xf32>
    %8 = vector.extract_strided_slice %7 {offsets = [0, 0], sizes = [8, 7], strides = [1, 1]} : vector<8x64xf32> to vector<8x7xf32>
    %c1_9 = arith.constant 1 : index
    %c0_10 = arith.constant 0 : index
    %9 = tpu.strided_load %arg29[%c1_9, %c0_10] {strides = array<i32: 2, 1>} : memref<32x64xf32, #tpu.memory_space<vmem>>, vector<8x64xf32>
    %10 = vector.extract_strided_slice %9 {offsets = [0, 0], sizes = [8, 7], strides = [1, 1]} : vector<8x64xf32> to vector<8x7xf32>
    %c2 = arith.constant 2 : index
    %c0_11 = arith.constant 0 : index
    %11 = tpu.strided_load %arg29[%c2, %c0_11] {strides = array<i32: 2, 1>} : memref<32x64xf32, #tpu.memory_space<vmem>>, vector<8x64xf32>
    %12 = vector.extract_strided_slice %11 {offsets = [0, 0], sizes = [8, 7], strides = [1, 1]} : vector<8x64xf32> to vector<8x7xf32>
    %c3 = arith.constant 3 : index
    %c0_12 = arith.constant 0 : index
    %13 = tpu.strided_load %arg29[%c3, %c0_12] {strides = array<i32: 2, 1>} : memref<32x64xf32, #tpu.memory_space<vmem>>, vector<8x64xf32>
    %14 = vector.extract_strided_slice %13 {offsets = [0, 0], sizes = [8, 7], strides = [1, 1]} : vector<8x64xf32> to vector<8x7xf32>
    %15 = tpu.concatenate %8, %10, %12, %14 in 1 : vector<8x7xf32>, vector<8x7xf32>, vector<8x7xf32>, vector<8x7xf32> -> vector<8x28xf32>
    %c0_13 = arith.constant 0 : index
    %c0_14 = arith.constant 0 : index
    %16 = vector.load %arg2[%c0_13, %c0_14] : memref<28x32xf32, #tpu.memory_space<vmem>>, vector<28x32xf32>
    %cst_15 = arith.constant dense<0.000000e+00> : vector<8x32xf32>
    %17 = tpu.matmul %15, %16, %cst_15 {dimension_numbers = #tpu.dot_dimension_numbers<[1], [0], [0], [1], [0, 0, 1, 1], [], []>} : vector<8x28xf32>, vector<28x32xf32>, vector<8x32xf32> -> vector<8x32xf32>
    %c0_16 = arith.constant 0 : index
    %c0_17 = arith.constant 0 : index
    %18 = vector.load %arg3[%c0_16, %c0_17] : memref<1x32xf32, #tpu.memory_space<vmem>>, vector<1x32xf32>
    %19 = vector.broadcast %18 : vector<1x32xf32> to vector<8x32xf32>
    %20 = arith.addf %17, %19 : vector<8x32xf32>
    %cst_18 = arith.constant 0.000000e+00 : f32
    %21 = vector.broadcast %cst_18 : f32 to vector<8x32xf32>
    %22 = arith.maximumf %20, %21 : vector<8x32xf32>
    %cst_19 = arith.constant 0.000000e+00 : f32
    %23 = vector.broadcast %cst_19 : f32 to vector<1x64xf32>
    %c0_20 = arith.constant 0 : index
    %c0_21 = arith.constant 0 : index
    %24 = vector.load %arg29[%c0_20, %c0_21] : memref<32x64xf32, #tpu.memory_space<vmem>>, vector<1x64xf32>
    tpu.vector_store %arg29[%c0_20, %c0_21], %23 {strides = array<i32>} : memref<32x64xf32, #tpu.memory_space<vmem>>, vector<1x64xf32>,
    %cst_22 = arith.constant 0.000000e+00 : f32
    %25 = vector.broadcast %cst_22 : f32 to vector<1x64xf32>
    %c9 = arith.constant 9 : index
    %c0_23 = arith.constant 0 : index
    %26 = vector.load %arg29[%c9, %c0_23] : memref<32x64xf32, #tpu.memory_space<vmem>>, vector<1x64xf32>
    tpu.vector_store %arg29[%c9, %c0_23], %25 {strides = array<i32>} : memref<32x64xf32, #tpu.memory_space<vmem>>, vector<1x64xf32>,
    %c1_24 = arith.constant 1 : index
    %c0_25 = arith.constant 0 : index
    %27 = vector.load %arg29[%c1_24, %c0_25] : memref<32x64xf32, #tpu.memory_space<vmem>>, vector<8x32xf32>
    tpu.vector_store %arg29[%c1_24, %c0_25], %22 {strides = array<i32>} : memref<32x64xf32, #tpu.memory_space<vmem>>, vector<8x32xf32>,
    %c0_26 = arith.constant 0 : index
    %c0_27 = arith.constant 0 : index
    %28 = tpu.strided_load %arg29[%c0_26, %c0_27] {strides = array<i32: 2, 1>} : memref<32x64xf32, #tpu.memory_space<vmem>>, vector<4x64xf32>
    %29 = vector.extract_strided_slice %28 {offsets = [0, 0], sizes = [4, 32], strides = [1, 1]} : vector<4x64xf32> to vector<4x32xf32>
    %c1_28 = arith.constant 1 : index
    %c0_29 = arith.constant 0 : index
    %30 = tpu.strided_load %arg29[%c1_28, %c0_29] {strides = array<i32: 2, 1>} : memref<32x64xf32, #tpu.memory_space<vmem>>, vector<4x64xf32>
    %31 = vector.extract_strided_slice %30 {offsets = [0, 0], sizes = [4, 32], strides = [1, 1]} : vector<4x64xf32> to vector<4x32xf32>
    %c2_30 = arith.constant 2 : index
    %c0_31 = arith.constant 0 : index
    %32 = tpu.strided_load %arg29[%c2_30, %c0_31] {strides = array<i32: 2, 1>} : memref<32x64xf32, #tpu.memory_space<vmem>>, vector<4x64xf32>
    %33 = vector.extract_strided_slice %32 {offsets = [0, 0], sizes = [4, 32], strides = [1, 1]} : vector<4x64xf32> to vector<4x32xf32>
    %c3_32 = arith.constant 3 : index
    %c0_33 = arith.constant 0 : index
    %34 = tpu.strided_load %arg29[%c3_32, %c0_33] {strides = array<i32: 2, 1>} : memref<32x64xf32, #tpu.memory_space<vmem>>, vector<4x64xf32>
    %35 = vector.extract_strided_slice %34 {offsets = [0, 0], sizes = [4, 32], strides = [1, 1]} : vector<4x64xf32> to vector<4x32xf32>
    %36 = tpu.concatenate %29, %31, %33, %35 in 1 : vector<4x32xf32>, vector<4x32xf32>, vector<4x32xf32>, vector<4x32xf32> -> vector<4x128xf32>
    %c0_34 = arith.constant 0 : index
    %c0_35 = arith.constant 0 : index
    %37 = vector.load %arg4[%c0_34, %c0_35] : memref<128x64xf32, #tpu.memory_space<vmem>>, vector<128x64xf32>
    %cst_36 = arith.constant dense<0.000000e+00> : vector<4x64xf32>
    %38 = tpu.matmul %36, %37, %cst_36 {dimension_numbers = #tpu.dot_dimension_numbers<[1], [0], [0], [1], [0, 0, 1, 1], [], []>} : vector<4x128xf32>, vector<128x64xf32>, vector<4x64xf32> -> vector<4x64xf32>
    %c0_37 = arith.constant 0 : index
    %c0_38 = arith.constant 0 : index
    %39 = vector.load %arg5[%c0_37, %c0_38] : memref<1x64xf32, #tpu.memory_space<vmem>>, vector<1x64xf32>
    %40 = vector.broadcast %39 : vector<1x64xf32> to vector<4x64xf32>
    %41 = arith.addf %38, %40 : vector<4x64xf32>
    %cst_39 = arith.constant 0.000000e+00 : f32
    %42 = vector.broadcast %cst_39 : f32 to vector<4x64xf32>
    %43 = arith.maximumf %41, %42 : vector<4x64xf32>
    %cst_40 = arith.constant 0.000000e+00 : f32
    %44 = vector.broadcast %cst_40 : f32 to vector<1x64xf32>
    %c0_41 = arith.constant 0 : index
    %c0_42 = arith.constant 0 : index
    %45 = vector.load %arg29[%c0_41, %c0_42] : memref<32x64xf32, #tpu.memory_space<vmem>>, vector<1x64xf32>
    tpu.vector_store %arg29[%c0_41, %c0_42], %44 {strides = array<i32>} : memref<32x64xf32, #tpu.memory_space<vmem>>, vector<1x64xf32>,
    %cst_43 = arith.constant 0.000000e+00 : f32
    %46 = vector.broadcast %cst_43 : f32 to vector<1x64xf32>
    %c5 = arith.constant 5 : index
    %c0_44 = arith.constant 0 : index
    %47 = vector.load %arg29[%c5, %c0_44] : memref<32x64xf32, #tpu.memory_space<vmem>>, vector<1x64xf32>
    tpu.vector_store %arg29[%c5, %c0_44], %46 {strides = array<i32>} : memref<32x64xf32, #tpu.memory_space<vmem>>, vector<1x64xf32>,
    %c1_45 = arith.constant 1 : index
    %c0_46 = arith.constant 0 : index
    %48 = vector.load %arg29[%c1_45, %c0_46] : memref<32x64xf32, #tpu.memory_space<vmem>>, vector<4x64xf32>
    tpu.vector_store %arg29[%c1_45, %c0_46], %43 {strides = array<i32>} : memref<32x64xf32, #tpu.memory_space<vmem>>, vector<4x64xf32>,
    %c0_47 = arith.constant 0 : index
    %c0_48 = arith.constant 0 : index
    %49 = vector.load %arg29[%c0_47, %c0_48] : memref<32x64xf32, #tpu.memory_space<vmem>>, vector<4x64xf32>
    %c1_49 = arith.constant 1 : index
    %c0_50 = arith.constant 0 : index
    %50 = vector.load %arg29[%c1_49, %c0_50] : memref<32x64xf32, #tpu.memory_space<vmem>>, vector<4x64xf32>
    %c2_51 = arith.constant 2 : index
    %c0_52 = arith.constant 0 : index
    %51 = vector.load %arg29[%c2_51, %c0_52] : memref<32x64xf32, #tpu.memory_space<vmem>>, vector<4x64xf32>
    %52 = tpu.concatenate %49, %50, %51 in 1 : vector<4x64xf32>, vector<4x64xf32>, vector<4x64xf32> -> vector<4x192xf32>
    %c0_53 = arith.constant 0 : index
    %c0_54 = arith.constant 0 : index
    %53 = vector.load %arg6[%c0_53, %c0_54] : memref<192x64xf32, #tpu.memory_space<vmem>>, vector<192x64xf32>
    %cst_55 = arith.constant dense<0.000000e+00> : vector<4x64xf32>
    %54 = tpu.matmul %52, %53, %cst_55 {dimension_numbers = #tpu.dot_dimension_numbers<[1], [0], [0], [1], [0, 0, 1, 1], [], []>} : vector<4x192xf32>, vector<192x64xf32>, vector<4x64xf32> -> vector<4x64xf32>
    %c0_56 = arith.constant 0 : index
    %c0_57 = arith.constant 0 : index
    %55 = vector.load %arg7[%c0_56, %c0_57] : memref<1x64xf32, #tpu.memory_space<vmem>>, vector<1x64xf32>
    %56 = vector.broadcast %55 : vector<1x64xf32> to vector<4x64xf32>
    %57 = arith.addf %54, %56 : vector<4x64xf32>
    %cst_58 = arith.constant 0.000000e+00 : f32
    %58 = vector.broadcast %cst_58 : f32 to vector<4x64xf32>
    %59 = arith.maximumf %57, %58 : vector<4x64xf32>
    %cst_59 = arith.constant 0.000000e+00 : f32
    %60 = vector.broadcast %cst_59 : f32 to vector<1x64xf32>
    %c0_60 = arith.constant 0 : index
    %c0_61 = arith.constant 0 : index
    %61 = vector.load %arg29[%c0_60, %c0_61] : memref<32x64xf32, #tpu.memory_space<vmem>>, vector<1x64xf32>
    tpu.vector_store %arg29[%c0_60, %c0_61], %60 {strides = array<i32>} : memref<32x64xf32, #tpu.memory_space<vmem>>, vector<1x64xf32>,
    %cst_62 = arith.constant 0.000000e+00 : f32
    %62 = vector.broadcast %cst_62 : f32 to vector<1x64xf32>
    %c5_63 = arith.constant 5 : index
    %c0_64 = arith.constant 0 : index
    %63 = vector.load %arg29[%c5_63, %c0_64] : memref<32x64xf32, #tpu.memory_space<vmem>>, vector<1x64xf32>
    tpu.vector_store %arg29[%c5_63, %c0_64], %62 {strides = array<i32>} : memref<32x64xf32, #tpu.memory_space<vmem>>, vector<1x64xf32>,
    %c1_65 = arith.constant 1 : index
    %c0_66 = arith.constant 0 : index
    %64 = vector.load %arg29[%c1_65, %c0_66] : memref<32x64xf32, #tpu.memory_space<vmem>>, vector<4x64xf32>
    tpu.vector_store %arg29[%c1_65, %c0_66], %59 {strides = array<i32>} : memref<32x64xf32, #tpu.memory_space<vmem>>, vector<4x64xf32>,
    %c0_67 = arith.constant 0 : index
    %c0_68 = arith.constant 0 : index
    %65 = vector.load %arg29[%c0_67, %c0_68] : memref<32x64xf32, #tpu.memory_space<vmem>>, vector<4x64xf32>
    %c1_69 = arith.constant 1 : index
    %c0_70 = arith.constant 0 : index
    %66 = vector.load %arg29[%c1_69, %c0_70] : memref<32x64xf32, #tpu.memory_space<vmem>>, vector<4x64xf32>
    %c2_71 = arith.constant 2 : index
    %c0_72 = arith.constant 0 : index
    %67 = vector.load %arg29[%c2_71, %c0_72] : memref<32x64xf32, #tpu.memory_space<vmem>>, vector<4x64xf32>
    %68 = tpu.concatenate %65, %66, %67 in 1 : vector<4x64xf32>, vector<4x64xf32>, vector<4x64xf32> -> vector<4x192xf32>
    %c0_73 = arith.constant 0 : index
    %c0_74 = arith.constant 0 : index
    %69 = vector.load %arg8[%c0_73, %c0_74] : memref<192x32xf32, #tpu.memory_space<vmem>>, vector<192x32xf32>
    %cst_75 = arith.constant dense<0.000000e+00> : vector<4x32xf32>
    %70 = tpu.matmul %68, %69, %cst_75 {dimension_numbers = #tpu.dot_dimension_numbers<[1], [0], [0], [1], [0, 0, 1, 1], [], []>} : vector<4x192xf32>, vector<192x32xf32>, vector<4x32xf32> -> vector<4x32xf32>
    %cst_76 = arith.constant 0.000000e+00 : f32
    %71 = vector.broadcast %cst_76 : f32 to vector<4x32xf32>
    %72 = arith.maximumf %70, %71 : vector<4x32xf32>
    %c0_77 = arith.constant 0 : index
    %c0_78 = arith.constant 0 : index
    %73 = vector.load %arg9[%c0_77, %c0_78] : memref<32x64xf32, #tpu.memory_space<vmem>>, vector<32x64xf32>
    %cst_79 = arith.constant dense<0.000000e+00> : vector<4x64xf32>
    %74 = tpu.matmul %72, %73, %cst_79 {dimension_numbers = #tpu.dot_dimension_numbers<[1], [0], [0], [1], [0, 0, 1, 1], [], []>} : vector<4x32xf32>, vector<32x64xf32>, vector<4x64xf32> -> vector<4x64xf32>
    %75 = arith.addf %59, %74 : vector<4x64xf32>
    %cst_80 = arith.constant 0.000000e+00 : f32
    %76 = vector.broadcast %cst_80 : f32 to vector<4x64xf32>
    %77 = arith.maximumf %75, %76 : vector<4x64xf32>
    %cst_81 = arith.constant 0.000000e+00 : f32
    %78 = vector.broadcast %cst_81 : f32 to vector<1x64xf32>
    %c0_82 = arith.constant 0 : index
    %c0_83 = arith.constant 0 : index
    %79 = vector.load %arg29[%c0_82, %c0_83] : memref<32x64xf32, #tpu.memory_space<vmem>>, vector<1x64xf32>
    tpu.vector_store %arg29[%c0_82, %c0_83], %78 {strides = array<i32>} : memref<32x64xf32, #tpu.memory_space<vmem>>, vector<1x64xf32>,
    %cst_84 = arith.constant 0.000000e+00 : f32
    %80 = vector.broadcast %cst_84 : f32 to vector<1x64xf32>
    %c5_85 = arith.constant 5 : index
    %c0_86 = arith.constant 0 : index
    %81 = vector.load %arg29[%c5_85, %c0_86] : memref<32x64xf32, #tpu.memory_space<vmem>>, vector<1x64xf32>
    tpu.vector_store %arg29[%c5_85, %c0_86], %80 {strides = array<i32>} : memref<32x64xf32, #tpu.memory_space<vmem>>, vector<1x64xf32>,
    %c1_87 = arith.constant 1 : index
    %c0_88 = arith.constant 0 : index
    %82 = vector.load %arg29[%c1_87, %c0_88] : memref<32x64xf32, #tpu.memory_space<vmem>>, vector<4x64xf32>
    tpu.vector_store %arg29[%c1_87, %c0_88], %77 {strides = array<i32>} : memref<32x64xf32, #tpu.memory_space<vmem>>, vector<4x64xf32>,
    %c0_89 = arith.constant 0 : index
    %c0_90 = arith.constant 0 : index
    %83 = vector.load %arg29[%c0_89, %c0_90] : memref<32x64xf32, #tpu.memory_space<vmem>>, vector<4x64xf32>
    %c1_91 = arith.constant 1 : index
    %c0_92 = arith.constant 0 : index
    %84 = vector.load %arg29[%c1_91, %c0_92] : memref<32x64xf32, #tpu.memory_space<vmem>>, vector<4x64xf32>
    %c2_93 = arith.constant 2 : index
    %c0_94 = arith.constant 0 : index
    %85 = vector.load %arg29[%c2_93, %c0_94] : memref<32x64xf32, #tpu.memory_space<vmem>>, vector<4x64xf32>
    %86 = tpu.concatenate %83, %84, %85 in 1 : vector<4x64xf32>, vector<4x64xf32>, vector<4x64xf32> -> vector<4x192xf32>
    %c0_95 = arith.constant 0 : index
    %c0_96 = arith.constant 0 : index
    %87 = vector.load %arg10[%c0_95, %c0_96] : memref<192x32xf32, #tpu.memory_space<vmem>>, vector<192x32xf32>
    %cst_97 = arith.constant dense<0.000000e+00> : vector<4x32xf32>
    %88 = tpu.matmul %86, %87, %cst_97 {dimension_numbers = #tpu.dot_dimension_numbers<[1], [0], [0], [1], [0, 0, 1, 1], [], []>} : vector<4x192xf32>, vector<192x32xf32>, vector<4x32xf32> -> vector<4x32xf32>
    %cst_98 = arith.constant 0.000000e+00 : f32
    %89 = vector.broadcast %cst_98 : f32 to vector<4x32xf32>
    %90 = arith.maximumf %88, %89 : vector<4x32xf32>
    %c0_99 = arith.constant 0 : index
    %c0_100 = arith.constant 0 : index
    %91 = vector.load %arg11[%c0_99, %c0_100] : memref<32x64xf32, #tpu.memory_space<vmem>>, vector<32x64xf32>
    %cst_101 = arith.constant dense<0.000000e+00> : vector<4x64xf32>
    %92 = tpu.matmul %90, %91, %cst_101 {dimension_numbers = #tpu.dot_dimension_numbers<[1], [0], [0], [1], [0, 0, 1, 1], [], []>} : vector<4x32xf32>, vector<32x64xf32>, vector<4x64xf32> -> vector<4x64xf32>
    %93 = arith.addf %77, %92 : vector<4x64xf32>
    %cst_102 = arith.constant 0.000000e+00 : f32
    %94 = vector.broadcast %cst_102 : f32 to vector<4x64xf32>
    %95 = arith.maximumf %93, %94 : vector<4x64xf32>
    %c0_103 = arith.constant 0 : index
    %c0_104 = arith.constant 0 : index
    %96 = vector.load %arg12[%c0_103, %c0_104] : memref<64x64xf32, #tpu.memory_space<vmem>>, vector<64x64xf32>
    %cst_105 = arith.constant dense<0.000000e+00> : vector<4x64xf32>
    %97 = tpu.matmul %95, %96, %cst_105 {dimension_numbers = #tpu.dot_dimension_numbers<[1], [0], [0], [1], [0, 0, 1, 1], [], []>} : vector<4x64xf32>, vector<64x64xf32>, vector<4x64xf32> -> vector<4x64xf32>
    %c0_106 = arith.constant 0 : index
    %c0_107 = arith.constant 0 : index
    %98 = vector.load %arg13[%c0_106, %c0_107] : memref<1x64xf32, #tpu.memory_space<vmem>>, vector<1x64xf32>
    %99 = vector.broadcast %98 : vector<1x64xf32> to vector<4x64xf32>
    %100 = arith.addf %97, %99 : vector<4x64xf32>
    %c0_108 = arith.constant 0 : index
    %c0_109 = arith.constant 0 : index
    %101 = vector.load %arg14[%c0_108, %c0_109] : memref<7x4xf32, #tpu.memory_space<vmem>>, vector<7x4xf32>
    %cst_110 = arith.constant dense<0.000000e+00> : vector<7x64xf32>
    %102 = tpu.matmul %101, %100, %cst_110 {dimension_numbers = #tpu.dot_dimension_numbers<[1], [0], [0], [1], [0, 0, 1, 1], [], []>} : vector<7x4xf32>, vector<4x64xf32>, vector<7x64xf32> -> vector<7x64xf32>
    %c0_111 = arith.constant 0 : index
    %c0_112 = arith.constant 0 : index
    %c0_113 = arith.constant 0 : index
    %103 = vector.load %arg28[%c0_111, %c0_112, %c0_113] : memref<1x7x64xf32, #tpu.memory_space<vmem>>, vector<1x7x64xf32>
    %104 = vector.shape_cast %103 : vector<1x7x64xf32> to vector<7x64xf32>
    %105 = vector.shape_cast %102 : vector<7x64xf32> to vector<1x7x64xf32>
    tpu.vector_store %arg28[%c0_111, %c0_112, %c0_113], %105 {strides = array<i32>} : memref<1x7x64xf32, #tpu.memory_space<vmem>>, vector<1x7x64xf32>,
    %cst_114 = arith.constant 0.000000e+00 : f32
    %106 = vector.broadcast %cst_114 : f32 to vector<1x64xf32>
    %c0_115 = arith.constant 0 : index
    %c0_116 = arith.constant 0 : index
    %107 = vector.load %arg29[%c0_115, %c0_116] : memref<32x64xf32, #tpu.memory_space<vmem>>, vector<1x64xf32>
    tpu.vector_store %arg29[%c0_115, %c0_116], %106 {strides = array<i32>} : memref<32x64xf32, #tpu.memory_space<vmem>>, vector<1x64xf32>,
    %cst_117 = arith.constant 0.000000e+00 : f32
    %108 = vector.broadcast %cst_117 : f32 to vector<1x64xf32>
    %c8 = arith.constant 8 : index
    %c0_118 = arith.constant 0 : index
    %109 = vector.load %arg29[%c8, %c0_118] : memref<32x64xf32, #tpu.memory_space<vmem>>, vector<1x64xf32>
    tpu.vector_store %arg29[%c8, %c0_118], %108 {strides = array<i32>} : memref<32x64xf32, #tpu.memory_space<vmem>>, vector<1x64xf32>,
    %c1_119 = arith.constant 1 : index
    %c0_120 = arith.constant 0 : index
    %110 = vector.load %arg29[%c1_119, %c0_120] : memref<32x64xf32, #tpu.memory_space<vmem>>, vector<7x64xf32>
    tpu.vector_store %arg29[%c1_119, %c0_120], %102 {strides = array<i32>} : memref<32x64xf32, #tpu.memory_space<vmem>>, vector<7x64xf32>,
    %c0_121 = arith.constant 0 : index
    %c0_122 = arith.constant 0 : index
    %111 = vector.load %arg29[%c0_121, %c0_122] : memref<32x64xf32, #tpu.memory_space<vmem>>, vector<7x64xf32>
    %c1_123 = arith.constant 1 : index
    %c0_124 = arith.constant 0 : index
    %112 = vector.load %arg29[%c1_123, %c0_124] : memref<32x64xf32, #tpu.memory_space<vmem>>, vector<7x64xf32>
    %c2_125 = arith.constant 2 : index
    %c0_126 = arith.constant 0 : index
    %113 = vector.load %arg29[%c2_125, %c0_126] : memref<32x64xf32, #tpu.memory_space<vmem>>, vector<7x64xf32>
    %114 = tpu.concatenate %111, %112, %113 in 1 : vector<7x64xf32>, vector<7x64xf32>, vector<7x64xf32> -> vector<7x192xf32>
    %c0_127 = arith.constant 0 : index
    %c0_128 = arith.constant 0 : index
    %115 = vector.load %arg15[%c0_127, %c0_128] : memref<192x64xf32, #tpu.memory_space<vmem>>, vector<192x64xf32>
    %cst_129 = arith.constant dense<0.000000e+00> : vector<7x64xf32>
    %116 = tpu.matmul %114, %115, %cst_129 {dimension_numbers = #tpu.dot_dimension_numbers<[1], [0], [0], [1], [0, 0, 1, 1], [], []>} : vector<7x192xf32>, vector<192x64xf32>, vector<7x64xf32> -> vector<7x64xf32>
    %c0_130 = arith.constant 0 : index
    %c0_131 = arith.constant 0 : index
    %117 = vector.load %arg16[%c0_130, %c0_131] : memref<1x64xf32, #tpu.memory_space<vmem>>, vector<1x64xf32>
    %118 = vector.broadcast %117 : vector<1x64xf32> to vector<7x64xf32>
    %119 = arith.addf %116, %118 : vector<7x64xf32>
    %cst_132 = arith.constant 0.000000e+00 : f32
    %120 = vector.broadcast %cst_132 : f32 to vector<7x64xf32>
    %121 = arith.maximumf %119, %120 : vector<7x64xf32>
    %cst_133 = arith.constant 0.000000e+00 : f32
    %122 = vector.broadcast %cst_133 : f32 to vector<1x64xf32>
    %c0_134 = arith.constant 0 : index
    %c0_135 = arith.constant 0 : index
    %123 = vector.load %arg29[%c0_134, %c0_135] : memref<32x64xf32, #tpu.memory_space<vmem>>, vector<1x64xf32>
    tpu.vector_store %arg29[%c0_134, %c0_135], %122 {strides = array<i32>} : memref<32x64xf32, #tpu.memory_space<vmem>>, vector<1x64xf32>,
    %cst_136 = arith.constant 0.000000e+00 : f32
    %124 = vector.broadcast %cst_136 : f32 to vector<1x64xf32>
    %c8_137 = arith.constant 8 : index
    %c0_138 = arith.constant 0 : index
    %125 = vector.load %arg29[%c8_137, %c0_138] : memref<32x64xf32, #tpu.memory_space<vmem>>, vector<1x64xf32>
    tpu.vector_store %arg29[%c8_137, %c0_138], %124 {strides = array<i32>} : memref<32x64xf32, #tpu.memory_space<vmem>>, vector<1x64xf32>,
    %c1_139 = arith.constant 1 : index
    %c0_140 = arith.constant 0 : index
    %126 = vector.load %arg29[%c1_139, %c0_140] : memref<32x64xf32, #tpu.memory_space<vmem>>, vector<7x64xf32>
    tpu.vector_store %arg29[%c1_139, %c0_140], %121 {strides = array<i32>} : memref<32x64xf32, #tpu.memory_space<vmem>>, vector<7x64xf32>,
    %c0_141 = arith.constant 0 : index
    %c0_142 = arith.constant 0 : index
    %127 = vector.load %arg29[%c0_141, %c0_142] : memref<32x64xf32, #tpu.memory_space<vmem>>, vector<7x64xf32>
    %c1_143 = arith.constant 1 : index
    %c0_144 = arith.constant 0 : index
    %128 = vector.load %arg29[%c1_143, %c0_144] : memref<32x64xf32, #tpu.memory_space<vmem>>, vector<7x64xf32>
    %c2_145 = arith.constant 2 : index
    %c0_146 = arith.constant 0 : index
    %129 = vector.load %arg29[%c2_145, %c0_146] : memref<32x64xf32, #tpu.memory_space<vmem>>, vector<7x64xf32>
    %130 = tpu.concatenate %127, %128, %129 in 1 : vector<7x64xf32>, vector<7x64xf32>, vector<7x64xf32> -> vector<7x192xf32>
    %c0_147 = arith.constant 0 : index
    %c0_148 = arith.constant 0 : index
    %131 = vector.load %arg17[%c0_147, %c0_148] : memref<192x32xf32, #tpu.memory_space<vmem>>, vector<192x32xf32>
    %cst_149 = arith.constant dense<0.000000e+00> : vector<7x32xf32>
    %132 = tpu.matmul %130, %131, %cst_149 {dimension_numbers = #tpu.dot_dimension_numbers<[1], [0], [0], [1], [0, 0, 1, 1], [], []>} : vector<7x192xf32>, vector<192x32xf32>, vector<7x32xf32> -> vector<7x32xf32>
    %cst_150 = arith.constant 0.000000e+00 : f32
    %133 = vector.broadcast %cst_150 : f32 to vector<7x32xf32>
    %134 = arith.maximumf %132, %133 : vector<7x32xf32>
    %c0_151 = arith.constant 0 : index
    %c0_152 = arith.constant 0 : index
    %135 = vector.load %arg18[%c0_151, %c0_152] : memref<32x64xf32, #tpu.memory_space<vmem>>, vector<32x64xf32>
    %cst_153 = arith.constant dense<0.000000e+00> : vector<7x64xf32>
    %136 = tpu.matmul %134, %135, %cst_153 {dimension_numbers = #tpu.dot_dimension_numbers<[1], [0], [0], [1], [0, 0, 1, 1], [], []>} : vector<7x32xf32>, vector<32x64xf32>, vector<7x64xf32> -> vector<7x64xf32>
    %137 = arith.addf %121, %136 : vector<7x64xf32>
    %cst_154 = arith.constant 0.000000e+00 : f32
    %138 = vector.broadcast %cst_154 : f32 to vector<7x64xf32>
    %139 = arith.maximumf %137, %138 : vector<7x64xf32>
    %cst_155 = arith.constant 0.000000e+00 : f32
    %140 = vector.broadcast %cst_155 : f32 to vector<1x64xf32>
    %c0_156 = arith.constant 0 : index
    %c0_157 = arith.constant 0 : index
    %141 = vector.load %arg29[%c0_156, %c0_157] : memref<32x64xf32, #tpu.memory_space<vmem>>, vector<1x64xf32>
    tpu.vector_store %arg29[%c0_156, %c0_157], %140 {strides = array<i32>} : memref<32x64xf32, #tpu.memory_space<vmem>>, vector<1x64xf32>,
    %cst_158 = arith.constant 0.000000e+00 : f32
    %142 = vector.broadcast %cst_158 : f32 to vector<1x64xf32>
    %c8_159 = arith.constant 8 : index
    %c0_160 = arith.constant 0 : index
    %143 = vector.load %arg29[%c8_159, %c0_160] : memref<32x64xf32, #tpu.memory_space<vmem>>, vector<1x64xf32>
    tpu.vector_store %arg29[%c8_159, %c0_160], %142 {strides = array<i32>} : memref<32x64xf32, #tpu.memory_space<vmem>>, vector<1x64xf32>,
    %c1_161 = arith.constant 1 : index
    %c0_162 = arith.constant 0 : index
    %144 = vector.load %arg29[%c1_161, %c0_162] : memref<32x64xf32, #tpu.memory_space<vmem>>, vector<7x64xf32>
    tpu.vector_store %arg29[%c1_161, %c0_162], %139 {strides = array<i32>} : memref<32x64xf32, #tpu.memory_space<vmem>>, vector<7x64xf32>,
    %c0_163 = arith.constant 0 : index
    %c0_164 = arith.constant 0 : index
    %145 = vector.load %arg29[%c0_163, %c0_164] : memref<32x64xf32, #tpu.memory_space<vmem>>, vector<7x64xf32>
    %c1_165 = arith.constant 1 : index
    %c0_166 = arith.constant 0 : index
    %146 = vector.load %arg29[%c1_165, %c0_166] : memref<32x64xf32, #tpu.memory_space<vmem>>, vector<7x64xf32>
    %c2_167 = arith.constant 2 : index
    %c0_168 = arith.constant 0 : index
    %147 = vector.load %arg29[%c2_167, %c0_168] : memref<32x64xf32, #tpu.memory_space<vmem>>, vector<7x64xf32>
    %148 = tpu.concatenate %145, %146, %147 in 1 : vector<7x64xf32>, vector<7x64xf32>, vector<7x64xf32> -> vector<7x192xf32>
    %c0_169 = arith.constant 0 : index
    %c0_170 = arith.constant 0 : index
    %149 = vector.load %arg19[%c0_169, %c0_170] : memref<192x32xf32, #tpu.memory_space<vmem>>, vector<192x32xf32>
    %cst_171 = arith.constant dense<0.000000e+00> : vector<7x32xf32>
    %150 = tpu.matmul %148, %149, %cst_171 {dimension_numbers = #tpu.dot_dimension_numbers<[1], [0], [0], [1], [0, 0, 1, 1], [], []>} : vector<7x192xf32>, vector<192x32xf32>, vector<7x32xf32> -> vector<7x32xf32>
    %cst_172 = arith.constant 0.000000e+00 : f32
    %151 = vector.broadcast %cst_172 : f32 to vector<7x32xf32>
    %152 = arith.maximumf %150, %151 : vector<7x32xf32>
    %c0_173 = arith.constant 0 : index
    %c0_174 = arith.constant 0 : index
    %153 = vector.load %arg20[%c0_173, %c0_174] : memref<32x64xf32, #tpu.memory_space<vmem>>, vector<32x64xf32>
    %cst_175 = arith.constant dense<0.000000e+00> : vector<7x64xf32>
    %154 = tpu.matmul %152, %153, %cst_175 {dimension_numbers = #tpu.dot_dimension_numbers<[1], [0], [0], [1], [0, 0, 1, 1], [], []>} : vector<7x32xf32>, vector<32x64xf32>, vector<7x64xf32> -> vector<7x64xf32>
    %155 = arith.addf %139, %154 : vector<7x64xf32>
    %cst_176 = arith.constant 0.000000e+00 : f32
    %156 = vector.broadcast %cst_176 : f32 to vector<7x64xf32>
    %157 = arith.maximumf %155, %156 : vector<7x64xf32>
    %c0_177 = arith.constant 0 : index
    %c0_178 = arith.constant 0 : index
    %158 = vector.load %arg21[%c0_177, %c0_178] : memref<17x7xf32, #tpu.memory_space<vmem>>, vector<17x7xf32>
    %cst_179 = arith.constant dense<0.000000e+00> : vector<17x64xf32>
    %159 = tpu.matmul %158, %157, %cst_179 {dimension_numbers = #tpu.dot_dimension_numbers<[1], [0], [0], [1], [0, 0, 1, 1], [], []>} : vector<17x7xf32>, vector<7x64xf32>, vector<17x64xf32> -> vector<17x64xf32>
    %c0_180 = arith.constant 0 : index
    %c0_181 = arith.constant 0 : index
    %160 = vector.load %arg29[%c0_180, %c0_181] : memref<32x64xf32, #tpu.memory_space<vmem>>, vector<17x64xf32>
    tpu.vector_store %arg29[%c0_180, %c0_181], %159 {strides = array<i32>} : memref<32x64xf32, #tpu.memory_space<vmem>>, vector<17x64xf32>,
    %c0_182 = arith.constant 0 : index
    %c0_183 = arith.constant 0 : index
    %161 = vector.load %arg29[%c0_182, %c0_183] : memref<32x64xf32, #tpu.memory_space<vmem>>, vector<14x64xf32>
    %c1_184 = arith.constant 1 : index
    %c0_185 = arith.constant 0 : index
    %162 = vector.load %arg29[%c1_184, %c0_185] : memref<32x64xf32, #tpu.memory_space<vmem>>, vector<14x64xf32>
    %c2_186 = arith.constant 2 : index
    %c0_187 = arith.constant 0 : index
    %163 = vector.load %arg29[%c2_186, %c0_187] : memref<32x64xf32, #tpu.memory_space<vmem>>, vector<14x64xf32>
    %c3_188 = arith.constant 3 : index
    %c0_189 = arith.constant 0 : index
    %164 = vector.load %arg29[%c3_188, %c0_189] : memref<32x64xf32, #tpu.memory_space<vmem>>, vector<14x64xf32>
    %165 = tpu.concatenate %161, %162, %163, %164 in 1 : vector<14x64xf32>, vector<14x64xf32>, vector<14x64xf32>, vector<14x64xf32> -> vector<14x256xf32>
    %c0_190 = arith.constant 0 : index
    %c0_191 = arith.constant 0 : index
    %166 = vector.load %arg22[%c0_190, %c0_191] : memref<256x32xf32, #tpu.memory_space<vmem>>, vector<256x32xf32>
    %cst_192 = arith.constant dense<0.000000e+00> : vector<14x32xf32>
    %167 = tpu.matmul %165, %166, %cst_192 {dimension_numbers = #tpu.dot_dimension_numbers<[1], [0], [0], [1], [0, 0, 1, 1], [], []>} : vector<14x256xf32>, vector<256x32xf32>, vector<14x32xf32> -> vector<14x32xf32>
    %c0_193 = arith.constant 0 : index
    %c0_194 = arith.constant 0 : index
    %168 = vector.load %arg23[%c0_193, %c0_194] : memref<1x32xf32, #tpu.memory_space<vmem>>, vector<1x32xf32>
    %169 = vector.broadcast %168 : vector<1x32xf32> to vector<14x32xf32>
    %170 = arith.addf %167, %169 : vector<14x32xf32>
    %cst_195 = arith.constant 0.000000e+00 : f32
    %171 = vector.broadcast %cst_195 : f32 to vector<14x32xf32>
    %172 = arith.maximumf %170, %171 : vector<14x32xf32>
    %c0_196 = arith.constant 0 : index
    %c0_197 = arith.constant 0 : index
    %173 = vector.load %arg24[%c0_196, %c0_197] : memref<31x14xf32, #tpu.memory_space<vmem>>, vector<31x14xf32>
    %cst_198 = arith.constant dense<0.000000e+00> : vector<31x32xf32>
    %174 = tpu.matmul %173, %172, %cst_198 {dimension_numbers = #tpu.dot_dimension_numbers<[1], [0], [0], [1], [0, 0, 1, 1], [], []>} : vector<31x14xf32>, vector<14x32xf32>, vector<31x32xf32> -> vector<31x32xf32>
    %c0_199 = arith.constant 0 : index
    %c0_200 = arith.constant 0 : index
    %175 = vector.load %arg29[%c0_199, %c0_200] : memref<32x64xf32, #tpu.memory_space<vmem>>, vector<31x32xf32>
    tpu.vector_store %arg29[%c0_199, %c0_200], %174 {strides = array<i32>} : memref<32x64xf32, #tpu.memory_space<vmem>>, vector<31x32xf32>,
    %c0_201 = arith.constant 0 : index
    %c0_202 = arith.constant 0 : index
    %176 = vector.load %arg29[%c0_201, %c0_202] : memref<32x64xf32, #tpu.memory_space<vmem>>, vector<28x64xf32>
    %177 = vector.extract_strided_slice %176 {offsets = [0, 0], sizes = [28, 32], strides = [1, 1]} : vector<28x64xf32> to vector<28x32xf32>
    %c1_203 = arith.constant 1 : index
    %c0_204 = arith.constant 0 : index
    %178 = vector.load %arg29[%c1_203, %c0_204] : memref<32x64xf32, #tpu.memory_space<vmem>>, vector<28x64xf32>
    %179 = vector.extract_strided_slice %178 {offsets = [0, 0], sizes = [28, 32], strides = [1, 1]} : vector<28x64xf32> to vector<28x32xf32>
    %c2_205 = arith.constant 2 : index
    %c0_206 = arith.constant 0 : index
    %180 = vector.load %arg29[%c2_205, %c0_206] : memref<32x64xf32, #tpu.memory_space<vmem>>, vector<28x64xf32>
    %181 = vector.extract_strided_slice %180 {offsets = [0, 0], sizes = [28, 32], strides = [1, 1]} : vector<28x64xf32> to vector<28x32xf32>
    %c3_207 = arith.constant 3 : index
    %c0_208 = arith.constant 0 : index
    %182 = vector.load %arg29[%c3_207, %c0_208] : memref<32x64xf32, #tpu.memory_space<vmem>>, vector<28x64xf32>
    %183 = vector.extract_strided_slice %182 {offsets = [0, 0], sizes = [28, 32], strides = [1, 1]} : vector<28x64xf32> to vector<28x32xf32>
    %184 = tpu.concatenate %177, %179, %181, %183 in 1 : vector<28x32xf32>, vector<28x32xf32>, vector<28x32xf32>, vector<28x32xf32> -> vector<28x128xf32>
    %c0_209 = arith.constant 0 : index
    %c0_210 = arith.constant 0 : index
    %185 = vector.load %arg25[%c0_209, %c0_210] : memref<128x7xf32, #tpu.memory_space<vmem>>, vector<128x7xf32>
    %cst_211 = arith.constant dense<0.000000e+00> : vector<28x7xf32>
    %186 = tpu.matmul %184, %185, %cst_211 {dimension_numbers = #tpu.dot_dimension_numbers<[1], [0], [0], [1], [0, 0, 1, 1], [], []>} : vector<28x128xf32>, vector<128x7xf32>, vector<28x7xf32> -> vector<28x7xf32>
    %c0_212 = arith.constant 0 : index
    %c0_213 = arith.constant 0 : index
    %187 = vector.load %arg26[%c0_212, %c0_213] : memref<1x7xf32, #tpu.memory_space<vmem>>, vector<1x7xf32>
    %188 = vector.broadcast %187 : vector<1x7xf32> to vector<28x7xf32>
    %189 = arith.addf %186, %188 : vector<28x7xf32>
    %c0_214 = arith.constant 0 : index
    %c0_215 = arith.constant 0 : index
    %c0_216 = arith.constant 0 : index
    %190 = vector.load %arg27[%c0_214, %c0_215, %c0_216] : memref<1x28x7xf32, #tpu.memory_space<vmem>>, vector<1x28x7xf32>
    %191 = vector.shape_cast %190 : vector<1x28x7xf32> to vector<28x7xf32>
    %192 = vector.shape_cast %189 : vector<28x7xf32> to vector<1x28x7xf32>
    tpu.vector_store %arg27[%c0_214, %c0_215, %c0_216], %192 {strides = array<i32>} : memref<1x28x7xf32, #tpu.memory_space<vmem>>, vector<1x28x7xf32>,
    return
  }
  func.func @transform_0(%arg0: i32) -> (i32, i32, i32) {
    %c0_i32 = arith.constant 0 : i32
    %c0_i32_0 = arith.constant 0 : i32
    %c0_i32_1 = arith.constant 0 : i32
    return %arg0, %c0_i32, %c0_i32_0 : i32, i32, i32
  }
  func.func @transform_1(%arg0: i32) -> (i32, i32) {
    %c0_i32 = arith.constant 0 : i32
    %c0_i32_0 = arith.constant 0 : i32
    %c0_i32_1 = arith.constant 0 : i32
    return %c0_i32, %c0_i32_0 : i32, i32
  }
  func.func @transform_2(%arg0: i32) -> (i32, i32) {
    %c0_i32 = arith.constant 0 : i32
    %c0_i32_0 = arith.constant 0 : i32
    %c0_i32_1 = arith.constant 0 : i32
    return %c0_i32, %c0_i32_0 : i32, i32
  }
  func.func @transform_3(%arg0: i32) -> (i32, i32) {
    %c0_i32 = arith.constant 0 : i32
    %c0_i32_0 = arith.constant 0 : i32
    %c0_i32_1 = arith.constant 0 : i32
    return %c0_i32, %c0_i32_0 : i32, i32
  }
  func.func @transform_4(%arg0: i32) -> (i32, i32) {
    %c0_i32 = arith.constant 0 : i32
    %c0_i32_0 = arith.constant 0 : i32
    %c0_i32_1 = arith.constant 0 : i32
    return %c0_i32, %c0_i32_0 : i32, i32
  }
  func.func @transform_5(%arg0: i32) -> (i32, i32) {
    %c0_i32 = arith.constant 0 : i32
    %c0_i32_0 = arith.constant 0 : i32
    %c0_i32_1 = arith.constant 0 : i32
    return %c0_i32, %c0_i32_0 : i32, i32
  }
  func.func @transform_6(%arg0: i32) -> (i32, i32) {
    %c0_i32 = arith.constant 0 : i32
    %c0_i32_0 = arith.constant 0 : i32
    %c0_i32_1 = arith.constant 0 : i32
    return %c0_i32, %c0_i32_0 : i32, i32
  }
  func.func @transform_7(%arg0: i32) -> (i32, i32) {
    %c0_i32 = arith.constant 0 : i32
    %c0_i32_0 = arith.constant 0 : i32
    %c0_i32_1 = arith.constant 0 : i32
    return %c0_i32, %c0_i32_0 : i32, i32
  }
  func.func @transform_8(%arg0: i32) -> (i32, i32) {
    %c0_i32 = arith.constant 0 : i32
    %c0_i32_0 = arith.constant 0 : i32
    %c0_i32_1 = arith.constant 0 : i32
    return %c0_i32, %c0_i32_0 : i32, i32
  }
  func.func @transform_9(%arg0: i32) -> (i32, i32) {
    %c0_i32 = arith.constant 0 : i32
    %c0_i32_0 = arith.constant 0 : i32
    %c0_i32_1 = arith.constant 0 : i32
    return %c0_i32, %c0_i32_0 : i32, i32
  }
  func.func @transform_10(%arg0: i32) -> (i32, i32) {
    %c0_i32 = arith.constant 0 : i32
    %c0_i32_0 = arith.constant 0 : i32
    %c0_i32_1 = arith.constant 0 : i32
    return %c0_i32, %c0_i32_0 : i32, i32
  }
  func.func @transform_11(%arg0: i32) -> (i32, i32) {
    %c0_i32 = arith.constant 0 : i32
    %c0_i32_0 = arith.constant 0 : i32
    %c0_i32_1 = arith.constant 0 : i32
    return %c0_i32, %c0_i32_0 : i32, i32
  }
  func.func @transform_12(%arg0: i32) -> (i32, i32) {
    %c0_i32 = arith.constant 0 : i32
    %c0_i32_0 = arith.constant 0 : i32
    %c0_i32_1 = arith.constant 0 : i32
    return %c0_i32, %c0_i32_0 : i32, i32
  }
  func.func @transform_13(%arg0: i32) -> (i32, i32) {
    %c0_i32 = arith.constant 0 : i32
    %c0_i32_0 = arith.constant 0 : i32
    %c0_i32_1 = arith.constant 0 : i32
    return %c0_i32, %c0_i32_0 : i32, i32
  }
  func.func @transform_14(%arg0: i32) -> (i32, i32) {
    %c0_i32 = arith.constant 0 : i32
    %c0_i32_0 = arith.constant 0 : i32
    %c0_i32_1 = arith.constant 0 : i32
    return %c0_i32, %c0_i32_0 : i32, i32
  }
  func.func @transform_15(%arg0: i32) -> (i32, i32) {
    %c0_i32 = arith.constant 0 : i32
    %c0_i32_0 = arith.constant 0 : i32
    %c0_i32_1 = arith.constant 0 : i32
    return %c0_i32, %c0_i32_0 : i32, i32
  }
  func.func @transform_16(%arg0: i32) -> (i32, i32) {
    %c0_i32 = arith.constant 0 : i32
    %c0_i32_0 = arith.constant 0 : i32
    %c0_i32_1 = arith.constant 0 : i32
    return %c0_i32, %c0_i32_0 : i32, i32
  }
  func.func @transform_17(%arg0: i32) -> (i32, i32) {
    %c0_i32 = arith.constant 0 : i32
    %c0_i32_0 = arith.constant 0 : i32
    %c0_i32_1 = arith.constant 0 : i32
    return %c0_i32, %c0_i32_0 : i32, i32
  }
  func.func @transform_18(%arg0: i32) -> (i32, i32) {
    %c0_i32 = arith.constant 0 : i32
    %c0_i32_0 = arith.constant 0 : i32
    %c0_i32_1 = arith.constant 0 : i32
    return %c0_i32, %c0_i32_0 : i32, i32
  }
  func.func @transform_19(%arg0: i32) -> (i32, i32) {
    %c0_i32 = arith.constant 0 : i32
    %c0_i32_0 = arith.constant 0 : i32
    %c0_i32_1 = arith.constant 0 : i32
    return %c0_i32, %c0_i32_0 : i32, i32
  }
  func.func @transform_20(%arg0: i32) -> (i32, i32) {
    %c0_i32 = arith.constant 0 : i32
    %c0_i32_0 = arith.constant 0 : i32
    %c0_i32_1 = arith.constant 0 : i32
    return %c0_i32, %c0_i32_0 : i32, i32
  }
  func.func @transform_21(%arg0: i32) -> (i32, i32) {
    %c0_i32 = arith.constant 0 : i32
    %c0_i32_0 = arith.constant 0 : i32
    %c0_i32_1 = arith.constant 0 : i32
    return %c0_i32, %c0_i32_0 : i32, i32
  }
  func.func @transform_22(%arg0: i32) -> (i32, i32) {
    %c0_i32 = arith.constant 0 : i32
    %c0_i32_0 = arith.constant 0 : i32
    %c0_i32_1 = arith.constant 0 : i32
    return %c0_i32, %c0_i32_0 : i32, i32
  }
  func.func @transform_23(%arg0: i32) -> (i32, i32) {
    %c0_i32 = arith.constant 0 : i32
    %c0_i32_0 = arith.constant 0 : i32
    %c0_i32_1 = arith.constant 0 : i32
    return %c0_i32, %c0_i32_0 : i32, i32
  }
  func.func @transform_24(%arg0: i32) -> (i32, i32) {
    %c0_i32 = arith.constant 0 : i32
    %c0_i32_0 = arith.constant 0 : i32
    %c0_i32_1 = arith.constant 0 : i32
    return %c0_i32, %c0_i32_0 : i32, i32
  }
  func.func @transform_25(%arg0: i32) -> (i32, i32) {
    %c0_i32 = arith.constant 0 : i32
    %c0_i32_0 = arith.constant 0 : i32
    %c0_i32_1 = arith.constant 0 : i32
    return %c0_i32, %c0_i32_0 : i32, i32
  }
  func.func @transform_26(%arg0: i32) -> (i32, i32, i32) {
    %c0_i32 = arith.constant 0 : i32
    %c0_i32_0 = arith.constant 0 : i32
    %c0_i32_1 = arith.constant 0 : i32
    return %arg0, %c0_i32, %c0_i32_0 : i32, i32, i32
  }
  func.func @transform_27(%arg0: i32) -> (i32, i32, i32) {
    %c0_i32 = arith.constant 0 : i32
    %c0_i32_0 = arith.constant 0 : i32
    %c0_i32_1 = arith.constant 0 : i32
    return %arg0, %c0_i32, %c0_i32_0 : i32, i32, i32
  }
}

</mosaic_0001>

<bundles_post_ra>
// kernel: vqvae_forward.1
= control target key start
LH: loop header
LB: loop body
LE: loop exit
PB: predicated region body
PF: predicated region fallthrough
CT: control target
= control target key end

     0   :  { %s5172_s0 = inlined_call_operand.vmem [shape: f32[2,16,7], index: 0, kind: input, shape index: {}]   ;;  %s5173_s1 = inlined_call_operand.hbm [shape: f32[28,32], index: 1, kind: input, shape index: {}]   ;;  %s5174_s2 = inlined_call_operand.vmem [shape: f32[1,32], index: 2, kind: input, shape index: {}]   ;;  %s5175_s3 = inlined_call_operand.hbm [shape: f32[128,64], index: 3, kind: input, shape index: {}]   ;;  %s5176_s4 = inlined_call_operand.vmem [shape: f32[1,64], index: 4, kind: input, shape index: {}]   ;;  %s5177_s5 = inlined_call_operand.hbm [shape: f32[192,64], index: 5, kind: input, shape index: {}]   ;;  %s5178_s6 = inlined_call_operand.vmem [shape: f32[1,64], index: 6, kind: input, shape index: {}]   ;;  %s5179_s7 = inlined_call_operand.hbm [shape: f32[192,32], index: 7, kind: input, shape index: {}]   ;;  %s5180_s8 = inlined_call_operand.hbm [shape: f32[32,64], index: 8, kind: input, shape index: {}]   ;;  %s5181_s9 = inlined_call_operand.hbm [shape: f32[192,32], index: 9, kind: input, shape index: {}]   ;;  %s5182_s10 = inlined_call_operand.hbm [shape: f32[32,64], index: 10, kind: input, shape index: {}]   ;;  %s5183_s11 = inlined_call_operand.vmem [shape: f32[64,64], index: 11, kind: input, shape index: {}]   ;;  %s5184_s12 = inlined_call_operand.vmem [shape: f32[1,64], index: 12, kind: input, shape index: {}]   ;;  %s5185_s13 = inlined_call_operand.hbm [shape: f32[7,4], index: 13, kind: input, shape index: {}]   ;;  %s5186_s14 = inlined_call_operand.hbm [shape: f32[192,64], index: 14, kind: input, shape index: {}]   ;;  %s5187_s15 = inlined_call_operand.vmem [shape: f32[1,64], index: 15, kind: input, shape index: {}]   ;;  %s5188_s16 = inlined_call_operand.hbm [shape: f32[192,32], index: 16, kind: input, shape index: {}]   ;;  %s5189_s17 = inlined_call_operand.hbm [shape: f32[32,64], index: 17, kind: input, shape index: {}]   ;;  %s5190_s18 = inlined_call_operand.hbm [shape: f32[192,32], index: 18, kind: input, shape index: {}]   ;;  %s5191_s19 = inlined_call_operand.hbm [shape: f32[32,64], index: 19, kind: input, shape index: {}]   ;;  %s5192_s20 = inlined_call_operand.hbm [shape: f32[17,7], index: 20, kind: input, shape index: {}]   ;;  %s5193_s21 = inlined_call_operand.hbm [shape: f32[256,32], index: 21, kind: input, shape index: {}]   ;;  %s5194_s22 = inlined_call_operand.vmem [shape: f32[1,32], index: 22, kind: input, shape index: {}]   ;;  %s5195_s23 = inlined_call_operand.hbm [shape: f32[31,14], index: 23, kind: input, shape index: {}]   ;;  %s5196_s24 = inlined_call_operand.hbm [shape: f32[128,7], index: 24, kind: input, shape index: {}]   ;;  %s5197_s25 = inlined_call_operand.vmem [shape: f32[1,7], index: 25, kind: input, shape index: {}]   ;;  %s5198_s26 = inlined_call_operand.vmem [shape: f32[2,28,7], index: 26, kind: output, shape index: {0}]   ;;  %s5199_s27 = inlined_call_operand.vmem [shape: f32[2,7,64], index: 27, kind: output, shape index: {1}]  }
   0x1   :  { %5202 = sst [smem:[#allocation39_spill]] %s5172_s0 }
   0x2   :  { %5203 = sst [smem:[#allocation40_spill]] %s5173_s1 }
   0x3   :  { %5204 = sst [smem:[#allocation41_spill]] %s5174_s2 }
   0x4   :  { %5205 = sst [smem:[#allocation42_spill]] %s5175_s3 }
   0x5   :  { %5206 = sst [smem:[#allocation43_spill]] %s5176_s4 }
   0x6   :  { %5207 = sst [smem:[#allocation44_spill]] %s5177_s5 }
   0x7   :  { %5208 = sst [smem:[#allocation45_spill]] %s5178_s6 }
   0x8   :  { %5209 = sst [smem:[#allocation46_spill]] %s5179_s7 }
   0x9   :  { %5210 = sst [smem:[#allocation47_spill]] %s5180_s8 }
   0xa   :  { %5211 = sst [smem:[#allocation48_spill]] %s5181_s9 }
   0xb   :  { %5212 = sst [smem:[#allocation49_spill]] %s5182_s10 }
   0xc   :  { %5213 = sst [smem:[#allocation50_spill]] %s5183_s11 }
   0xd   :  { %5214 = sst [smem:[#allocation51_spill]] %s5185_s13 }
   0xe   :  { %33 = vsyncpa [#allocation4], 0 }
   0xf   :  { %34 = vsyncpa [#allocation6], 0 }
  0x10   :  { %35 = vsyncpa [#allocation9], 0 }
  0x11   :  { %36 = vsyncpa [#allocation12], 0 }
  0x12   :  { %37 = vsyncpa [#allocation15], 0 }
  0x13   :  { %38 = vsyncpa [#allocation18], 0 }
  0x14   :  { %39 = vsyncpa [#allocation21], 0 }
  0x15   :  { %40 = vsyncpa [#allocation24], 0 }
  0x16   :  { %41 = vsyncpa [#allocation27], 0  ;;  %s4516_s7 = smov 0  }
  0x17 LB: > { %5215 = sst [smem:[#allocation38_spill]] %s4347_s7  ;;  %s4522_s4 = sadd.s32 4294967295, %s4347_s7   ;;  %s4347_s7 = sphi %s4516_s7, %s47_s7  }
  0x18   : > { %p3263_p0 = scmp.ge.s32.totalorder %s4347_s7, 1  ;;  %p655_p1 = scmp.lt.s32.totalorder %s4347_s7, 3 }
  0x19   : > { %p3754_p2 = scmp.eq.s32.totalorder %s4522_s4, 0  ;;  %s4349_s30 = smov [#allocation5]  }
  0x1a   : > { %p4527_p3 = pnand %p3263_p0, %p655_p1  ;;  %s683_s9 = sshll.u32 %s4349_s30, 4  ;;  %s684_s9 = int_to_ptr.vmem [resolvable:$true] %s683_s9 }
  0x1b   : > { %s4350_s5 = smov [#allocation8]   ;;  %s4351_s10 = smov [#allocation11]  }
  0x1c   : > { %p3702_p4 = pneg %p4527_p3  ;;  %s715_s28 = sshll.u32 %s4350_s5, 4  ;;  %s4533_s28 = int_to_ptr.vmem [resolvable:$true] %s715_s28 }
  0x1d   : > { %s741_s29 = sshll.u32 %s4351_s10, 4  ;;  %s4352_s1 = smov [#allocation14]   ;;  %s4541_s29 = int_to_ptr.vmem [resolvable:$true] %s741_s29 }
  0x1e   : > { %p4537_p5 = pnand %p3754_p2, %p3702_p4  ;;  %s4543_s6 = sshll.u32 %s4352_s1, 4  ;;  %s775_s6 = int_to_ptr.vmem [resolvable:$true] %s4543_s6 }
  0x1f   : > { %s3874_s2 = scalar_lea.vmem %s684_s9, 2048  ;;  %p3882_p10 = scmp.lt.s32.totalorder %s684_s9, %s684_s9 }
  0x20   : > { %p4547_p6 = pneg %p4537_p5  ;;  %p3875_p7 = scmp.ne.s32.totalorder %s684_s9, %s3874_s2 }
  0x21   : > { %p3883_p11 = scmp.lt.s32.totalorder %s3874_s2, %s3874_s2 }
  0x22   : > { %p3877_p8 = pnand %p3875_p7, %p4547_p6 }
  0x23   : > { %p3884_p12 = por %p3883_p11, %p3882_p10 }
  0x24   : > { %p3878_p9 = pneg %p3877_p8 }
  0x26   : > { %p3885_p13 = pnand %p3884_p12, %p3878_p9 }
  0x28   : > { %3888 = shalt.err (!%p3885_p13)
}
  0x29   : > { %s4353_s3 = smov 128   ;;  %s4354_s30 = smov 8  }
  0x2a   : > { %s5219_s1 = sld [smem:[#allocation42_spill]]  ;;  %s3900_s7 = scalar_lea.vmem %s4533_s28, 3072 }
  0x2b   : > { %p3901_p0 = scmp.ne.s32.totalorder %s4533_s28, %s3900_s7  ;;  %p3908_p7 = scmp.lt.s32.totalorder %s4533_s28, %s4533_s28 }
  0x2c   : > { %p3909_p8 = scmp.lt.s32.totalorder %s3900_s7, %s3900_s7 }
  0x2d   : > { %p3903_p1 = pnand %p3901_p0, %p4547_p6 }
  0x2e   : > { %p3910_p9 = por %p3909_p8, %p3908_p7 }
  0x2f   : > { %p3904_p4 = pneg %p3903_p1 }
  0x30   : > { %3708 = dma.hbm_to_vmem [thread:$0]  (!%p4537_p5), %s5219_s1, 2048, %s684_s9, [#allocation6], %s4353_s3, %s4353_s3, %s4354_s30  }
  0x31   : > { %p3911_p10 = pnand %p3910_p9, %p3904_p4 }
  0x33   : > { %3914 = shalt.err (!%p3911_p10)
}
  0x34   : > { %s5220_s9 = sld [smem:[#allocation46_spill]]  ;;  %s3926_s10 = scalar_lea.vmem %s4541_s29, 3072 }
  0x35   : > { %p3927_p11 = scmp.ne.s32.totalorder %s4541_s29, %s3926_s10  ;;  %p3934_p0 = scmp.lt.s32.totalorder %s4541_s29, %s4541_s29 }
  0x36   : > { %p3935_p1 = scmp.lt.s32.totalorder %s3926_s10, %s3926_s10 }
  0x37   : > { %p3929_p12 = pnand %p3927_p11, %p4547_p6 }
  0x38   : > { %p3936_p4 = por %p3935_p1, %p3934_p0 }
  0x39   : > { %p3930_p13 = pneg %p3929_p12 }
  0x3a   : > { %3714 = dma.hbm_to_vmem [thread:$0]  (!%p4537_p5), %s5220_s9, 3072, %s4533_s28, [#allocation9], %s4353_s3, %s4353_s3, %s4354_s30  }
  0x3b   : > { %p3937_p7 = pnand %p3936_p4, %p3930_p13 }
  0x3d   : > { %3940 = shalt.err (!%p3937_p7)
}
  0x3e   : > { %s5221_s28 = sld [smem:[#allocation48_spill]]  ;;  %s3952_s2 = scalar_lea.vmem %s775_s6, 128 }
  0x3f   : > { %p3953_p8 = scmp.ne.s32.totalorder %s775_s6, %s3952_s2  ;;  %p3960_p11 = scmp.lt.s32.totalorder %s775_s6, %s775_s6 }
  0x40   : > { %p3961_p12 = scmp.lt.s32.totalorder %s3952_s2, %s3952_s2 }
  0x41   : > { %p3955_p9 = pnand %p3953_p8, %p4547_p6 }
  0x42   : > { %p3962_p13 = por %p3961_p12, %p3960_p11 }
  0x43   : > { %p3956_p10 = pneg %p3955_p9 }
  0x44   : > { %3720 = dma.hbm_to_vmem [thread:$0]  (!%p4537_p5), %s5221_s28, 3072, %s4541_s29, [#allocation12], %s4353_s3, %s4353_s3, %s4354_s30  }
  0x45   : > { %p3963_p0 = pnand %p3962_p13, %p3956_p10 }
  0x47   : > { %3966 = shalt.err (!%p3963_p0)
}
  0x48   : > { %s5222_s13 = sld [smem:[#allocation51_spill]]  ;;  %s4355_s10 = smov [#allocation17]  }
  0x49   : > { %s800_s29 = sshll.u32 %s4355_s10, 4  ;;  %s4356_s7 = smov [#allocation20]   ;;  %s801_s29 = int_to_ptr.vmem [resolvable:$true] %s800_s29 }
  0x4a   : > { %s826_s1 = sshll.u32 %s4356_s7, 4  ;;  %s3978_s28 = scalar_lea.vmem %s801_s29, 3072  ;;  %s827_s1 = int_to_ptr.vmem [resolvable:$true] %s826_s1 }
  0x4b   : > { %p3979_p1 = scmp.ne.s32.totalorder %s801_s29, %s3978_s28  ;;  %p3986_p8 = scmp.lt.s32.totalorder %s801_s29, %s801_s29 }
  0x4c   : > { %p3987_p9 = scmp.lt.s32.totalorder %s3978_s28, %s3978_s28 }
  0x4d   : > { %p3981_p4 = pnand %p3979_p1, %p4547_p6 }
  0x4e   : > { %3726 = dma.hbm_to_vmem [thread:$0]  (!%p4537_p5), %s5222_s13, 128, %s775_s6, [#allocation15]  }
  0x4f   : > { %p3982_p7 = pneg %p3981_p4  ;;  %p3988_p10 = por %p3987_p9, %p3986_p8 }
  0x51   : > { %p3989_p11 = pnand %p3988_p10, %p3982_p7 }
  0x53   : > { %3992 = shalt.err (!%p3989_p11)
}
  0x54   : > { %3732 = dma.hbm_to_vmem [thread:$0]  (!%p4537_p5), %s5188_s16, 3072, %s801_s29, [#allocation18], %s4353_s3, %s4353_s3, %s4354_s30  }
  0x55   : > { %s4004_s5 = scalar_lea.vmem %s827_s1, 3072  ;;  %p4012_p1 = scmp.lt.s32.totalorder %s827_s1, %s827_s1 }
  0x56   : > { %p4005_p12 = scmp.ne.s32.totalorder %s827_s1, %s4004_s5  ;;  %p4013_p4 = scmp.lt.s32.totalorder %s4004_s5, %s4004_s5 }
  0x58   : > { %p4007_p13 = pnand %p4005_p12, %p4547_p6  ;;  %p4014_p7 = por %p4013_p4, %p4012_p1 }
  0x5a   : > { %p4008_p0 = pneg %p4007_p13 }
  0x5c   : > { %p4015_p8 = pnand %p4014_p7, %p4008_p0 }
  0x5e   : > { %4018 = shalt.err (!%p4015_p8)
}
  0x5f   : > { %3738 = dma.hbm_to_vmem [thread:$0]  (!%p4537_p5), %s5190_s18, 3072, %s827_s1, [#allocation21], %s4353_s3, %s4353_s3, %s4354_s30  }
  0x60   : > { %s4357_s29 = smov [#allocation23]   ;;  %s4358_s28 = smov [#allocation26]  }
  0x61   : > { %s852_s7 = sshll.u32 %s4357_s29, 4  ;;  %s881_s6 = sshll.u32 %s4358_s28, 4  ;;  %s853_s7 = int_to_ptr.vmem [resolvable:$true] %s852_s7  ;;  %s882_s6 = int_to_ptr.vmem [resolvable:$true] %s881_s6 }
  0x62   : > { %s4030_s2 = scalar_lea.vmem %s853_s7, 384  ;;  %p4038_p12 = scmp.lt.s32.totalorder %s853_s7, %s853_s7 }
  0x63   : > { %p4031_p9 = scmp.ne.s32.totalorder %s853_s7, %s4030_s2  ;;  %p4039_p13 = scmp.lt.s32.totalorder %s4030_s2, %s4030_s2 }
  0x65   : > { %p4033_p10 = pnand %p4031_p9, %p4547_p6  ;;  %p4040_p0 = por %p4039_p13, %p4038_p12 }
  0x67   : > { %p4034_p11 = pneg %p4033_p10 }
  0x69   : > { %p4041_p1 = pnand %p4040_p0, %p4034_p11 }
  0x6b   : > { %4044 = shalt.err (!%p4041_p1)
}
  0x6c   : > { %3744 = dma.hbm_to_vmem [thread:$0]  (!%p4537_p5), %s5192_s20, 384, %s853_s7, [#allocation24], %s4353_s3, %s4353_s3, %s4354_s30  }
  0x6d   : > { %s4056_s9 = scalar_lea.vmem %s882_s6, 512  ;;  %p4064_p9 = scmp.lt.s32.totalorder %s882_s6, %s882_s6 }
  0x6e   : > { %p4057_p4 = scmp.ne.s32.totalorder %s882_s6, %s4056_s9  ;;  %p4065_p10 = scmp.lt.s32.totalorder %s4056_s9, %s4056_s9 }
  0x70   : > { %p4059_p7 = pnand %p4057_p4, %p4547_p6  ;;  %p4066_p11 = por %p4065_p10, %p4064_p9 }
  0x72   : > { %p4060_p8 = pneg %p4059_p7 }
  0x74   : > { %p4067_p12 = pnand %p4066_p11, %p4060_p8 }
  0x76   : > { %4070 = shalt.err (!%p4067_p12)
}
  0x77   : > { %3750 = dma.hbm_to_vmem [thread:$0]  (!%p4537_p5), %s5195_s23, 512, %s882_s6, [#allocation27], %s4353_s3, %s4353_s3, %s4354_s30  }
  0x78   : > { %s4359_s7 = smov [#allocation3]   ;;  %s4360_s2 = smov [#allocation7]  }
  0x79   : > { %s667_s28 = sshll.u32 %s4359_s7, 4  ;;  %s699_s1 = sshll.u32 %s4360_s2, 4  ;;  %s668_s28 = int_to_ptr.vmem [resolvable:$true] %s667_s28  ;;  %s700_s1 = int_to_ptr.vmem [resolvable:$true] %s699_s1 }
  0x7a   : > { %s4082_s5 = scalar_lea.vmem %s668_s28, 512  ;;  %p4090_p4 = scmp.lt.s32.totalorder %s668_s28, %s668_s28 }
  0x7b   : > { %p4083_p13 = scmp.ne.s32.totalorder %s668_s28, %s4082_s5  ;;  %p4091_p7 = scmp.lt.s32.totalorder %s4082_s5, %s4082_s5 }
  0x7d   : > { %p4085_p0 = pnand %p4083_p13, %p4547_p6  ;;  %p4092_p8 = por %p4091_p7, %p4090_p4 }
  0x7f   : > { %p4086_p1 = pneg %p4085_p0 }
  0x81   : > { %p4093_p9 = pnand %p4092_p8, %p4086_p1 }
  0x83   : > { %4096 = shalt.err (!%p4093_p9)
}
  0x84   : > { %s5223_s10 = sld [smem:[#allocation40_spill]]  ;;  %s4108_s29 = scalar_lea.vmem %s700_s1, 3072 }
  0x85   : > { %p4109_p10 = scmp.ne.s32.totalorder %s700_s1, %s4108_s29  ;;  %p4116_p13 = scmp.lt.s32.totalorder %s700_s1, %s700_s1 }
  0x86   : > { %p4117_p0 = scmp.lt.s32.totalorder %s4108_s29, %s4108_s29 }
  0x87   : > { %p4111_p11 = pnand %p4109_p10, %p4547_p6 }
  0x88   : > { %p4118_p1 = por %p4117_p0, %p4116_p13 }
  0x89   : > { %p4112_p12 = pneg %p4111_p11 }
  0x8a   : > { %3705 = dma.hbm_to_vmem [thread:$0]  (!%p4537_p5), %s5223_s10, 512, %s668_s28, [#allocation4], %s4353_s3, %s4353_s3, %s4354_s30  }
  0x8b   : > { %p4119_p4 = pnand %p4118_p1, %p4112_p12 }
  0x8d   : > { %4122 = shalt.err (!%p4119_p4)
}
  0x8e   : > { %s5224_s5 = sld [smem:[#allocation44_spill]]  ;;  %s4361_s28 = smov [#allocation10]  }
  0x8f   : > { %s728_s6 = sshll.u32 %s4361_s28, 4  ;;  %s4362_s9 = smov [#allocation13]   ;;  %s729_s6 = int_to_ptr.vmem [resolvable:$true] %s728_s6 }
  0x90   : > { %s754_s10 = sshll.u32 %s4362_s9, 4  ;;  %s4134_s13 = scalar_lea.vmem %s729_s6, 512  ;;  %s755_s10 = int_to_ptr.vmem [resolvable:$true] %s754_s10 }
  0x91   : > { %p4135_p7 = scmp.ne.s32.totalorder %s729_s6, %s4134_s13  ;;  %p4142_p10 = scmp.lt.s32.totalorder %s729_s6, %s729_s6 }
  0x92   : > { %p4143_p11 = scmp.lt.s32.totalorder %s4134_s13, %s4134_s13 }
  0x93   : > { %p4137_p8 = pnand %p4135_p7, %p4547_p6 }
  0x94   : > { %3711 = dma.hbm_to_vmem [thread:$0]  (!%p4537_p5), %s5224_s5, 3072, %s700_s1, [#allocation6], %s4353_s3, %s4353_s3, %s4354_s30  }
  0x95   : > { %p4138_p9 = pneg %p4137_p8  ;;  %p4144_p12 = por %p4143_p11, %p4142_p10 }
  0x97   : > { %p4145_p13 = pnand %p4144_p12, %p4138_p9 }
  0x99   : > { %4148 = shalt.err (!%p4145_p13)
}
  0x9a   : > { %s5225_s7 = sld [smem:[#allocation47_spill]]  ;;  %s4160_s2 = scalar_lea.vmem %s755_s10, 512 }
  0x9b   : > { %p4161_p0 = scmp.ne.s32.totalorder %s755_s10, %s4160_s2  ;;  %p4168_p7 = scmp.lt.s32.totalorder %s755_s10, %s755_s10 }
  0x9c   : > { %p4169_p8 = scmp.lt.s32.totalorder %s4160_s2, %s4160_s2 }
  0x9d   : > { %p4163_p1 = pnand %p4161_p0, %p4547_p6 }
  0x9e   : > { %p4170_p9 = por %p4169_p8, %p4168_p7 }
  0x9f   : > { %p4164_p4 = pneg %p4163_p1 }
  0xa0   : > { %3717 = dma.hbm_to_vmem [thread:$0]  (!%p4537_p5), %s5225_s7, 512, %s729_s6, [#allocation9], %s4353_s3, %s4353_s3, %s4354_s30  }
  0xa1   : > { %p4171_p10 = pnand %p4170_p9, %p4164_p4 }
  0xa3   : > { %4174 = shalt.err (!%p4171_p10)
}
  0xa4   : > { %s5226_s28 = sld [smem:[#allocation49_spill]]  ;;  %s4363_s6 = smov [#allocation16]  }
  0xa5   : > { %s784_s9 = sshll.u32 %s4363_s6, 4  ;;  %s4364_s1 = smov [#allocation19]   ;;  %s785_s9 = int_to_ptr.vmem [resolvable:$true] %s784_s9 }
  0xa6   : > { %s813_s29 = sshll.u32 %s4364_s1, 4  ;;  %s4186_s7 = scalar_lea.vmem %s785_s9, 3072  ;;  %s814_s29 = int_to_ptr.vmem [resolvable:$true] %s813_s29 }
  0xa7   : > { %p4187_p11 = scmp.ne.s32.totalorder %s785_s9, %s4186_s7  ;;  %p4194_p0 = scmp.lt.s32.totalorder %s785_s9, %s785_s9 }
  0xa8   : > { %p4195_p1 = scmp.lt.s32.totalorder %s4186_s7, %s4186_s7 }
  0xa9   : > { %p4189_p12 = pnand %p4187_p11, %p4547_p6 }
  0xaa   : > { %3723 = dma.hbm_to_vmem [thread:$0]  (!%p4537_p5), %s5226_s28, 512, %s755_s10, [#allocation12], %s4353_s3, %s4353_s3, %s4354_s30  }
  0xab   : > { %p4190_p13 = pneg %p4189_p12  ;;  %p4196_p4 = por %p4195_p1, %p4194_p0 }
  0xad   : > { %p4197_p7 = pnand %p4196_p4, %p4190_p13 }
  0xaf   : > { %4200 = shalt.err (!%p4197_p7)
}
  0xb0   : > { %3729 = dma.hbm_to_vmem [thread:$0]  (!%p4537_p5), %s5186_s14, 3072, %s785_s9, [#allocation15], %s4353_s3, %s4353_s3, %s4354_s30  }
  0xb1   : > { %s4212_s13 = scalar_lea.vmem %s814_s29, 512  ;;  %p4220_p11 = scmp.lt.s32.totalorder %s814_s29, %s814_s29 }
  0xb2   : > { %p4213_p8 = scmp.ne.s32.totalorder %s814_s29, %s4212_s13  ;;  %p4221_p12 = scmp.lt.s32.totalorder %s4212_s13, %s4212_s13 }
  0xb4   : > { %p4215_p9 = pnand %p4213_p8, %p4547_p6  ;;  %p4222_p13 = por %p4221_p12, %p4220_p11 }
  0xb6   : > { %p4216_p10 = pneg %p4215_p9 }
  0xb8   : > { %p4223_p0 = pnand %p4222_p13, %p4216_p10 }
  0xba   : > { %4226 = shalt.err (!%p4223_p0)
}
  0xbb   : > { %3735 = dma.hbm_to_vmem [thread:$0]  (!%p4537_p5), %s5189_s17, 512, %s814_s29, [#allocation18], %s4353_s3, %s4353_s3, %s4354_s30  }
  0xbc   : > { %s4365_s6 = smov [#allocation22]   ;;  %s4366_s1 = smov [#allocation25]  }
  0xbd   : > { %s839_s9 = sshll.u32 %s4365_s6, 4  ;;  %s865_s7 = sshll.u32 %s4366_s1, 4  ;;  %s840_s9 = int_to_ptr.vmem [resolvable:$true] %s839_s9  ;;  %s866_s7 = int_to_ptr.vmem [resolvable:$true] %s865_s7 }
  0xbe   : > { %s4238_s10 = scalar_lea.vmem %s840_s9, 512  ;;  %p4246_p8 = scmp.lt.s32.totalorder %s840_s9, %s840_s9 }
  0xbf   : > { %p4239_p1 = scmp.ne.s32.totalorder %s840_s9, %s4238_s10  ;;  %p4247_p9 = scmp.lt.s32.totalorder %s4238_s10, %s4238_s10 }
  0xc1   : > { %p4241_p4 = pnand %p4239_p1, %p4547_p6  ;;  %p4248_p10 = por %p4247_p9, %p4246_p8 }
  0xc3   : > { %p4242_p7 = pneg %p4241_p4 }
  0xc5   : > { %p4249_p11 = pnand %p4248_p10, %p4242_p7 }
  0xc7   : > { %4252 = shalt.err (!%p4249_p11)
}
  0xc8   : > { %3741 = dma.hbm_to_vmem [thread:$0]  (!%p4537_p5), %s5191_s19, 512, %s840_s9, [#allocation21], %s4353_s3, %s4353_s3, %s4354_s30  }
  0xc9   : > { %s4264_s13 = scalar_lea.vmem %s866_s7, 4096  ;;  %p4272_p1 = scmp.lt.s32.totalorder %s866_s7, %s866_s7 }
  0xca   : > { %p4265_p12 = scmp.ne.s32.totalorder %s866_s7, %s4264_s13  ;;  %p4273_p4 = scmp.lt.s32.totalorder %s4264_s13, %s4264_s13 }
  0xcc   : > { %p4267_p13 = pnand %p4265_p12, %p4547_p6  ;;  %p4274_p7 = por %p4273_p4, %p4272_p1 }
  0xce   : > { %p4268_p0 = pneg %p4267_p13 }
  0xd0   : > { %p4275_p8 = pnand %p4274_p7, %p4268_p0 }
  0xd2   : > { %4278 = shalt.err (!%p4275_p8)
}
  0xd3   : > { %3747 = dma.hbm_to_vmem [thread:$0]  (!%p4537_p5), %s5193_s21, 4096, %s866_s7, [#allocation24], %s4353_s3, %s4353_s3, %s4354_s30  }
  0xd4   : > { %s4367_s6 = smov [#allocation28]  }
  0xd5   : > { %s894_s9 = sshll.u32 %s4367_s6, 4  ;;  %s895_s9 = int_to_ptr.vmem [resolvable:$true] %s894_s9 }
  0xd6   : > { %s4290_s1 = scalar_lea.vmem %s895_s9, 2048  ;;  %p4298_p12 = scmp.lt.s32.totalorder %s895_s9, %s895_s9 }
  0xd7   : > { %p4291_p9 = scmp.ne.s32.totalorder %s895_s9, %s4290_s1  ;;  %p4299_p13 = scmp.lt.s32.totalorder %s4290_s1, %s4290_s1 }
  0xd9   : > { %p4293_p10 = pnand %p4291_p9, %p4547_p6  ;;  %p4300_p0 = por %p4299_p13, %p4298_p12 }
  0xdb   : > { %p4294_p11 = pneg %p4293_p10 }
  0xdd   : > { %p4301_p1 = pnand %p4300_p0, %p4294_p11 }
  0xdf   : > { %4304 = shalt.err (!%p4301_p1)
}
  0xe0   : > { %3753 = dma.hbm_to_vmem [thread:$0]  (!%p4537_p5), %s5196_s24, 2048, %s895_s9, [#allocation27], %s4353_s3, %s4353_s3, %s4354_s30  }
  0xe1   : > { %921 = sbr.rel (%p4527_p3) target bundleno = 5080 (0x13d8), region = 124 }
  0xe6   : > { %4310 = dma.done.wait (%p3754_p2), [#allocation4], 512  }
  0xe7   : > { %4312 = vsyncadd (%p3754_p2), [#allocation4], 4294966784 }
  0xe8   : > { %4314 = dma.done.wait (%p3754_p2), [#allocation6], 5120  }
  0xe9   : > { %4316 = vsyncadd (%p3754_p2), [#allocation6], 4294962176 }
  0xea   : > { %4318 = dma.done.wait (%p3754_p2), [#allocation9], 3584  }
  0xeb   : > { %4320 = vsyncadd (%p3754_p2), [#allocation9], 4294963712 }
  0xec   : > { %4322 = dma.done.wait (%p3754_p2), [#allocation12], 3584  }
  0xed   : > { %4324 = vsyncadd (%p3754_p2), [#allocation12], 4294963712 }
  0xee   : > { %4326 = dma.done.wait (%p3754_p2), [#allocation15], 3200  }
  0xef   : > { %4328 = vsyncadd (%p3754_p2), [#allocation15], 4294964096 }
  0xf0   : > { %4330 = dma.done.wait (%p3754_p2), [#allocation18], 3584  }
  0xf1   : > { %4332 = vsyncadd (%p3754_p2), [#allocation18], 4294963712 }
  0xf2   : > { %4334 = dma.done.wait (%p3754_p2), [#allocation21], 3584  }
  0xf3   : > { %4336 = vsyncadd (%p3754_p2), [#allocation21], 4294963712 }
  0xf4   : > { %4338 = dma.done.wait (%p3754_p2), [#allocation24], 4480  }
  0xf5   : > { %4340 = vsyncadd (%p3754_p2), [#allocation24], 4294962816 }
  0xf6   : > { %4342 = dma.done.wait (%p3754_p2), [#allocation27], 2560  }
  0xf7   : > { %4344 = vsyncadd (%p3754_p2), [#allocation27], 4294964736  ;;  %p1061_p3 = scmp.lt.s32.totalorder %s4522_s4, 1  ;;  %vm1077_vm0 = vcmask 516096   ;;  %v4368_v0 = vmov 0.0   ;;  %s5227_s3 = sld [smem:[#allocation39_spill]] }
  0xf8   : > { %1079 = vst.msk [vmem:[#allocation2 + $0x11] sm:$0x1] %vm1077_vm0, %v4368_v0  ;;  %1078 = vst.msk [vmem:[#allocation2] sm:$0x1] %vm1077_vm0, %v4368_v0  ;;  %3461 = vmatprep.subr.mxu0 %v4368_v0  ;;  %3472 = vmatprep.subr.mxu1 %v4368_v0  ;;  %vm1080_vm1 = vcmask 56320   ;;  %vm1122_vm2 = vcmask 1043456  }
  0xf9   : > { %s5234_s4 = smov (!%p1061_p3, %s4522_s4), 1  ;;  %v1110_v3 = vld [vmem:[#allocation3 + $0x18] sm:$0xf]  ;;  %v1109_v4 = vld [vmem:[#allocation3 + $0x10] sm:$0xff]  ;;  %vm4369_vm3 = vmmov 0   ;;  %v1108_v5 = vld [vmem:[#allocation3 + $0x8] sm:$0xff] }
  0xfa   : > { %s3338_s8 = sshll.u32 %s5234_s4, 4  ;;  %3462 = vmatpush3.msk.msra.mxu0 %vm1122_vm2, %v1110_v3  ;;  %3469 = vmatprep.mubr.msk.f32.mxu0 %vm4369_vm3, %v4368_v0  ;;  %v1107_v6 = vld [vmem:[#allocation3] sm:$0xff]  ;;  %s4370_s29 = smov 7   ;;  %vm1103_vm4 = vcmask 113664   ;;  %vm1105_vm5 = vcmask 171008   ;;  %vm1118_vm6 = vcmask 228352  }
  0xfb   : > { %3463 = vmatprep.subr.mxu0 %v4368_v0  ;;  %3504 = vmatprep.mubr.msk.f32.mxu1 %vm4369_vm3, %v4368_v0  ;;  %s4371_s2 = smov 21   ;;  %s4372_s13 = smov 14   ;;  %v1237_v17 = vld [vmem:[#allocation5 + $0x78] sm:$0xff]  ;;  %v1236_v18 = vld [vmem:[#allocation5 + $0x70] sm:$0xff]  ;;  %v1235_v19 = vld [vmem:[#allocation5 + $0x68] sm:$0xff]  ;;  %vm1199_vm7 = vcmask 261120  }
  0xfc   : > { %3464 = vmatpush3.msra.mxu0 %v1109_v4  ;;  %3473 = vmatpush3.msra.mxu1 %v1237_v17  ;;  %v1234_v20 = vld [vmem:[#allocation5 + $0x60] sm:$0xff]  ;;  %v1233_v21 = vld [vmem:[#allocation5 + $0x58] sm:$0xff]  ;;  %v1232_v22 = vld [vmem:[#allocation5 + $0x50] sm:$0xff]  ;;  %s5228_s6 = sld [smem:[#allocation41_spill]]  ;;  %s4373_s9 = smov 64   ;;  %vm1218_vm8 = vcmask 523264  }
  0xfd   : > { %s1065_s30 = scalar_lea.vmem %s5227_s3, %s3338_s8  ;;  %3465 = vmatprep.subr.mxu0 %v4368_v0  ;;  %3474 = vmatprep.subr.mxu1 %v4368_v0  ;;  %v1231_v23 = vld [vmem:[#allocation5 + $0x48] sm:$0xff]  ;;  %v1230_v24 = vld [vmem:[#allocation5 + $0x40] sm:$0xff]  ;;  %v1229_v25 = vld [vmem:[#allocation5 + $0x38] sm:$0xff]  ;;  %s4374_s1 = smov 32   ;;  %vm1220_vm9 = vcmask 785408   ;;  %vm1318_vm10 = vcmask 519168  }
  0xfe   : > { %v1075_v1 = vld [vmem:[%s1065_s30] sm:$0xff]  ;;  %v1076_v2 = vld [vmem:[%s1065_s30 + $0x8] sm:$0xff]  ;;  %3466 = vmatpush3.msra.mxu0 %v1108_v5  ;;  %3475 = vmatpush3.msra.mxu1 %v1236_v18  ;;  %v1228_v26 = vld [vmem:[#allocation5 + $0x30] sm:$0xff]  ;;  %s4375_s10 = smov 96   ;;  %s5229_s0 = sld [smem:[#allocation43_spill]]  ;;  %vm1898_vm11 = vcmask 31744  }
  0xff   : > { %1081 = vst.msk [vmem:[#allocation2 + $0x1] sm:$0xff] %vm1080_vm1, %v1075_v1  ;;  %1082 = vst.msk [vmem:[#allocation2 + $0x9] sm:$0xff] %vm1080_vm1, %v1076_v2  ;;  %3467 = vmatprep.subr.mxu0 %v4368_v0  ;;  %3476 = vmatprep.subr.mxu1 %v4368_v0  ;;  %v1227_v27 = vld [vmem:[#allocation5 + $0x28] sm:$0xff]  ;;  %v1226_v28 = vld [vmem:[#allocation5 + $0x20] sm:$0xff]  ;;  %s5230_s30 = sld [smem:[#allocation45_spill]]  ;;  %vm1975_vm12 = vcmask 522240  }
 0x100   : > { %3468 = vmatpush3.msra.mxu0 %v1107_v6  ;;  %3477 = vmatpush3.msra.mxu1 %v1235_v19  ;;  %v1225_v29 = vld [vmem:[#allocation5 + $0x18] sm:$0xff]  ;;  %v1224_v32 = vld [vmem:[#allocation5 + $0x10] sm:$0xff]  ;;  %v1223_v33 = vld [vmem:[#allocation5 + $0x8] sm:$0xff]  ;;  %vm2481_vm13 = vcmask 1046528   ;;  %vm2728_vm14 = vcmask 1045504   ;;  %vm2820_vm15 = vcmask 260096  }
 0x101   : > { %1362 = vmatprep.subr.mxu0 %v4368_v0  ;;  %3478 = vmatprep.subr.mxu1 %v4368_v0  ;;  %v1222_v37 = vld [vmem:[#allocation5] sm:$0xff]  ;;  %v1343_v48 = vld [vmem:[#allocation7 + $0x78] sm:$0xff]  ;;  %v1342_v49 = vld [vmem:[#allocation7 + $0x70] sm:$0xff] }
 0x102   : > { %3479 = vmatpush3.msra.mxu1 %v1234_v20  ;;  %v3305_v30 = vld [vmem:[%s5228_s6] ss:$0 sm:$0xff]  ;;  %v1341_v50 = vld [vmem:[#allocation7 + $0x68] sm:$0xff]  ;;  %v1339_v52 = vld [vmem:[#allocation7 + $0x58] sm:$0xff] }
 0x103   : > { %3480 = vmatprep.subr.mxu1 %v4368_v0  ;;  %v1340_v51 = vld [vmem:[#allocation7 + $0x60] sm:$0xff]  ;;  %v1338_v53 = vld [vmem:[#allocation7 + $0x50] sm:$0xff]  ;;  %v1337_v54 = vld [vmem:[#allocation7 + $0x48] sm:$0xff] }
 0x104   : > { %3481 = vmatpush3.msra.mxu1 %v1233_v21  ;;  %v1336_v55 = vld [vmem:[#allocation7 + $0x40] sm:$0xff]  ;;  %v1335_v56 = vld [vmem:[#allocation7 + $0x38] sm:$0xff]  ;;  %v1334_v57 = vld [vmem:[#allocation7 + $0x30] sm:$0xff] }
 0x105   : > { %3482 = vmatprep.subr.mxu1 %v4368_v0  ;;  %v1333_v58 = vld [vmem:[#allocation7 + $0x28] sm:$0xff]  ;;  %v1332_v59 = vld [vmem:[#allocation7 + $0x20] sm:$0xff]  ;;  %v1331_v60 = vld [vmem:[#allocation7 + $0x18] sm:$0xff] }
 0x106   : > { %v1085_v7 = vld [vmem:[#allocation2 + $0x1] ss:$2 sm:$0xff]  ;;  %v1083_v9 = vld [vmem:[#allocation2] ss:$2 sm:$0xff]  ;;  %3483 = vmatpush3.msra.mxu1 %v1232_v22  ;;  %v1330_v61 = vld [vmem:[#allocation7 + $0x10] sm:$0xff] }
 0x107   : > { %v1089_v8 = vld [vmem:[#allocation2 + $0x3] ss:$2 sm:$0xff]  ;;  %1091 = vrot.lane.b32.xlu0 %v1085_v7, %s4370_s29  ;;  %v1087_v10 = vld [vmem:[#allocation2 + $0x2] ss:$2 sm:$0xff]  ;;  %1197 = vst.msk [vmem:[#allocation2] sm:$0x1] %vm1077_vm0, %v4368_v0  ;;  %3484 = vmatprep.subr.mxu1 %v4368_v0 }
 0x108   : > { %1099 = vrot.lane.b32.xlu1 %v1089_v8, %s4371_s2  ;;  %1198 = vst.msk [vmem:[#allocation2 + $0x9] sm:$0x1] %vm1077_vm0, %v4368_v0  ;;  %3485 = vmatpush3.msra.mxu1 %v1231_v23  ;;  %v1329_v62 = vld [vmem:[#allocation7 + $0x8] sm:$0xff]  ;;  %v1328_v63 = vld [vmem:[#allocation7] sm:$0xff]  ;;  %v1351_v1 = vld [vmem:[#allocation7 + $0xb8] sm:$0xff] }
 0x109   : > { %3486 = vmatprep.subr.mxu1 %v4368_v0  ;;  %v1350_v2 = vld [vmem:[#allocation7 + $0xb0] sm:$0xff]  ;;  %v1349_v3 = vld [vmem:[#allocation7 + $0xa8] sm:$0xff]  ;;  %v1348_v4 = vld [vmem:[#allocation7 + $0xa0] sm:$0xff] }
 0x10a   : > { %3487 = vmatpush3.msra.mxu1 %v1230_v24  ;;  %v1347_v5 = vld [vmem:[#allocation7 + $0x98] sm:$0xff]  ;;  %v1346_v6 = vld [vmem:[#allocation7 + $0x90] sm:$0xff]  ;;  %v1345_v7 = vld [vmem:[#allocation7 + $0x88] sm:$0xff] }
 0x10b   : > { %1095 = vrot.lane.b32.xlu0 %v1087_v10, %s4372_s13  ;;  %3488 = vmatprep.subr.mxu1 %v4368_v0  ;;  %v3308_v8 = vld [vmem:[%s5229_s0] ss:$0 sm:$0xff]  ;;  %v1459_v19 = vld [vmem:[#allocation8 + $0x78] sm:$0xff]  ;;  %v1458_v20 = vld [vmem:[#allocation8 + $0x70] sm:$0xff]  ;;  %s5231_s13 = sld [smem:[#allocation50_spill]]  ;;  %s3304_s0 = sshll.u32 %s5234_s4, 3 }
 0x10c   : > { %3489 = vmatpush3.msra.mxu1 %v1229_v25  ;;  %v1344_v10 = vld [vmem:[#allocation7 + $0x80] sm:$0xff]  ;;  %v1457_v21 = vld [vmem:[#allocation8 + $0x68] sm:$0xff]  ;;  %v1455_v23 = vld [vmem:[#allocation8 + $0x58] sm:$0xff] }
 0x10d   : > { %3490 = vmatprep.subr.mxu1 %v4368_v0  ;;  %v1456_v22 = vld [vmem:[#allocation8 + $0x60] sm:$0xff]  ;;  %v1454_v24 = vld [vmem:[#allocation8 + $0x50] sm:$0xff]  ;;  %v1453_v25 = vld [vmem:[#allocation8 + $0x48] sm:$0xff] }
 0x10e   : > { %3491 = vmatpush3.msra.mxu1 %v1228_v26  ;;  %v1452_v26 = vld [vmem:[#allocation8 + $0x40] sm:$0xff] }
 0x10f   : > { %3492 = vmatprep.subr.mxu1 %v4368_v0 }
 0x110   : > { %3493 = vmatpush3.msra.mxu1 %v1227_v27  ;;  %v1451_v27 = vld [vmem:[#allocation8 + $0x38] sm:$0xff] }
 0x111   : > { %3494 = vmatprep.subr.mxu1 %v4368_v0 }
 0x112   : > { %3495 = vmatpush3.msra.mxu1 %v1226_v28  ;;  %v1450_v28 = vld [vmem:[#allocation8 + $0x30] sm:$0xff] }
 0x113   : > { %3496 = vmatprep.subr.mxu1 %v4368_v0 }
 0x114   : > { %3497 = vmatpush3.msra.mxu1 %v1225_v29  ;;  %v1449_v29 = vld [vmem:[#allocation8 + $0x28] sm:$0xff] }
 0x115   : > { %3498 = vmatprep.subr.mxu1 %v4368_v0 }
 0x116   : > { %3499 = vmatpush3.msra.mxu1 %v1224_v32  ;;  %v1446_v32 = vld [vmem:[#allocation8 + $0x10] sm:$0xff] }
 0x117   : > { %3500 = vmatprep.subr.mxu1 %v4368_v0 }
 0x118   : > { %3501 = vmatpush3.msra.mxu1 %v1223_v33  ;;  %v1445_v33 = vld [vmem:[#allocation8 + $0x8] sm:$0xff] }
 0x119   : > { %3502 = vmatprep.subr.mxu1 %v4368_v0 }
 0x11a   : > { %3503 = vmatpush3.msra.mxu1 %v1222_v37  ;;  %v1465_v37 = vld [vmem:[#allocation8 + $0xa8] sm:$0xff] }
 0x11b   : > { %1471 = vmatprep.subr.mxu1 %v4368_v0 }
 0x179   : > { %v1092_v11 = vpop.permute.xlu0 %1091 }
 0x17a   : > { %v1100_v12 = vpop.permute.xlu1 %1099  ;;  %v1102_v13 = vsel %vm1080_vm1, %v1083_v9, %v1092_v11 }
 0x17d   : > { %v1096_v14 = vpop.permute.xlu0 %1095 }
 0x17e   : > { %v1104_v15 = vsel %vm1103_vm4, %v1102_v13, %v1096_v14 }
 0x17f   : > { %v1106_v16 = vsel %vm1105_vm5, %v1104_v15, %v1100_v12 }
 0x180   : > { %3470 = vmatmul.mubr.msk.f32.vlgmr.msra.gmra.mxu0 %vm1118_vm6, %v1106_v16 }
 0x181   : > { %1363 = vmatpush1.msra.mxu0 %v1343_v48 }
 0x182   : > { %1364 = vmatprep.subr.mxu0 %v4368_v0 }
 0x183   : > { %1365 = vmatpush1.msra.mxu0 %v1342_v49 }
 0x184   : > { %1366 = vmatprep.subr.mxu0 %v4368_v0 }
 0x185   : > { %1367 = vmatpush1.msra.mxu0 %v1341_v50 }
 0x186   : > { %1368 = vmatprep.subr.mxu0 %v4368_v0 }
 0x187   : > { %1369 = vmatpush1.msra.mxu0 %v1340_v51 }
 0x188   : > { %1370 = vmatprep.subr.mxu0 %v4368_v0 }
 0x189   : > { %1371 = vmatpush1.msra.mxu0 %v1339_v52 }
 0x18a   : > { %1372 = vmatprep.subr.mxu0 %v4368_v0 }
 0x18b   : > { %1373 = vmatpush1.msra.mxu0 %v1338_v53 }
 0x18c   : > { %1374 = vmatprep.subr.mxu0 %v4368_v0 }
 0x18d   : > { %1375 = vmatpush1.msra.mxu0 %v1337_v54 }
 0x18e   : > { %1376 = vmatprep.subr.mxu0 %v4368_v0 }
 0x18f   : > { %1377 = vmatpush1.msra.mxu0 %v1336_v55  ;;  %v1543_v55 = vld [vmem:[#allocation10 + $0x8] sm:$0xff] }
 0x190   : > { %1378 = vmatprep.subr.mxu0 %v4368_v0 }
 0x191   : > { %1379 = vmatpush1.msra.mxu0 %v1335_v56  ;;  %v1542_v56 = vld [vmem:[#allocation10] sm:$0xff] }
 0x192   : > { %1380 = vmatprep.subr.mxu0 %v4368_v0 }
 0x193   : > { %1381 = vmatpush1.msra.mxu0 %v1334_v57 }
 0x194   : > { %1382 = vmatprep.subr.mxu0 %v4368_v0 }
 0x195   : > { %1383 = vmatpush1.msra.mxu0 %v1333_v58 }
 0x196   : > { %1384 = vmatprep.subr.mxu0 %v4368_v0 }
 0x197   : > { %1385 = vmatpush1.msra.mxu0 %v1332_v59 }
 0x198   : > { %1386 = vmatprep.subr.mxu0 %v4368_v0 }
 0x199   : > { %1387 = vmatpush1.msra.mxu0 %v1331_v60  ;;  %v1647_v60 = vld [vmem:[#allocation11 + $0x78] sm:$0xff] }
 0x19a   : > { %1388 = vmatprep.subr.mxu0 %v4368_v0 }
 0x19b   : > { %1389 = vmatpush1.msra.mxu0 %v1330_v61  ;;  %v1646_v61 = vld [vmem:[#allocation11 + $0x70] sm:$0xff] }
 0x19c   : > { %1390 = vmatprep.subr.mxu0 %v4368_v0 }
 0x19d   : > { %1391 = vmatpush1.msra.mxu0 %v1329_v62  ;;  %v1645_v62 = vld [vmem:[#allocation11 + $0x68] sm:$0xff] }
 0x19e   : > { %1392 = vmatprep.subr.mxu0 %v4368_v0 }
 0x19f   : > { %1393 = vmatpush1.msra.mxu0 %v1328_v63  ;;  %v1644_v63 = vld [vmem:[#allocation11 + $0x60] sm:$0xff] }
 0x1a0   : > { %1410 = vmatprep.subr.mxu0 %v4368_v0 }
 0x1a1   : > { %1411 = vmatpush2.msra.mxu0 %v1351_v1  ;;  %v1643_v1 = vld [vmem:[#allocation11 + $0x58] sm:$0xff] }
 0x1a2   : > { %1412 = vmatprep.subr.mxu0 %v4368_v0 }
 0x1a3   : > { %1413 = vmatpush2.msra.mxu0 %v1350_v2  ;;  %v1642_v2 = vld [vmem:[#allocation11 + $0x50] sm:$0xff] }
 0x1a4   : > { %1414 = vmatprep.subr.mxu0 %v4368_v0 }
 0x1a5   : > { %1415 = vmatpush2.msra.mxu0 %v1349_v3  ;;  %v1641_v3 = vld [vmem:[#allocation11 + $0x48] sm:$0xff] }
 0x1a6   : > { %1416 = vmatprep.subr.mxu0 %v4368_v0 }
 0x1a7   : > { %1417 = vmatpush2.msra.mxu0 %v1348_v4  ;;  %v1640_v4 = vld [vmem:[#allocation11 + $0x40] sm:$0xff] }
 0x1a8   : > { %1418 = vmatprep.subr.mxu0 %v4368_v0 }
 0x1a9   : > { %1419 = vmatpush2.msra.mxu0 %v1347_v5  ;;  %v1639_v5 = vld [vmem:[#allocation11 + $0x38] sm:$0xff] }
 0x1aa   : > { %1420 = vmatprep.subr.mxu0 %v4368_v0 }
 0x1ab   : > { %1421 = vmatpush2.msra.mxu0 %v1346_v6  ;;  %v1638_v6 = vld [vmem:[#allocation11 + $0x30] sm:$0xff] }
 0x1ac   : > { %1422 = vmatprep.subr.mxu0 %v4368_v0 }
 0x1ad   : > { %1423 = vmatpush2.msra.mxu0 %v1345_v7  ;;  %v1637_v7 = vld [vmem:[#allocation11 + $0x28] sm:$0xff] }
 0x1ae   : > { %1424 = vmatprep.subr.mxu0 %v4368_v0 }
 0x1af   : > { %1425 = vmatpush2.msra.mxu0 %v1344_v10  ;;  %v1634_v10 = vld [vmem:[#allocation11 + $0x10] sm:$0xff] }
 0x1b0   : > { %3507 = vmatprep.subr.mxu0 %v4368_v0 }
 0x240   : > { %v1192_v31 = vpop.f32.mrf.mxu0 }
 0x241   : > { %v1193_v34 = vadd.f32 %v3305_v30, %v1192_v31  ;;  %v1448_v30 = vld [vmem:[#allocation8 + $0x20] sm:$0xff]  ;;  %v1447_v31 = vld [vmem:[#allocation8 + $0x18] sm:$0xff] }
 0x242   : > { %v3471_v35 = vpop.f32.mrf.mxu0 }
 0x243   : > { %v1196_v36 = vmax.f32 %v1193_v34, 0.0  ;;  %v1444_v34 = vld [vmem:[#allocation8] sm:$0xff]  ;;  %v1467_v35 = vld [vmem:[#allocation8 + $0xb8] sm:$0xff] }
 0x245   : > { %1200 = vst.msk [vmem:[#allocation2 + $0x1] sm:$0xff] %vm1199_vm7, %v1196_v36  ;;  %v1466_v36 = vld [vmem:[#allocation8 + $0xb0] sm:$0xff] }
 0x24c   : > { %v1203_v38 = vld [vmem:[#allocation2 + $0x2] ss:$2 sm:$0xf]  ;;  %v1202_v39 = vld [vmem:[#allocation2 + $0x1] ss:$2 sm:$0xf] }
 0x24d   : > { %1210 = vrot.lane.b32.xlu0 %v1203_v38, %s4373_s9  ;;  %1978 = vst.msk [vmem:[#allocation2 + $0x8] sm:$0x1] %vm1077_vm0, %v4368_v0  ;;  %1206 = vrot.lane.b32.xlu1 %v1202_v39, %s4374_s1  ;;  %v1204_v40 = vld [vmem:[#allocation2 + $0x3] ss:$2 sm:$0xf]  ;;  %v1463_v39 = vld [vmem:[#allocation8 + $0x98] sm:$0xff] }
 0x24e   : > { %v1201_v41 = vld [vmem:[#allocation2] ss:$2 sm:$0xf]  ;;  %1317 = vst.msk [vmem:[#allocation2 + $0x5] sm:$0x1] %vm1077_vm0, %v4368_v0 }
 0x24f   : > { %1316 = vst.msk [vmem:[#allocation2] sm:$0x1] %vm1077_vm0, %v4368_v0  ;;  %v1464_v38 = vld [vmem:[#allocation8 + $0xa0] sm:$0xff] }
 0x251   : > { %1214 = vrot.lane.b32.xlu1 %v1204_v40, %s4375_s10  ;;  %v1462_v40 = vld [vmem:[#allocation8 + $0x90] sm:$0xff] }
 0x2bf   : > { %v1207_v42 = vpop.permute.xlu1 %1206  ;;  %v1211_v43 = vpop.permute.xlu0 %1210 }
 0x2c0   : > { %v1217_v44 = vsel %vm1199_vm7, %v1201_v41, %v1207_v42  ;;  %v1461_v41 = vld [vmem:[#allocation8 + $0x88] sm:$0xff]  ;;  %v3309_v42 = vld [vmem:[%s5230_s30] ss:$0 sm:$0xff]  ;;  %s1074_s30 = scalar_lea.vmem %s5199_s27, %s3304_s0 }
 0x2c1   : > { %v1219_v46 = vsel %vm1218_vm8, %v1217_v44, %v1211_v43  ;;  %v1460_v44 = vld [vmem:[#allocation8 + $0x80] sm:$0xff] }
 0x2c3   : > { %v1215_v45 = vpop.permute.xlu1 %1214 }
 0x2c4   : > { %v1221_v47 = vsel %vm1220_vm9, %v1219_v46, %v1215_v45  ;;  %v1545_v46 = vld [vmem:[#allocation10 + $0x18] sm:$0xff] }
 0x2c5   : > { %3505 = vmatmul.mubr.f32.vlgmr.msra.gmra.mxu1 %v1221_v47  ;;  %v1544_v47 = vld [vmem:[#allocation10 + $0x10] sm:$0xff] }
 0x2c6   : > { %1472 = vmatpush1.msra.mxu1 %v1459_v19  ;;  %v1649_v19 = vld [vmem:[#allocation11 + $0x88] sm:$0xff] }
 0x2c7   : > { %1473 = vmatprep.subr.mxu1 %v4368_v0 }
 0x2c8   : > { %1474 = vmatpush1.msra.mxu1 %v1458_v20 }
 0x2c9   : > { %1475 = vmatprep.subr.mxu1 %v4368_v0 }
 0x2ca   : > { %1476 = vmatpush1.msra.mxu1 %v1457_v21  ;;  %v1648_v21 = vld [vmem:[#allocation11 + $0x80] sm:$0xff] }
 0x2cb   : > { %1477 = vmatprep.subr.mxu1 %v4368_v0 }
 0x2cc   : > { %1478 = vmatpush1.msra.mxu1 %v1456_v22 }
 0x2cd   : > { %1479 = vmatprep.subr.mxu1 %v4368_v0 }
 0x2ce   : > { %1480 = vmatpush1.msra.mxu1 %v1455_v23  ;;  %v1733_v23 = vld [vmem:[#allocation13 + $0x18] sm:$0xff] }
 0x2cf   : > { %1481 = vmatprep.subr.mxu1 %v4368_v0 }
 0x2d0   : > { %1482 = vmatpush1.msra.mxu1 %v1454_v24  ;;  %v1732_v24 = vld [vmem:[#allocation13 + $0x10] sm:$0xff] }
 0x2d1   : > { %1483 = vmatprep.subr.mxu1 %v4368_v0 }
 0x2d2   : > { %1484 = vmatpush1.msra.mxu1 %v1453_v25 }
 0x2d3   : > { %1485 = vmatprep.subr.mxu1 %v4368_v0 }
 0x2d4   : > { %1486 = vmatpush1.msra.mxu1 %v1452_v26 }
 0x2d5   : > { %1487 = vmatprep.subr.mxu1 %v4368_v0 }
 0x2d6   : > { %1488 = vmatpush1.msra.mxu1 %v1451_v27 }
 0x2d7   : > { %1489 = vmatprep.subr.mxu1 %v4368_v0 }
 0x2d8   : > { %1490 = vmatpush1.msra.mxu1 %v1450_v28 }
 0x2d9   : > { %1491 = vmatprep.subr.mxu1 %v4368_v0 }
 0x2da   : > { %1492 = vmatpush1.msra.mxu1 %v1449_v29 }
 0x2db   : > { %1493 = vmatprep.subr.mxu1 %v4368_v0 }
 0x2dc   : > { %1494 = vmatpush1.msra.mxu1 %v1448_v30 }
 0x2dd   : > { %1495 = vmatprep.subr.mxu1 %v4368_v0 }
 0x2de   : > { %1496 = vmatpush1.msra.mxu1 %v1447_v31 }
 0x2df   : > { %1497 = vmatprep.subr.mxu1 %v4368_v0 }
 0x2e0   : > { %1498 = vmatpush1.msra.mxu1 %v1446_v32  ;;  %v1731_v32 = vld [vmem:[#allocation13 + $0x8] sm:$0xff] }
 0x2e1   : > { %1499 = vmatprep.subr.mxu1 %v4368_v0 }
 0x2e2   : > { %1500 = vmatpush1.msra.mxu1 %v1445_v33  ;;  %v1730_v33 = vld [vmem:[#allocation13] sm:$0xff] }
 0x2e3   : > { %1501 = vmatprep.subr.mxu1 %v4368_v0 }
 0x2e4   : > { %1502 = vmatpush1.msra.mxu1 %v1444_v34  ;;  %v1816_v34 = vld [vmem:[%s5231_s13 + $0x38] sm:$0xff] }
 0x2e5   : > { %1519 = vmatprep.subr.mxu1 %v4368_v0 }
 0x2e6   : > { %1520 = vmatpush2.msra.mxu1 %v1467_v35  ;;  %v1815_v35 = vld [vmem:[%s5231_s13 + $0x30] sm:$0xff] }
 0x2e7   : > { %1521 = vmatprep.subr.mxu1 %v4368_v0 }
 0x2e8   : > { %1522 = vmatpush2.msra.mxu1 %v1466_v36  ;;  %v1814_v36 = vld [vmem:[%s5231_s13 + $0x28] sm:$0xff] }
 0x2e9   : > { %1523 = vmatprep.subr.mxu1 %v4368_v0 }
 0x2ea   : > { %1524 = vmatpush2.msra.mxu1 %v1465_v37  ;;  %v1813_v37 = vld [vmem:[%s5231_s13 + $0x20] sm:$0xff] }
 0x2eb   : > { %1525 = vmatprep.subr.mxu1 %v4368_v0 }
 0x2ec   : > { %1526 = vmatpush2.msra.mxu1 %v1464_v38  ;;  %v1812_v38 = vld [vmem:[%s5231_s13 + $0x18] sm:$0xff] }
 0x2ed   : > { %1527 = vmatprep.subr.mxu1 %v4368_v0 }
 0x2ee   : > { %1528 = vmatpush2.msra.mxu1 %v1463_v39 }
 0x2ef   : > { %1529 = vmatprep.subr.mxu1 %v4368_v0 }
 0x2f0   : > { %1530 = vmatpush2.msra.mxu1 %v1462_v40 }
 0x2f1   : > { %1531 = vmatprep.subr.mxu1 %v4368_v0 }
 0x2f2   : > { %1532 = vmatpush2.msra.mxu1 %v1461_v41 }
 0x2f3   : > { %1533 = vmatprep.subr.mxu1 %v4368_v0 }
 0x2f4   : > { %1534 = vmatpush2.msra.mxu1 %v1460_v44  ;;  %v1809_v44 = vld [vmem:[%s5231_s13] sm:$0xff] }
 0x2f5   : > { %3518 = vmatprep.subr.mxu1 %v4368_v0 }
 0x385   : > { %v1311_v9 = vpop.f32.mrf.mxu1 }
 0x386   : > { %v1312_v11 = vadd.f32 %v3308_v8, %v1311_v9  ;;  %v1636_v8 = vld [vmem:[#allocation11 + $0x20] sm:$0xff]  ;;  %v1635_v9 = vld [vmem:[#allocation11 + $0x18] sm:$0xff] }
 0x387   : > { %v3506_v12 = vpop.f32.mrf.mxu1 }
 0x388   : > { %v1315_v13 = vmax.f32 %v1312_v11, 0.0  ;;  %v1633_v11 = vld [vmem:[#allocation11 + $0x8] sm:$0xff]  ;;  %v1632_v12 = vld [vmem:[#allocation11] sm:$0xff] }
 0x38a   : > { %1319 = vst.msk [vmem:[#allocation2 + $0x1] sm:$0xf] %vm1318_vm10, %v1315_v13  ;;  %v1655_v13 = vld [vmem:[#allocation11 + $0xb8] sm:$0xff] }
 0x391   : > { %v1322_v14 = vld [vmem:[#allocation2 + $0x2] sm:$0xf] }
 0x392   : > { %v1321_v15 = vld [vmem:[#allocation2 + $0x1] sm:$0xf]  ;;  %3310 = vmatprep.mubr.msk.f32.mxu0 %vm1218_vm8, %v1322_v14  ;;  %1434 = vst.msk [vmem:[#allocation2 + $0x5] sm:$0x1] %vm1077_vm0, %v4368_v0  ;;  %v1654_v14 = vld [vmem:[#allocation11 + $0xb0] sm:$0xff] }
 0x393   : > { %v1320_v16 = vld [vmem:[#allocation2] sm:$0xf]  ;;  %1324 = vrot.lane.b32.xlu0 %v1321_v15, %s4373_s9  ;;  %v1653_v15 = vld [vmem:[#allocation11 + $0xa8] sm:$0xff] }
 0x394   : > { %1433 = vst.msk [vmem:[#allocation2] sm:$0x1] %vm1077_vm0, %v4368_v0 }
 0x405   : > { %v1325_v17 = vpop.permute.xlu0 %1324 }
 0x406   : > { %v1327_v18 = vsel %vm1218_vm8, %v1320_v16, %v1325_v17  ;;  %v1652_v16 = vld [vmem:[#allocation11 + $0xa0] sm:$0xff]  ;;  %v1651_v17 = vld [vmem:[#allocation11 + $0x98] sm:$0xff] }
 0x407   : > { %1427 = vmatmul.mubr.f32.vlgmr.msra.gmra.mxu0 %v1327_v18  ;;  %v1650_v18 = vld [vmem:[#allocation11 + $0x90] sm:$0xff] }
 0x408   : > { %3515 = vmatprep.mubr.msk.f32.mxu0 %vm4369_vm3, %v4368_v0  ;;  %3508 = vmatpush3.msra.mxu0 %v1545_v46 }
 0x409   : > { %3509 = vmatprep.subr.mxu0 %v4368_v0 }
 0x40a   : > { %3510 = vmatpush3.msra.mxu0 %v1544_v47 }
 0x40b   : > { %3511 = vmatprep.subr.mxu0 %v4368_v0 }
 0x40c   : > { %3512 = vmatpush3.msra.mxu0 %v1543_v55  ;;  %v2002_v55 = vld [vmem:[#allocation16 + $0x70] sm:$0xff] }
 0x40d   : > { %3513 = vmatprep.subr.mxu0 %v4368_v0 }
 0x40e   : > { %3514 = vmatpush3.msra.mxu0 %v1542_v56  ;;  %v2001_v56 = vld [vmem:[#allocation16 + $0x68] sm:$0xff] }
 0x40f   : > { %1659 = vmatprep.subr.mxu0 %v4368_v0 }
 0x4c7   : > { %v1428_v43 = vpop.f32.mrf.mxu0 }
 0x4c8   : > { %v4893_v45 = vadd.f32 %v3309_v42, %v1428_v43  ;;  %v1811_v42 = vld [vmem:[%s5231_s13 + $0x10] sm:$0xff]  ;;  %v1810_v43 = vld [vmem:[%s5231_s13 + $0x8] sm:$0xff] }
 0x4c9   : > { %v1430_v48 = vpop.f32.mrf.mxu0 }
 0x4ca   : > { %v1432_v49 = vmax.f32 %v4893_v45, 0.0 }
 0x4cc   : > { %1435 = vst.msk [vmem:[#allocation2 + $0x1] sm:$0xf] %vm1318_vm10, %v1432_v49 }
 0x4d3   : > { %v1438_v50 = vld [vmem:[#allocation2 + $0x2] sm:$0xf] }
 0x4d4   : > { %v1437_v51 = vld [vmem:[#allocation2 + $0x1] sm:$0xf]  ;;  %3311 = vmatprep.mubr.msk.f32.mxu1 %vm1218_vm8, %v1438_v50  ;;  %1622 = vst.msk [vmem:[#allocation2 + $0x5] sm:$0x1] %vm1077_vm0, %v4368_v0 }
 0x4d5   : > { %v1436_v52 = vld [vmem:[#allocation2] sm:$0xf]  ;;  %1440 = vrot.lane.b32.xlu1 %v1437_v51, %s4373_s9 }
 0x4d6   : > { %1621 = vst.msk [vmem:[#allocation2] sm:$0x1] %vm1077_vm0, %v4368_v0 }
 0x547   : > { %v1441_v53 = vpop.permute.xlu1 %1440 }
 0x548   : > { %v1443_v54 = vsel %vm1218_vm8, %v1436_v52, %v1441_v53  ;;  %v1897_v52 = vld [vmem:[#allocation14] sm:$0x7f] }
 0x549   : > { %1536 = vmatmul.mubr.f32.vlgmr.msra.gmra.mxu1 %v1443_v54  ;;  %v2003_v54 = vld [vmem:[#allocation16 + $0x78] sm:$0xff] }
 0x54a   : > { %3526 = vmatprep.mubr.msk.f32.mxu1 %vm4369_vm3, %v4368_v0  ;;  %3519 = vmatpush3.msra.mxu1 %v1733_v23  ;;  %v2118_v23 = vld [vmem:[#allocation17 + $0x70] sm:$0xff] }
 0x54b   : > { %3520 = vmatprep.subr.mxu1 %v4368_v0 }
 0x54c   : > { %3521 = vmatpush3.msra.mxu1 %v1732_v24  ;;  %v2117_v24 = vld [vmem:[#allocation17 + $0x68] sm:$0xff] }
 0x54d   : > { %3522 = vmatprep.subr.mxu1 %v4368_v0 }
 0x54e   : > { %3523 = vmatpush3.msra.mxu1 %v1731_v32  ;;  %v2109_v32 = vld [vmem:[#allocation17 + $0x28] sm:$0xff] }
 0x54f   : > { %3524 = vmatprep.subr.mxu1 %v4368_v0 }
 0x550   : > { %3525 = vmatpush3.msra.mxu1 %v1730_v33  ;;  %v2108_v33 = vld [vmem:[#allocation17 + $0x20] sm:$0xff] }
 0x551   : > { %3548 = vmatprep.subr.mxu1 %v4368_v0 }
 0x609   : > { %v1537_v57 = vpop.f32.mrf.mxu1 }
 0x60a   : > { %v1541_v58 = vmax.f32 %v1537_v57, 0.0  ;;  %v2000_v57 = vld [vmem:[#allocation16 + $0x60] sm:$0xff] }
 0x60b   : > { %v1539_v59 = vpop.f32.mrf.mxu1 }
 0x60c   : > { %3516 = vmatmul.mubr.msk.f32.vlgmr.msra.gmra.mxu0 %vm1199_vm7, %v1541_v58  ;;  %v1999_v58 = vld [vmem:[#allocation16 + $0x58] sm:$0xff]  ;;  %v1998_v59 = vld [vmem:[#allocation16 + $0x50] sm:$0xff] }
 0x60d   : > { %1660 = vmatpush1.msra.mxu0 %v1647_v60  ;;  %v1997_v60 = vld [vmem:[#allocation16 + $0x48] sm:$0xff] }
 0x60e   : > { %1661 = vmatprep.subr.mxu0 %v4368_v0 }
 0x60f   : > { %1662 = vmatpush1.msra.mxu0 %v1646_v61  ;;  %v1996_v61 = vld [vmem:[#allocation16 + $0x40] sm:$0xff] }
 0x610   : > { %1663 = vmatprep.subr.mxu0 %v4368_v0 }
 0x611   : > { %1664 = vmatpush1.msra.mxu0 %v1645_v62  ;;  %v1995_v62 = vld [vmem:[#allocation16 + $0x38] sm:$0xff] }
 0x612   : > { %1665 = vmatprep.subr.mxu0 %v4368_v0 }
 0x613   : > { %1666 = vmatpush1.msra.mxu0 %v1644_v63  ;;  %v1994_v63 = vld [vmem:[#allocation16 + $0x30] sm:$0xff] }
 0x614   : > { %1667 = vmatprep.subr.mxu0 %v4368_v0 }
 0x615   : > { %1668 = vmatpush1.msra.mxu0 %v1643_v1  ;;  %v1993_v1 = vld [vmem:[#allocation16 + $0x28] sm:$0xff] }
 0x616   : > { %1669 = vmatprep.subr.mxu0 %v4368_v0 }
 0x617   : > { %1670 = vmatpush1.msra.mxu0 %v1642_v2  ;;  %v1992_v2 = vld [vmem:[#allocation16 + $0x20] sm:$0xff] }
 0x618   : > { %1671 = vmatprep.subr.mxu0 %v4368_v0 }
 0x619   : > { %1672 = vmatpush1.msra.mxu0 %v1641_v3  ;;  %v1991_v3 = vld [vmem:[#allocation16 + $0x18] sm:$0xff] }
 0x61a   : > { %1673 = vmatprep.subr.mxu0 %v4368_v0 }
 0x61b   : > { %1674 = vmatpush1.msra.mxu0 %v1640_v4  ;;  %v1990_v4 = vld [vmem:[#allocation16 + $0x10] sm:$0xff] }
 0x61c   : > { %1675 = vmatprep.subr.mxu0 %v4368_v0 }
 0x61d   : > { %1676 = vmatpush1.msra.mxu0 %v1639_v5  ;;  %v1989_v5 = vld [vmem:[#allocation16 + $0x8] sm:$0xff] }
 0x61e   : > { %1677 = vmatprep.subr.mxu0 %v4368_v0 }
 0x61f   : > { %1678 = vmatpush1.msra.mxu0 %v1638_v6  ;;  %v1988_v6 = vld [vmem:[#allocation16] sm:$0xff] }
 0x620   : > { %1679 = vmatprep.subr.mxu0 %v4368_v0 }
 0x621   : > { %1680 = vmatpush1.msra.mxu0 %v1637_v7  ;;  %v2011_v7 = vld [vmem:[#allocation16 + $0xb8] sm:$0xff] }
 0x622   : > { %1681 = vmatprep.subr.mxu0 %v4368_v0 }
 0x623   : > { %1682 = vmatpush1.msra.mxu0 %v1636_v8  ;;  %v2010_v8 = vld [vmem:[#allocation16 + $0xb0] sm:$0xff] }
 0x624   : > { %1683 = vmatprep.subr.mxu0 %v4368_v0 }
 0x625   : > { %1684 = vmatpush1.msra.mxu0 %v1635_v9  ;;  %v2009_v9 = vld [vmem:[#allocation16 + $0xa8] sm:$0xff] }
 0x626   : > { %1685 = vmatprep.subr.mxu0 %v4368_v0 }
 0x627   : > { %1686 = vmatpush1.msra.mxu0 %v1634_v10  ;;  %v2008_v10 = vld [vmem:[#allocation16 + $0xa0] sm:$0xff] }
 0x628   : > { %1687 = vmatprep.subr.mxu0 %v4368_v0 }
 0x629   : > { %1688 = vmatpush1.msra.mxu0 %v1633_v11  ;;  %v2007_v11 = vld [vmem:[#allocation16 + $0x98] sm:$0xff] }
 0x62a   : > { %1689 = vmatprep.subr.mxu0 %v4368_v0 }
 0x62b   : > { %1690 = vmatpush1.msra.mxu0 %v1632_v12  ;;  %v2006_v12 = vld [vmem:[#allocation16 + $0x90] sm:$0xff] }
 0x62c   : > { %1707 = vmatprep.subr.mxu0 %v4368_v0 }
 0x62d   : > { %1708 = vmatpush2.msra.mxu0 %v1655_v13  ;;  %v2005_v13 = vld [vmem:[#allocation16 + $0x88] sm:$0xff] }
 0x62e   : > { %1709 = vmatprep.subr.mxu0 %v4368_v0 }
 0x62f   : > { %1710 = vmatpush2.msra.mxu0 %v1654_v14  ;;  %v2004_v14 = vld [vmem:[#allocation16 + $0x80] sm:$0xff] }
 0x630   : > { %1711 = vmatprep.subr.mxu0 %v4368_v0 }
 0x631   : > { %1712 = vmatpush2.msra.mxu0 %v1653_v15 }
 0x632   : > { %1713 = vmatprep.subr.mxu0 %v4368_v0 }
 0x633   : > { %1714 = vmatpush2.msra.mxu0 %v1652_v16 }
 0x634   : > { %1715 = vmatprep.subr.mxu0 %v4368_v0 }
 0x635   : > { %1716 = vmatpush2.msra.mxu0 %v1651_v17 }
 0x636   : > { %1717 = vmatprep.subr.mxu0 %v4368_v0 }
 0x637   : > { %1718 = vmatpush2.msra.mxu0 %v1650_v18 }
 0x638   : > { %1719 = vmatprep.subr.mxu0 %v4368_v0 }
 0x639   : > { %1720 = vmatpush2.msra.mxu0 %v1649_v19 }
 0x63a   : > { %1721 = vmatprep.subr.mxu0 %v4368_v0 }
 0x63b   : > { %1722 = vmatpush2.msra.mxu0 %v1648_v21 }
 0x63c   : > { %3529 = vmatprep.subr.mxu0 %v4368_v0 }
 0x6cc   : > { %v1615_v20 = vpop.f32.mrf.mxu0 }
 0x6cd   : > { %v1619_v22 = vadd.f32 %v1615_v20, %v1432_v49  ;;  %v3315_v49 = vld [vmem:[%s5184_s12] ss:$0 sm:$0xff] }
 0x6ce   : > { %v3517_v25 = vpop.f32.mrf.mxu0 }
 0x6cf   : > { %v1620_v26 = vmax.f32 %v1619_v22, 0.0  ;;  %v2119_v22 = vld [vmem:[#allocation17 + $0x78] sm:$0xff]  ;;  %v2116_v25 = vld [vmem:[#allocation17 + $0x60] sm:$0xff] }
 0x6d1   : > { %1623 = vst.msk [vmem:[#allocation2 + $0x1] sm:$0xf] %vm1318_vm10, %v1620_v26 }
 0x6d8   : > { %v1626_v27 = vld [vmem:[#allocation2 + $0x2] sm:$0xf] }
 0x6d9   : > { %v1625_v28 = vld [vmem:[#allocation2 + $0x1] sm:$0xf]  ;;  %3313 = vmatprep.mubr.msk.f32.mxu0 %vm1218_vm8, %v1626_v27  ;;  %v2114_v27 = vld [vmem:[#allocation17 + $0x50] sm:$0xff] }
 0x6da   : > { %v1624_v29 = vld [vmem:[#allocation2] sm:$0xf]  ;;  %1628 = vrot.lane.b32.xlu0 %v1625_v28, %s4373_s9  ;;  %v2113_v28 = vld [vmem:[#allocation17 + $0x48] sm:$0xff] }
 0x6db   : > { %1977 = vst.msk [vmem:[#allocation2] sm:$0x1] %vm1077_vm0, %v4368_v0 }
 0x74c   : > { %v1629_v30 = vpop.permute.xlu0 %1628 }
 0x74d   : > { %v1631_v31 = vsel %vm1218_vm8, %v1624_v29, %v1629_v30  ;;  %v2112_v29 = vld [vmem:[#allocation17 + $0x40] sm:$0xff]  ;;  %v2111_v30 = vld [vmem:[#allocation17 + $0x38] sm:$0xff] }
 0x74e   : > { %1724 = vmatmul.mubr.f32.vlgmr.msra.gmra.mxu0 %v1631_v31  ;;  %v2110_v31 = vld [vmem:[#allocation17 + $0x30] sm:$0xff] }
 0x74f   : > { %3545 = vmatprep.mubr.msk.f32.mxu0 %vm4369_vm3, %v4368_v0  ;;  %3530 = vmatpush3.msra.mxu0 %v1816_v34  ;;  %v2107_v34 = vld [vmem:[#allocation17 + $0x18] sm:$0xff] }
 0x750   : > { %3531 = vmatprep.subr.mxu0 %v4368_v0 }
 0x751   : > { %3532 = vmatpush3.msra.mxu0 %v1815_v35  ;;  %v2106_v35 = vld [vmem:[#allocation17 + $0x10] sm:$0xff] }
 0x752   : > { %3533 = vmatprep.subr.mxu0 %v4368_v0 }
 0x753   : > { %3534 = vmatpush3.msra.mxu0 %v1814_v36  ;;  %v2105_v36 = vld [vmem:[#allocation17 + $0x8] sm:$0xff] }
 0x754   : > { %3535 = vmatprep.subr.mxu0 %v4368_v0 }
 0x755   : > { %3536 = vmatpush3.msra.mxu0 %v1813_v37  ;;  %v2104_v37 = vld [vmem:[#allocation17] sm:$0xff] }
 0x756   : > { %3537 = vmatprep.subr.mxu0 %v4368_v0 }
 0x757   : > { %3538 = vmatpush3.msra.mxu0 %v1812_v38  ;;  %v2127_v38 = vld [vmem:[#allocation17 + $0xb8] sm:$0xff] }
 0x758   : > { %3539 = vmatprep.subr.mxu0 %v4368_v0 }
 0x759   : > { %3540 = vmatpush3.msra.mxu0 %v1811_v42  ;;  %v2123_v42 = vld [vmem:[#allocation17 + $0x98] sm:$0xff] }
 0x75a   : > { %3541 = vmatprep.subr.mxu0 %v4368_v0 }
 0x75b   : > { %3542 = vmatpush3.msra.mxu0 %v1810_v43  ;;  %v2122_v43 = vld [vmem:[#allocation17 + $0x90] sm:$0xff] }
 0x75c   : > { %3543 = vmatprep.subr.mxu0 %v4368_v0 }
 0x75d   : > { %3544 = vmatpush3.msra.mxu0 %v1809_v44  ;;  %v2121_v44 = vld [vmem:[#allocation17 + $0x88] sm:$0xff] }
 0x75e   : > { %2131 = vmatprep.subr.mxu0 %v4368_v0 }
 0x80e   : > { %v1725_v39 = vpop.f32.mrf.mxu0 }
 0x80f   : > { %v1729_v40 = vmax.f32 %v1725_v39, 0.0  ;;  %v2126_v39 = vld [vmem:[#allocation17 + $0xb0] sm:$0xff] }
 0x810   : > { %v1727_v41 = vpop.f32.mrf.mxu0 }
 0x811   : > { %3527 = vmatmul.mubr.msk.f32.vlgmr.msra.gmra.mxu1 %vm1199_vm7, %v1729_v40  ;;  %v2125_v40 = vld [vmem:[#allocation17 + $0xa8] sm:$0xff]  ;;  %v2124_v41 = vld [vmem:[#allocation17 + $0xa0] sm:$0xff] }
 0x812   : > { %3550 = vmatprep.mubr.msk.f32.mxu1 %vm4369_vm3, %v4368_v0 }
 0x8d1   : > { %v1803_v45 = vpop.f32.mrf.mxu1 }
 0x8d2   : > { %v1807_v46 = vadd.f32 %v1803_v45, %v1620_v26  ;;  %v2115_v26 = vld [vmem:[#allocation17 + $0x58] sm:$0xff] }
 0x8d3   : > { %v3528_v47 = vpop.f32.mrf.mxu1  ;;  %v3319_v45 = vld [vmem:[%s5187_s15] ss:$0 sm:$0xff] }
 0x8d4   : > { %v1808_v48 = vmax.f32 %v1807_v46, 0.0  ;;  %v2120_v47 = vld [vmem:[#allocation17 + $0x80] sm:$0xff] }
 0x8d6   : > { %3546 = vmatmul.mubr.msk.f32.vlgmr.msra.gmra.mxu0 %vm1218_vm8, %v1808_v48 }
 0x8d7   : > { %2132 = vmatpush1.msra.mxu0 %v2119_v22  ;;  %v2309_v22 = vld [vmem:[#allocation20 + $0x88] sm:$0xff] }
 0x8d8   : > { %2133 = vmatprep.subr.mxu0 %v4368_v0 }
 0x8d9   : > { %2134 = vmatpush1.msra.mxu0 %v2118_v23 }
 0x8da   : > { %2135 = vmatprep.subr.mxu0 %v4368_v0 }
 0x8db   : > { %2136 = vmatpush1.msra.mxu0 %v2117_v24  ;;  %v2308_v24 = vld [vmem:[#allocation20 + $0x80] sm:$0xff] }
 0x8dc   : > { %2137 = vmatprep.subr.mxu0 %v4368_v0 }
 0x8dd   : > { %2138 = vmatpush1.msra.mxu0 %v2116_v25 }
 0x8de   : > { %2139 = vmatprep.subr.mxu0 %v4368_v0 }
 0x8df   : > { %2140 = vmatpush1.msra.mxu0 %v2115_v26  ;;  %v2393_v26 = vld [vmem:[#allocation22 + $0x18] sm:$0xff] }
 0x8e0   : > { %2141 = vmatprep.subr.mxu0 %v4368_v0 }
 0x8e1   : > { %2142 = vmatpush1.msra.mxu0 %v2114_v27  ;;  %v2392_v27 = vld [vmem:[#allocation22 + $0x10] sm:$0xff] }
 0x8e2   : > { %2143 = vmatprep.subr.mxu0 %v4368_v0 }
 0x8e3   : > { %2144 = vmatpush1.msra.mxu0 %v2113_v28 }
 0x8e4   : > { %2145 = vmatprep.subr.mxu0 %v4368_v0 }
 0x8e5   : > { %2146 = vmatpush1.msra.mxu0 %v2112_v29 }
 0x8e6   : > { %2147 = vmatprep.subr.mxu0 %v4368_v0 }
 0x8e7   : > { %2148 = vmatpush1.msra.mxu0 %v2111_v30 }
 0x8e8   : > { %2149 = vmatprep.subr.mxu0 %v4368_v0 }
 0x8e9   : > { %2150 = vmatpush1.msra.mxu0 %v2110_v31 }
 0x8ea   : > { %2151 = vmatprep.subr.mxu0 %v4368_v0 }
 0x8eb   : > { %2152 = vmatpush1.msra.mxu0 %v2109_v32 }
 0x8ec   : > { %2153 = vmatprep.subr.mxu0 %v4368_v0 }
 0x8ed   : > { %2154 = vmatpush1.msra.mxu0 %v2108_v33 }
 0x8ee   : > { %2155 = vmatprep.subr.mxu0 %v4368_v0 }
 0x8ef   : > { %2156 = vmatpush1.msra.mxu0 %v2107_v34 }
 0x8f0   : > { %2157 = vmatprep.subr.mxu0 %v4368_v0 }
 0x8f1   : > { %2158 = vmatpush1.msra.mxu0 %v2106_v35  ;;  %v2391_v35 = vld [vmem:[#allocation22 + $0x8] sm:$0xff] }
 0x8f2   : > { %2159 = vmatprep.subr.mxu0 %v4368_v0 }
 0x8f3   : > { %2160 = vmatpush1.msra.mxu0 %v2105_v36  ;;  %v2390_v36 = vld [vmem:[#allocation22] sm:$0xff] }
 0x8f4   : > { %2161 = vmatprep.subr.mxu0 %v4368_v0 }
 0x8f5   : > { %2162 = vmatpush1.msra.mxu0 %v2104_v37 }
 0x8f6   : > { %2179 = vmatprep.subr.mxu0 %v4368_v0 }
 0x8f7   : > { %2180 = vmatpush2.msra.mxu0 %v2127_v38 }
 0x8f8   : > { %2181 = vmatprep.subr.mxu0 %v4368_v0 }
 0x8f9   : > { %2182 = vmatpush2.msra.mxu0 %v2126_v39 }
 0x8fa   : > { %2183 = vmatprep.subr.mxu0 %v4368_v0 }
 0x8fb   : > { %2184 = vmatpush2.msra.mxu0 %v2125_v40 }
 0x8fc   : > { %2185 = vmatprep.subr.mxu0 %v4368_v0 }
 0x8fd   : > { %2186 = vmatpush2.msra.mxu0 %v2124_v41 }
 0x8fe   : > { %2187 = vmatprep.subr.mxu0 %v4368_v0 }
 0x8ff   : > { %2188 = vmatpush2.msra.mxu0 %v2123_v42 }
 0x900   : > { %2189 = vmatprep.subr.mxu0 %v4368_v0 }
 0x901   : > { %2190 = vmatpush2.msra.mxu0 %v2122_v43 }
 0x902   : > { %2191 = vmatprep.subr.mxu0 %v4368_v0 }
 0x903   : > { %2192 = vmatpush2.msra.mxu0 %v2121_v44  ;;  %v2469_v44 = vld [vmem:[#allocation23] sm:$0xff] }
 0x904   : > { %2193 = vmatprep.subr.mxu0 %v4368_v0 }
 0x905   : > { %2194 = vmatpush2.msra.mxu0 %v2120_v47  ;;  %v2627_v47 = vld [vmem:[#allocation25 + $0xf8] sm:$0xff] }
 0x906   : > { %2319 = vmatprep.subr.mxu0 %v4368_v0 }
 0x996   : > { %v1893_v50 = vpop.f32.mrf.mxu0 }
 0x997   : > { %v1894_v51 = vadd.f32 %v3315_v49, %v1893_v50  ;;  %v2205_v49 = vld [vmem:[#allocation19 + $0x18] sm:$0xff]  ;;  %v2204_v50 = vld [vmem:[#allocation19 + $0x10] sm:$0xff] }
 0x998   : > { %v3547_v53 = vpop.f32.mrf.mxu0 }
 0x999   : > { %3549 = vmatpush3.msk.msra.mxu1 %vm1122_vm2, %v1894_v51 }
 0x99a   : > { %3551 = vmatmul.mubr.msk.f32.vlgmr.msra.gmra.mxu1 %vm1898_vm11, %v1897_v52  ;;  %2022 = vmatprep.subr.mxu1 %v4368_v0 }
 0x99b   : > { %2023 = vmatpush1.msra.mxu1 %v2003_v54 }
 0x99c   : > { %2024 = vmatprep.subr.mxu1 %v4368_v0 }
 0x99d   : > { %2025 = vmatpush1.msra.mxu1 %v2002_v55 }
 0x99e   : > { %2026 = vmatprep.subr.mxu1 %v4368_v0 }
 0x99f   : > { %2027 = vmatpush1.msra.mxu1 %v2001_v56 }
 0x9a0   : > { %2028 = vmatprep.subr.mxu1 %v4368_v0 }
 0x9a1   : > { %2029 = vmatpush1.msra.mxu1 %v2000_v57 }
 0x9a2   : > { %2030 = vmatprep.subr.mxu1 %v4368_v0 }
 0x9a3   : > { %2031 = vmatpush1.msra.mxu1 %v1999_v58  ;;  %v2203_v58 = vld [vmem:[#allocation19 + $0x8] sm:$0xff] }
 0x9a4   : > { %2032 = vmatprep.subr.mxu1 %v4368_v0 }
 0x9a5   : > { %2033 = vmatpush1.msra.mxu1 %v1998_v59  ;;  %v2202_v59 = vld [vmem:[#allocation19] sm:$0xff] }
 0x9a6   : > { %2034 = vmatprep.subr.mxu1 %v4368_v0 }
 0x9a7   : > { %2035 = vmatpush1.msra.mxu1 %v1997_v60 }
 0x9a8   : > { %2036 = vmatprep.subr.mxu1 %v4368_v0 }
 0x9a9   : > { %2037 = vmatpush1.msra.mxu1 %v1996_v61 }
 0x9aa   : > { %2038 = vmatprep.subr.mxu1 %v4368_v0 }
 0x9ab   : > { %2039 = vmatpush1.msra.mxu1 %v1995_v62 }
 0x9ac   : > { %2040 = vmatprep.subr.mxu1 %v4368_v0 }
 0x9ad   : > { %2041 = vmatpush1.msra.mxu1 %v1994_v63  ;;  %v2307_v63 = vld [vmem:[#allocation20 + $0x78] sm:$0xff] }
 0x9ae   : > { %2042 = vmatprep.subr.mxu1 %v4368_v0 }
 0x9af   : > { %2043 = vmatpush1.msra.mxu1 %v1993_v1  ;;  %v2306_v1 = vld [vmem:[#allocation20 + $0x70] sm:$0xff] }
 0x9b0   : > { %2044 = vmatprep.subr.mxu1 %v4368_v0 }
 0x9b1   : > { %2045 = vmatpush1.msra.mxu1 %v1992_v2  ;;  %v2305_v2 = vld [vmem:[#allocation20 + $0x68] sm:$0xff] }
 0x9b2   : > { %2046 = vmatprep.subr.mxu1 %v4368_v0 }
 0x9b3   : > { %2047 = vmatpush1.msra.mxu1 %v1991_v3  ;;  %v2304_v3 = vld [vmem:[#allocation20 + $0x60] sm:$0xff] }
 0x9b4   : > { %2048 = vmatprep.subr.mxu1 %v4368_v0 }
 0x9b5   : > { %2049 = vmatpush1.msra.mxu1 %v1990_v4  ;;  %v2303_v4 = vld [vmem:[#allocation20 + $0x58] sm:$0xff] }
 0x9b6   : > { %2050 = vmatprep.subr.mxu1 %v4368_v0 }
 0x9b7   : > { %2051 = vmatpush1.msra.mxu1 %v1989_v5  ;;  %v2302_v5 = vld [vmem:[#allocation20 + $0x50] sm:$0xff] }
 0x9b8   : > { %2052 = vmatprep.subr.mxu1 %v4368_v0 }
 0x9b9   : > { %2053 = vmatpush1.msra.mxu1 %v1988_v6  ;;  %v2301_v6 = vld [vmem:[#allocation20 + $0x48] sm:$0xff] }
 0x9ba   : > { %2070 = vmatprep.subr.mxu1 %v4368_v0 }
 0x9bb   : > { %2071 = vmatpush2.msra.mxu1 %v2011_v7  ;;  %v2300_v7 = vld [vmem:[#allocation20 + $0x40] sm:$0xff] }
 0x9bc   : > { %2072 = vmatprep.subr.mxu1 %v4368_v0 }
 0x9bd   : > { %2073 = vmatpush2.msra.mxu1 %v2010_v8  ;;  %v2299_v8 = vld [vmem:[#allocation20 + $0x38] sm:$0xff] }
 0x9be   : > { %2074 = vmatprep.subr.mxu1 %v4368_v0 }
 0x9bf   : > { %2075 = vmatpush2.msra.mxu1 %v2009_v9  ;;  %v2298_v9 = vld [vmem:[#allocation20 + $0x30] sm:$0xff] }
 0x9c0   : > { %2076 = vmatprep.subr.mxu1 %v4368_v0 }
 0x9c1   : > { %2077 = vmatpush2.msra.mxu1 %v2008_v10  ;;  %v2297_v10 = vld [vmem:[#allocation20 + $0x28] sm:$0xff] }
 0x9c2   : > { %2078 = vmatprep.subr.mxu1 %v4368_v0 }
 0x9c3   : > { %2079 = vmatpush2.msra.mxu1 %v2007_v11  ;;  %v2296_v11 = vld [vmem:[#allocation20 + $0x20] sm:$0xff] }
 0x9c4   : > { %2080 = vmatprep.subr.mxu1 %v4368_v0 }
 0x9c5   : > { %2081 = vmatpush2.msra.mxu1 %v2006_v12  ;;  %v2295_v12 = vld [vmem:[#allocation20 + $0x18] sm:$0xff] }
 0x9c6   : > { %2082 = vmatprep.subr.mxu1 %v4368_v0 }
 0x9c7   : > { %2083 = vmatpush2.msra.mxu1 %v2005_v13  ;;  %v2294_v13 = vld [vmem:[#allocation20 + $0x10] sm:$0xff] }
 0x9c8   : > { %2084 = vmatprep.subr.mxu1 %v4368_v0 }
 0x9c9   : > { %2085 = vmatpush2.msra.mxu1 %v2004_v14  ;;  %v2293_v14 = vld [vmem:[#allocation20 + $0x8] sm:$0xff] }
 0x9ca   : > { %3553 = vmatprep.subr.mxu1 %v4368_v0 }
 0xa5a   : > { %v1971_v15 = vpop.f32.mrf.mxu1 }
 0xa5b   : > { %1976 = vst.msk [vmem:[%s1074_s30] sm:$0x7f] %vm1975_vm12, %v1971_v15  ;;  %1979 = vst.msk [vmem:[#allocation2 + $0x1] sm:$0x7f] %vm1975_vm12, %v1971_v15  ;;  %v2292_v15 = vld [vmem:[#allocation20] sm:$0xff] }
 0xa5c   : > { %v3552_v16 = vpop.f32.mrf.mxu1 }
 0xa5d   : > { %v2315_v16 = vld [vmem:[#allocation20 + $0xb8] sm:$0xff] }
 0xa62   : > { %v1982_v17 = vld [vmem:[#allocation2 + $0x2] sm:$0x7f] }
 0xa63   : > { %v1981_v18 = vld [vmem:[#allocation2 + $0x1] sm:$0x7f]  ;;  %3320 = vmatprep.mubr.msk.f32.mxu1 %vm1218_vm8, %v1982_v17  ;;  %2094 = vst.msk [vmem:[#allocation2 + $0x8] sm:$0x1] %vm1077_vm0, %v4368_v0  ;;  %v2314_v17 = vld [vmem:[#allocation20 + $0xb0] sm:$0xff] }
 0xa64   : > { %v1980_v19 = vld [vmem:[#allocation2] sm:$0x7f]  ;;  %1984 = vrot.lane.b32.xlu1 %v1981_v18, %s4373_s9  ;;  %v2313_v18 = vld [vmem:[#allocation20 + $0xa8] sm:$0xff] }
 0xa65   : > { %2093 = vst.msk [vmem:[#allocation2] sm:$0x1] %vm1077_vm0, %v4368_v0 }
 0xad6   : > { %v1985_v20 = vpop.permute.xlu1 %1984 }
 0xad7   : > { %v1987_v21 = vsel %vm1218_vm8, %v1980_v19, %v1985_v20  ;;  %v2312_v19 = vld [vmem:[#allocation20 + $0xa0] sm:$0xff]  ;;  %v2311_v20 = vld [vmem:[#allocation20 + $0x98] sm:$0xff] }
 0xad8   : > { %2087 = vmatmul.mubr.f32.vlgmr.msra.gmra.mxu1 %v1987_v21  ;;  %v2310_v21 = vld [vmem:[#allocation20 + $0x90] sm:$0xff] }
 0xad9   : > { %3561 = vmatprep.mubr.msk.f32.mxu1 %vm4369_vm3, %v4368_v0  ;;  %3554 = vmatpush3.msra.mxu1 %v2205_v49  ;;  %v2626_v49 = vld [vmem:[#allocation25 + $0xf0] sm:$0xff] }
 0xada   : > { %3555 = vmatprep.subr.mxu1 %v4368_v0 }
 0xadb   : > { %3556 = vmatpush3.msra.mxu1 %v2204_v50  ;;  %v2610_v50 = vld [vmem:[#allocation25 + $0x70] sm:$0xff] }
 0xadc   : > { %3557 = vmatprep.subr.mxu1 %v4368_v0 }
 0xadd   : > { %3558 = vmatpush3.msra.mxu1 %v2203_v58  ;;  %v2621_v58 = vld [vmem:[#allocation25 + $0xc8] sm:$0xff] }
 0xade   : > { %3559 = vmatprep.subr.mxu1 %v4368_v0 }
 0xadf   : > { %3560 = vmatpush3.msra.mxu1 %v2202_v59  ;;  %v2605_v59 = vld [vmem:[#allocation25 + $0x48] sm:$0xff] }
 0xae0   : > { %3564 = vmatprep.subr.mxu1 %v4368_v0 }
 0xb98   : > { %v2088_v46 = vpop.f32.mrf.mxu1 }
 0xb99   : > { %v5058_v48 = vadd.f32 %v3319_v45, %v2088_v46  ;;  %v2470_v45 = vld [vmem:[#allocation23 + $0x8] sm:$0xff]  ;;  %v2471_v46 = vld [vmem:[#allocation23 + $0x10] sm:$0x1] }
 0xb9a   : > { %v2090_v51 = vpop.f32.mrf.mxu1 }
 0xb9b   : > { %v2092_v52 = vmax.f32 %v5058_v48, 0.0  ;;  %v2611_v48 = vld [vmem:[#allocation25 + $0x78] sm:$0xff]  ;;  %v2625_v51 = vld [vmem:[#allocation25 + $0xe8] sm:$0xff] }
 0xb9d   : > { %2095 = vst.msk [vmem:[#allocation2 + $0x1] sm:$0x7f] %vm1975_vm12, %v2092_v52 }
 0xba4   : > { %v2098_v53 = vld [vmem:[#allocation2 + $0x2] sm:$0x7f] }
 0xba5   : > { %v2097_v54 = vld [vmem:[#allocation2 + $0x1] sm:$0x7f]  ;;  %3321 = vmatprep.mubr.msk.f32.mxu0 %vm1218_vm8, %v2098_v53  ;;  %2282 = vst.msk [vmem:[#allocation2 + $0x8] sm:$0x1] %vm1077_vm0, %v4368_v0 }
 0xba6   : > { %v2096_v55 = vld [vmem:[#allocation2] sm:$0x7f]  ;;  %2100 = vrot.lane.b32.xlu0 %v2097_v54, %s4373_s9 }
 0xba7   : > { %2281 = vst.msk [vmem:[#allocation2] sm:$0x1] %vm1077_vm0, %v4368_v0  ;;  %v2624_v53 = vld [vmem:[#allocation25 + $0xe0] sm:$0xff] }
 0xba8   : > { %v2608_v54 = vld [vmem:[#allocation25 + $0x60] sm:$0xff] }
 0xc18   : > { %v2101_v56 = vpop.permute.xlu0 %2100 }
 0xc19   : > { %v2103_v57 = vsel %vm1218_vm8, %v2096_v55, %v2101_v56  ;;  %v2623_v55 = vld [vmem:[#allocation25 + $0xd8] sm:$0xff]  ;;  %v2622_v56 = vld [vmem:[#allocation25 + $0xd0] sm:$0xff] }
 0xc1a   : > { %2196 = vmatmul.mubr.f32.vlgmr.msra.gmra.mxu0 %v2103_v57  ;;  %v2606_v57 = vld [vmem:[#allocation25 + $0x50] sm:$0xff] }
 0xc1b   : > { %2320 = vmatpush1.msra.mxu0 %v2307_v63  ;;  %v2603_v63 = vld [vmem:[#allocation25 + $0x38] sm:$0xff] }
 0xc1c   : > { %2321 = vmatprep.subr.mxu0 %v4368_v0 }
 0xc1d   : > { %2322 = vmatpush1.msra.mxu0 %v2306_v1  ;;  %v2618_v1 = vld [vmem:[#allocation25 + $0xb0] sm:$0xff] }
 0xc1e   : > { %2323 = vmatprep.subr.mxu0 %v4368_v0 }
 0xc1f   : > { %2324 = vmatpush1.msra.mxu0 %v2305_v2  ;;  %v2602_v2 = vld [vmem:[#allocation25 + $0x30] sm:$0xff] }
 0xc20   : > { %2325 = vmatprep.subr.mxu0 %v4368_v0 }
 0xc21   : > { %2326 = vmatpush1.msra.mxu0 %v2304_v3  ;;  %v2617_v3 = vld [vmem:[#allocation25 + $0xa8] sm:$0xff] }
 0xc22   : > { %2327 = vmatprep.subr.mxu0 %v4368_v0 }
 0xc23   : > { %2328 = vmatpush1.msra.mxu0 %v2303_v4  ;;  %v2601_v4 = vld [vmem:[#allocation25 + $0x28] sm:$0xff] }
 0xc24   : > { %2329 = vmatprep.subr.mxu0 %v4368_v0 }
 0xc25   : > { %2330 = vmatpush1.msra.mxu0 %v2302_v5  ;;  %v2616_v5 = vld [vmem:[#allocation25 + $0xa0] sm:$0xff] }
 0xc26   : > { %2331 = vmatprep.subr.mxu0 %v4368_v0 }
 0xc27   : > { %2332 = vmatpush1.msra.mxu0 %v2301_v6  ;;  %v2600_v6 = vld [vmem:[#allocation25 + $0x20] sm:$0xff] }
 0xc28   : > { %2333 = vmatprep.subr.mxu0 %v4368_v0 }
 0xc29   : > { %2334 = vmatpush1.msra.mxu0 %v2300_v7  ;;  %v2615_v7 = vld [vmem:[#allocation25 + $0x98] sm:$0xff] }
 0xc2a   : > { %2335 = vmatprep.subr.mxu0 %v4368_v0 }
 0xc2b   : > { %2336 = vmatpush1.msra.mxu0 %v2299_v8  ;;  %v2599_v8 = vld [vmem:[#allocation25 + $0x18] sm:$0xff] }
 0xc2c   : > { %2337 = vmatprep.subr.mxu0 %v4368_v0 }
 0xc2d   : > { %2338 = vmatpush1.msra.mxu0 %v2298_v9  ;;  %v2614_v9 = vld [vmem:[#allocation25 + $0x90] sm:$0xff] }
 0xc2e   : > { %2339 = vmatprep.subr.mxu0 %v4368_v0 }
 0xc2f   : > { %2340 = vmatpush1.msra.mxu0 %v2297_v10  ;;  %v2598_v10 = vld [vmem:[#allocation25 + $0x10] sm:$0xff] }
 0xc30   : > { %2341 = vmatprep.subr.mxu0 %v4368_v0 }
 0xc31   : > { %2342 = vmatpush1.msra.mxu0 %v2296_v11 }
 0xc32   : > { %2343 = vmatprep.subr.mxu0 %v4368_v0 }
 0xc33   : > { %2344 = vmatpush1.msra.mxu0 %v2295_v12 }
 0xc34   : > { %2345 = vmatprep.subr.mxu0 %v4368_v0 }
 0xc35   : > { %2346 = vmatpush1.msra.mxu0 %v2294_v13  ;;  %v2613_v13 = vld [vmem:[#allocation25 + $0x88] sm:$0xff] }
 0xc36   : > { %2347 = vmatprep.subr.mxu0 %v4368_v0 }
 0xc37   : > { %2348 = vmatpush1.msra.mxu0 %v2293_v14  ;;  %v2597_v14 = vld [vmem:[#allocation25 + $0x8] sm:$0xff] }
 0xc38   : > { %2349 = vmatprep.subr.mxu0 %v4368_v0 }
 0xc39   : > { %2350 = vmatpush1.msra.mxu0 %v2292_v15  ;;  %v2612_v15 = vld [vmem:[#allocation25 + $0x80] sm:$0xff] }
 0xc3a   : > { %2367 = vmatprep.subr.mxu0 %v4368_v0 }
 0xc3b   : > { %2368 = vmatpush2.msra.mxu0 %v2315_v16  ;;  %v2596_v16 = vld [vmem:[#allocation25] sm:$0xff] }
 0xc3c   : > { %2369 = vmatprep.subr.mxu0 %v4368_v0 }
 0xc3d   : > { %2370 = vmatpush2.msra.mxu0 %v2314_v17 }
 0xc3e   : > { %2371 = vmatprep.subr.mxu0 %v4368_v0 }
 0xc3f   : > { %2372 = vmatpush2.msra.mxu0 %v2313_v18 }
 0xc40   : > { %2373 = vmatprep.subr.mxu0 %v4368_v0 }
 0xc41   : > { %2374 = vmatpush2.msra.mxu0 %v2312_v19 }
 0xc42   : > { %2375 = vmatprep.subr.mxu0 %v4368_v0 }
 0xc43   : > { %2376 = vmatpush2.msra.mxu0 %v2311_v20 }
 0xc44   : > { %2377 = vmatprep.subr.mxu0 %v4368_v0 }
 0xc45   : > { %2378 = vmatpush2.msra.mxu0 %v2310_v21 }
 0xc46   : > { %2379 = vmatprep.subr.mxu0 %v4368_v0 }
 0xc47   : > { %2380 = vmatpush2.msra.mxu0 %v2309_v22 }
 0xc48   : > { %2381 = vmatprep.subr.mxu0 %v4368_v0 }
 0xc49   : > { %2382 = vmatpush2.msra.mxu0 %v2308_v24 }
 0xcda   : > { %v2197_v60 = vpop.f32.mrf.mxu0 }
 0xcdb   : > { %v2201_v61 = vmax.f32 %v2197_v60, 0.0  ;;  %v2620_v60 = vld [vmem:[#allocation25 + $0xc0] sm:$0xff] }
 0xcdc   : > { %v2199_v62 = vpop.f32.mrf.mxu0 }
 0xcdd   : > { %3562 = vmatmul.mubr.msk.f32.vlgmr.msra.gmra.mxu1 %vm1199_vm7, %v2201_v61  ;;  %v2604_v61 = vld [vmem:[#allocation25 + $0x40] sm:$0xff]  ;;  %v2619_v62 = vld [vmem:[#allocation25 + $0xb8] sm:$0xff] }
 0xcde   : > { %3572 = vmatprep.mubr.msk.f32.mxu1 %vm4369_vm3, %v4368_v0  ;;  %3565 = vmatpush3.msra.mxu1 %v2393_v26 }
 0xcdf   : > { %3566 = vmatprep.subr.mxu1 %v4368_v0 }
 0xce0   : > { %3567 = vmatpush3.msra.mxu1 %v2392_v27 }
 0xce1   : > { %3568 = vmatprep.subr.mxu1 %v4368_v0 }
 0xce2   : > { %3569 = vmatpush3.msra.mxu1 %v2391_v35 }
 0xce3   : > { %3570 = vmatprep.subr.mxu1 %v4368_v0 }
 0xce4   : > { %3571 = vmatpush3.msra.mxu1 %v2390_v36 }
 0xce5   : > { %3575 = vmatprep.subr.mxu1 %v4368_v0 }
 0xd9d   : > { %v2275_v23 = vpop.f32.mrf.mxu1 }
 0xd9e   : > { %v2279_v25 = vadd.f32 %v2275_v23, %v2092_v52  ;;  %v2609_v52 = vld [vmem:[#allocation25 + $0x68] sm:$0xff] }
 0xd9f   : > { %v3563_v28 = vpop.f32.mrf.mxu1 }
 0xda0   : > { %v2280_v29 = vmax.f32 %v2279_v25, 0.0 }
 0xda2   : > { %2283 = vst.msk [vmem:[#allocation2 + $0x1] sm:$0x7f] %vm1975_vm12, %v2280_v29 }
 0xda9   : > { %v2286_v30 = vld [vmem:[#allocation2 + $0x2] sm:$0x7f] }
 0xdaa   : > { %v2285_v31 = vld [vmem:[#allocation2 + $0x1] sm:$0x7f]  ;;  %3323 = vmatprep.mubr.msk.f32.mxu0 %vm1218_vm8, %v2286_v30 }
 0xdab   : > { %2288 = vrot.lane.b32.xlu1 %v2285_v31, %s4373_s9  ;;  %v2284_v33 = vld [vmem:[#allocation2] sm:$0x7f] }
 0xe1d   : > { %v2289_v32 = vpop.permute.xlu1 %2288 }
 0xe1e   : > { %v2291_v34 = vsel %vm1218_vm8, %v2284_v33, %v2289_v32 }
 0xe1f   : > { %2384 = vmatmul.mubr.f32.vlgmr.msra.gmra.mxu0 %v2291_v34 }
 0xedf   : > { %v2385_v37 = vpop.f32.mrf.mxu0 }
 0xee0   : > { %v2389_v38 = vmax.f32 %v2385_v37, 0.0 }
 0xee1   : > { %v2387_v39 = vpop.f32.mrf.mxu0 }
 0xee2   : > { %3573 = vmatmul.mubr.msk.f32.vlgmr.msra.gmra.mxu1 %vm1199_vm7, %v2389_v38 }
 0xee3   : > { %3577 = vmatprep.mubr.msk.f32.mxu1 %vm4369_vm3, %v4368_v0 }
 0xfa2   : > { %v2463_v40 = vpop.f32.mrf.mxu1 }
 0xfa3   : > { %v2467_v41 = vadd.f32 %v2463_v40, %v2280_v29 }
 0xfa4   : > { %v3574_v42 = vpop.f32.mrf.mxu1 }
 0xfa5   : > { %v2468_v43 = vmax.f32 %v2467_v41, 0.0  ;;  %v2712_v41 = vld [vmem:[#allocation26] sm:$0xff] }
 0xfa6   : > { %3590 = vmatprep.mubr.msk.f32.mxu0 %vm1103_vm4, %v2712_v41 }
 0xfa7   : > { %3576 = vmatpush3.msk.msra.mxu1 %vm2481_vm13, %v2468_v43 }
 0xfa8   : > { %3578 = vmatmul.mubr.msk.f32.vlgmr.msra.gmra.mxu1 %vm1080_vm1, %v2469_v44  ;;  %3397 = vmatprep.subr.mxu1 %v2627_v47 }
 0xfa9   : > { %3580 = vmatprep.mubr.msk.f32.mxu1 %vm4369_vm3, %v4368_v0  ;;  %3398 = vmatpush3.msra.mxu1 %v2611_v48 }
 0xfaa   : > { %3399 = vmatprep.subr.mxu1 %v2626_v49 }
 0xfab   : > { %3400 = vmatpush3.msra.mxu1 %v2610_v50 }
 0xfac   : > { %3581 = vmatmul.mubr.msk.f32.gmra.mxu1 %vm1080_vm1, %v2470_v45  ;;  %3401 = vmatprep.subr.mxu1 %v2625_v51 }
 0xfad   : > { %3583 = vmatprep.mubr.msk.f32.mxu1 %vm4369_vm3, %v4368_v0  ;;  %3402 = vmatpush3.msra.mxu1 %v2609_v52  ;;  %v2607_v0 = vld [vmem:[#allocation25 + $0x58] sm:$0xff] }
 0xfae   : > { %3403 = vmatprep.subr.mxu1 %v2624_v53  ;;  %v2713_v53 = vld [vmem:[#allocation26 + $0x8] sm:$0xff] }
 0xfaf   : > { %3404 = vmatpush3.msra.mxu1 %v2608_v54  ;;  %v2714_v54 = vld [vmem:[#allocation26 + $0x10] sm:$0xff] }
 0xfb0   : > { %3584 = vmatmul.mubr.msk.f32.gmra.mxu1 %vm1080_vm1, %v2471_v46  ;;  %3405 = vmatprep.subr.mxu1 %v2623_v55  ;;  %v3329_v46 = vld [vmem:[%s5194_s22] ss:$0 sm:$0xff]  ;;  %v2715_v55 = vld [vmem:[#allocation26 + $0x18] sm:$0x7f] }
 0xfb1   : > { %3406 = vmatpush3.msra.mxu1 %v2607_v0  ;;  %v2913_v0 = vld [vmem:[#allocation28 + $0x78] sm:$0xff] }
 0xfb2   : > { %3407 = vmatprep.subr.mxu1 %v2622_v56  ;;  %v2912_v56 = vld [vmem:[#allocation28 + $0x70] sm:$0xff] }
 0xfb3   : > { %3408 = vmatpush3.msra.mxu1 %v2606_v57  ;;  %v2911_v57 = vld [vmem:[#allocation28 + $0x68] sm:$0xff] }
 0xfb4   : > { %3409 = vmatprep.subr.mxu1 %v2621_v58  ;;  %v2910_v58 = vld [vmem:[#allocation28 + $0x60] sm:$0xff] }
 0xfb5   : > { %3410 = vmatpush3.msra.mxu1 %v2605_v59  ;;  %v2909_v59 = vld [vmem:[#allocation28 + $0x58] sm:$0xff] }
 0xfb6   : > { %3411 = vmatprep.subr.mxu1 %v2620_v60  ;;  %v2908_v60 = vld [vmem:[#allocation28 + $0x50] sm:$0xff] }
 0xfb7   : > { %3412 = vmatpush3.msra.mxu1 %v2604_v61  ;;  %v2907_v61 = vld [vmem:[#allocation28 + $0x48] sm:$0xff] }
 0xfb8   : > { %3413 = vmatprep.subr.mxu1 %v2619_v62  ;;  %v2906_v62 = vld [vmem:[#allocation28 + $0x40] sm:$0xff] }
 0xfb9   : > { %3414 = vmatpush3.msra.mxu1 %v2603_v63  ;;  %v2905_v63 = vld [vmem:[#allocation28 + $0x38] sm:$0xff] }
 0xfba   : > { %3415 = vmatprep.subr.mxu1 %v2618_v1  ;;  %v2904_v1 = vld [vmem:[#allocation28 + $0x30] sm:$0xff] }
 0xfbb   : > { %3416 = vmatpush3.msra.mxu1 %v2602_v2  ;;  %v2903_v2 = vld [vmem:[#allocation28 + $0x28] sm:$0xff] }
 0xfbc   : > { %3417 = vmatprep.subr.mxu1 %v2617_v3  ;;  %v2902_v3 = vld [vmem:[#allocation28 + $0x20] sm:$0xff] }
 0xfbd   : > { %3418 = vmatpush3.msra.mxu1 %v2601_v4 }
 0xfbe   : > { %3419 = vmatprep.subr.mxu1 %v2616_v5 }
 0xfbf   : > { %3420 = vmatpush3.msra.mxu1 %v2600_v6 }
 0xfc0   : > { %3421 = vmatprep.subr.mxu1 %v2615_v7  ;;  %v2901_v7 = vld [vmem:[#allocation28 + $0x18] sm:$0xff] }
 0xfc1   : > { %3422 = vmatpush3.msra.mxu1 %v2599_v8 }
 0xfc2   : > { %3423 = vmatprep.subr.mxu1 %v2614_v9  ;;  %v2900_v9 = vld [vmem:[#allocation28 + $0x10] sm:$0xff] }
 0xfc3   : > { %3424 = vmatpush3.msra.mxu1 %v2598_v10  ;;  %v2899_v10 = vld [vmem:[#allocation28 + $0x8] sm:$0xff] }
 0xfc4   : > { %3425 = vmatprep.subr.mxu1 %v2613_v13 }
 0xfc5   : > { %3426 = vmatpush3.msra.mxu1 %v2597_v14 }
 0xfc6   : > { %3427 = vmatprep.subr.mxu1 %v2612_v15 }
 0xfc7   : > { %3428 = vmatpush3.msra.mxu1 %v2596_v16 }
 0xfc8   : > { %3596 = vmatprep.subr.mxu1 %v2913_v0 }
0x1068   : > { %v2551_v11 = vpop.f32.mrf.mxu1 }
0x1069   : > { %2565 = vst.msk [vmem:[#allocation2] sm:$0xff] %vm1218_vm8, %v2551_v11  ;;  %v2898_v11 = vld [vmem:[#allocation28] sm:$0xff] }
0x106a   : > { %v3579_v12 = vpop.f32.mrf.mxu1 }
0x106c   : > { %v2556_v17 = vpop.f32.mrf.mxu1 }
0x106d   : > { %2566 = vst.msk [vmem:[#allocation2 + $0x8] sm:$0xff] %vm1218_vm8, %v2556_v17 }
0x106e   : > { %v3582_v18 = vpop.f32.mrf.mxu1 }
0x1070   : > { %v2561_v19 = vpop.f32.mrf.mxu1  ;;  %v2568_v31 = vld [vmem:[#allocation2] sm:$0xff] }
0x1071   : > { %2567 = vst.msk [vmem:[#allocation2 + $0x10] sm:$0x1] %vm1077_vm0, %v2561_v19  ;;  %vm3009_vm0 = vcmask 52224  }
0x1072   : > { %v3585_v20 = vpop.f32.mrf.mxu1 }
0x1074   : > { %v2570_v21 = vld [vmem:[#allocation2 + $0x1] sm:$0xff]  ;;  %v2571_v24 = vld [vmem:[#allocation2 + $0x9] sm:$0x3f] }
0x1075   : > { %v2574_v22 = vld [vmem:[#allocation2 + $0x3] sm:$0xff] }
0x1076   : > { %v3823_v23 = vpack.i.bf16 %v2570_v21, %v2574_v22  ;;  %v2572_v30 = vld [vmem:[#allocation2 + $0x2] sm:$0xff]  ;;  %v2573_v37 = vld [vmem:[#allocation2 + $0xa] sm:$0x3f] }
0x1077   : > { %v2569_v38 = vld [vmem:[#allocation2 + $0x8] sm:$0x3f] }
0x1078   : > { %3824 = vrot.lane.b32.xlu0 %v3823_v23, %s4373_s9  ;;  %v2575_v25 = vld [vmem:[#allocation2 + $0xb] sm:$0x3f] }
0x1079   : > { %v3828_v26 = vpack.i.bf16 %v2571_v24, %v2575_v25 }
0x107b   : > { %3829 = vrot.lane.b32.xlu1 %v3828_v26, %s4373_s9 }
0x10ea   : > { %v3825_v27 = vpop.permute.xlu0 %3824 }
0x10eb   : > { %v3827_v28 = vunpack.i.h.bf16 %v3825_v27  ;;  %v3826_v29 = vunpack.i.l.bf16 %v3825_v27 }
0x10ed   : > { %v2594_v32 = vsel %vm1218_vm8, %v2572_v30, %v3826_v29  ;;  %v2592_v33 = vsel %vm1218_vm8, %v2568_v31, %v3827_v28  ;;  %v3830_v34 = vpop.permute.xlu1 %3829 }
0x10ee   : > { %2699 = vmatprep.mubr.f32.mxu1 %v2594_v32  ;;  %v3832_v35 = vunpack.i.h.bf16 %v3830_v34  ;;  %v3831_v36 = vunpack.i.l.bf16 %v3830_v34 }
0x10ef   : > { %2700 = vmatmul.mubr.f32.vlgmr.msra.gmra.mxu1 %v2592_v33 }
0x10f0   : > { %v2595_v39 = vsel %vm1218_vm8, %v2573_v37, %v3831_v36  ;;  %v2593_v40 = vsel %vm1218_vm8, %v2569_v38, %v3832_v35  ;;  %3597 = vmatpush3.msra.mxu1 %v2913_v0 }
0x10f1   : > { %2704 = vmatprep.mubr.f32.mxu1 %v2595_v39  ;;  %3598 = vmatprep.subr.mxu1 %v2912_v56 }
0x10f2   : > { %3599 = vmatpush3.msra.mxu1 %v2912_v56 }
0x10f3   : > { %2705 = vmatmul.mubr.f32.gmra.mxu1 %v2593_v40  ;;  %3600 = vmatprep.subr.mxu1 %v2911_v57 }
0x10f4   : > { %3601 = vmatpush3.msra.mxu1 %v2911_v57 }
0x10f5   : > { %3602 = vmatprep.subr.mxu1 %v2910_v58 }
0x10f6   : > { %3603 = vmatpush3.msra.mxu1 %v2910_v58 }
0x10f7   : > { %3604 = vmatprep.subr.mxu1 %v2909_v59 }
0x10f8   : > { %3605 = vmatpush3.msra.mxu1 %v2909_v59 }
0x10f9   : > { %3606 = vmatprep.subr.mxu1 %v2908_v60 }
0x10fa   : > { %3607 = vmatpush3.msra.mxu1 %v2908_v60 }
0x10fb   : > { %3608 = vmatprep.subr.mxu1 %v2907_v61 }
0x10fc   : > { %3609 = vmatpush3.msra.mxu1 %v2907_v61 }
0x10fd   : > { %3610 = vmatprep.subr.mxu1 %v2906_v62 }
0x10fe   : > { %3611 = vmatpush3.msra.mxu1 %v2906_v62 }
0x10ff   : > { %3612 = vmatprep.subr.mxu1 %v2905_v63 }
0x1100   : > { %3613 = vmatpush3.msra.mxu1 %v2905_v63  ;;  %v3335_v63 = vld [vmem:[%s5197_s25] ss:$0 sm:$0xff] }
0x1101   : > { %3614 = vmatprep.subr.mxu1 %v2904_v1 }
0x1102   : > { %3615 = vmatpush3.msra.mxu1 %v2904_v1 }
0x1103   : > { %3616 = vmatprep.subr.mxu1 %v2903_v2 }
0x1104   : > { %3617 = vmatpush3.msra.mxu1 %v2903_v2 }
0x1105   : > { %3618 = vmatprep.subr.mxu1 %v2902_v3 }
0x1106   : > { %3619 = vmatpush3.msra.mxu1 %v2902_v3 }
0x1107   : > { %3620 = vmatprep.subr.mxu1 %v2901_v7 }
0x1108   : > { %3621 = vmatpush3.msra.mxu1 %v2901_v7 }
0x1109   : > { %3622 = vmatprep.subr.mxu1 %v2900_v9 }
0x110a   : > { %3623 = vmatpush3.msra.mxu1 %v2900_v9 }
0x110b   : > { %3624 = vmatprep.subr.mxu1 %v2899_v10 }
0x110c   : > { %3625 = vmatpush3.msra.mxu1 %v2899_v10 }
0x110d   : > { %3626 = vmatprep.subr.mxu1 %v2898_v11 }
0x110e   : > { %3627 = vmatpush3.msra.mxu1 %v2898_v11 }
0x11af   : > { %v3429_v42 = vpop.f32.mrf.mxu1 }
0x11b1   : > { %v3430_v43 = vpop.f32.mrf.mxu1 }
0x11b2   : > { %v3431_v45 = vadd.f32 %v3430_v43, %v3429_v42 }
0x11b3   : > { %v3432_v44 = vpop.f32.mrf.mxu1 }
0x11b4   : > { %v2702_v49 = vadd.f32 %v3431_v45, %v3329_v46 }
0x11b5   : > { %v3433_v47 = vpop.f32.mrf.mxu1 }
0x11b6   : > { %v3434_v48 = vadd.f32 %v3433_v47, %v3432_v44  ;;  %v2710_v52 = vmax.f32 %v2702_v49, 0.0 }
0x11b8   : > { %v2707_v50 = vadd.f32 %v3434_v48, %v3329_v46 }
0x11ba   : > { %v2711_v51 = vmax.f32 %v2707_v50, 0.0 }
0x11bc   : > { %3586 = vmatprep.subr.msk.mxu0 %vm2728_vm14, %v2711_v51 }
0x11bd   : > { %3587 = vmatpush3.msk.msra.mxu0 %vm2728_vm14, %v2711_v51 }
0x11be   : > { %3588 = vmatprep.subr.mxu0 %v2710_v52 }
0x11bf   : > { %3589 = vmatpush3.msra.mxu0 %v2710_v52 }
0x11c0   : > { %3591 = vmatmul.mubr.msk.f32.vlgmr.msra.gmra.mxu0 %vm1103_vm4, %v2713_v53 }
0x11c1   : > { %3593 = vmatprep.mubr.msk.f32.mxu0 %vm1103_vm4, %v2714_v54 }
0x11c4   : > { %3594 = vmatmul.mubr.msk.f32.gmra.mxu0 %vm1103_vm4, %v2715_v55 }
0x1280   : > { %v3592_v4 = vpop.f32.mrf.mxu0 }
0x1281   : > { %2818 = vst.msk [vmem:[#allocation2 + $0x8] sm:$0xff] %vm1199_vm7, %v3592_v4 }
0x1282   : > { %v2798_v5 = vpop.f32.mrf.mxu0 }
0x1283   : > { %2817 = vst.msk [vmem:[#allocation2] sm:$0xff] %vm1199_vm7, %v2798_v5 }
0x1284   : > { %v3595_v6 = vpop.f32.mrf.mxu0 }
0x1285   : > { %2821 = vst.msk [vmem:[#allocation2 + $0x18] sm:$0x7f] %vm2820_vm15, %v3595_v6 }
0x1286   : > { %v2808_v8 = vpop.f32.mrf.mxu0 }
0x1287   : > { %2819 = vst.msk [vmem:[#allocation2 + $0x10] sm:$0xff] %vm1199_vm7, %v2808_v8 }
0x1288   : > { %v2823_v36 = vld [vmem:[#allocation2 + $0x8] sm:$0xff] }
0x128a   : > { %v2830_v12 = vld [vmem:[#allocation2 + $0x2] sm:$0xff] }
0x128b   : > { %v2826_v14 = vld [vmem:[#allocation2 + $0x1] sm:$0xff] }
0x128c   : > { %v2829_v20 = vld [vmem:[#allocation2 + $0x19] sm:$0xf]  ;;  %v2834_v21 = vld [vmem:[#allocation2 + $0x3] sm:$0xff] }
0x128d   : > { %v2837_v26 = vld [vmem:[#allocation2 + $0x1b] sm:$0xf]  ;;  %v2822_v37 = vld [vmem:[#allocation2] sm:$0xff] }
0x128e   : > { %v2831_v13 = vld [vmem:[#allocation2 + $0xa] sm:$0xff]  ;;  %v2836_v24 = vld [vmem:[#allocation2 + $0x13] sm:$0xff] }
0x128f   : > { %v2827_v15 = vld [vmem:[#allocation2 + $0x9] sm:$0xff]  ;;  %v3838_v16 = vpack.i.bf16 %v2831_v13, %v2830_v12  ;;  %v2828_v18 = vld [vmem:[#allocation2 + $0x11] sm:$0xff]  ;;  %v2833_v27 = vld [vmem:[#allocation2 + $0x1a] sm:$0xf]  ;;  %v3858_v28 = vpack.i.bf16 %v2837_v26, %v2836_v24 }
0x1290   : > { %v3833_v17 = vpack.i.bf16 %v2827_v15, %v2826_v14  ;;  %v2835_v19 = vld [vmem:[#allocation2 + $0xb] sm:$0xff]  ;;  %v3848_v22 = vpack.i.bf16 %v2829_v20, %v2828_v18  ;;  %v2825_v56 = vld [vmem:[#allocation2 + $0x18] sm:$0xf] }
0x1291   : > { %3839 = vrot.lane.b32.xlu1 %v3838_v16, %s4373_s9  ;;  %v3843_v23 = vpack.i.bf16 %v2835_v19, %v2834_v21  ;;  %v2832_v25 = vld [vmem:[#allocation2 + $0x12] sm:$0xff] }
0x1292   : > { %3834 = vrot.lane.b32.xlu0 %v3833_v17, %s4374_s1  ;;  %v3853_v29 = vpack.i.bf16 %v2833_v27, %v2832_v25  ;;  %v2824_v0 = vld [vmem:[#allocation2 + $0x10] sm:$0xff] }
0x1295   : > { %3849 = vrot.lane.b32.xlu1 %v3848_v22, %s4374_s1 }
0x1296   : > { %3844 = vrot.lane.b32.xlu0 %v3843_v23, %s4375_s10 }
0x1299   : > { %3859 = vrot.lane.b32.xlu1 %v3858_v28, %s4375_s10 }
0x129a   : > { %3854 = vrot.lane.b32.xlu0 %v3853_v29, %s4373_s9  ;;  %s3339_s9 = sshll.u32 %s5234_s4, 5 }
0x129b   : > { %s1070_s8 = scalar_lea.vmem %s5198_s26, %s3339_s9 }
0x1303   : > { %v3840_v30 = vpop.permute.xlu1 %3839 }
0x1304   : > { %v3835_v31 = vpop.permute.xlu0 %3834  ;;  %v3842_v34 = vunpack.i.h.bf16 %v3840_v30  ;;  %v3841_v35 = vunpack.i.l.bf16 %v3840_v30 }
0x1305   : > { %v3837_v32 = vunpack.i.h.bf16 %v3835_v31  ;;  %v3836_v33 = vunpack.i.l.bf16 %v3835_v31 }
0x1307   : > { %v2887_v38 = vsel %vm1199_vm7, %v2823_v36, %v3837_v32  ;;  %v2886_v39 = vsel %vm1199_vm7, %v2822_v37, %v3836_v33  ;;  %v3850_v40 = vpop.permute.xlu1 %3849 }
0x1308   : > { %v3845_v41 = vpop.permute.xlu0 %3844  ;;  %v3852_v44 = vunpack.i.h.bf16 %v3850_v40  ;;  %v3851_v45 = vunpack.i.l.bf16 %v3850_v40  ;;  %v2890_v46 = vsel %vm1218_vm8, %v2886_v39, %v3841_v35  ;;  %v2891_v47 = vsel %vm1218_vm8, %v2887_v38, %v3842_v34 }
0x1309   : > { %v3847_v42 = vunpack.i.h.bf16 %v3845_v41  ;;  %v3846_v43 = vunpack.i.l.bf16 %v3845_v41 }
0x130a   : > { %v2888_v57 = vsel %vm1199_vm7, %v2824_v0, %v3851_v45  ;;  %v2889_v58 = vsel %vm1199_vm7, %v2825_v56, %v3852_v44 }
0x130b   : > { %v2894_v48 = vsel %vm1220_vm9, %v2890_v46, %v3846_v43  ;;  %v2895_v49 = vsel %vm1220_vm9, %v2891_v47, %v3847_v42  ;;  %v3860_v50 = vpop.permute.xlu1 %3859 }
0x130c   : > { %v3855_v51 = vpop.permute.xlu0 %3854  ;;  %3628 = vmatprep.mubr.f32.mxu1 %v2894_v48  ;;  %v3862_v52 = vunpack.i.h.bf16 %v3860_v50  ;;  %v3861_v53 = vunpack.i.l.bf16 %v3860_v50 }
0x130d   : > { %v3857_v54 = vunpack.i.h.bf16 %v3855_v51  ;;  %v3856_v55 = vunpack.i.l.bf16 %v3855_v51  ;;  %3629 = vmatmul.mubr.f32.vlgmr.msra.gmra.mxu1 %v2895_v49 }
0x130f   : > { %v2892_v59 = vsel %vm1218_vm8, %v2888_v57, %v3856_v55  ;;  %v2893_v60 = vsel %vm1218_vm8, %v2889_v58, %v3857_v54 }
0x1310   : > { %v2896_v61 = vsel %vm1220_vm9, %v2892_v59, %v3861_v53  ;;  %v2897_v62 = vsel %vm1220_vm9, %v2893_v60, %v3862_v52 }
0x1311   : > { %3631 = vmatprep.mubr.f32.mxu1 %v2896_v61 }
0x1312   : > { %3632 = vmatmul.mubr.f32.gmra.mxu1 %v2897_v62 }
0x13cd   : > { %v3630_v1 = vpop.f32.mrf.mxu1 }
0x13ce   : > { %v2993_v2 = vadd.f32 %v3630_v1, %v3335_v63 }
0x13cf   : > { %v2987_v3 = vpop.f32.mrf.mxu1 }
0x13d0   : > { %3007 = vst.msk [vmem:[%s1070_s8 + $0x8] sm:$0xff] %vm1080_vm1, %v2993_v2  ;;  %v2988_v4 = vadd.f32 %v3335_v63, %v2987_v3 }
0x13d2   : > { %3006 = vst.msk [vmem:[%s1070_s8] sm:$0xff] %vm1080_vm1, %v2988_v4  ;;  %v3633_v5 = vpop.f32.mrf.mxu1 }
0x13d3   : > { %v3003_v6 = vadd.f32 %v3633_v5, %v3335_v63 }
0x13d4   : > { %v2997_v7 = vpop.f32.mrf.mxu1 }
0x13d5   : > { %3010 = vst.msk [vmem:[%s1070_s8 + $0x18] sm:$0xf] %vm3009_vm0, %v3003_v6  ;;  %v2998_v8 = vadd.f32 %v3335_v63, %v2997_v7 }
0x13d7   : > { %3008 = vst.msk [vmem:[%s1070_s8 + $0x10] sm:$0xff] %vm1080_vm1, %v2998_v8 }
0x13d8 PF: > { %s5232_s4 = sld [smem:[#allocation38_spill]] }
0x13de   : > { %s47_s7 = sadd.s32 1, %s5232_s4  }
0x13df   : > { %p44_p2 = scmp.ge.s32.totalorder %s47_s7, 4  }
0x13e1   :  { %46 = sbr.rel (!%p44_p2) target bundleno = 23 (0x17), region = 238 }
0x13e6   :  { %3046 = vsyncpa [#allocation4], 1 }
0x13e7   :  { %3048 = vsyncpa [#allocation4 + $0x1], 1 }
0x13e8   :  { %3049 = vsyncpa [#allocation6], 1 }
0x13e9   :  { %3050 = vsyncpa [#allocation9], 1 }
0x13ea   :  { %3051 = vsyncpa [#allocation12], 1 }
0x13eb   :  { %3052 = vsyncpa [#allocation15], 1 }
0x13ec   :  { %3053 = vsyncpa [#allocation18], 1 }
0x13ed   :  { %3054 = vsyncpa [#allocation21], 1 }
0x13ee   :  { %3055 = vsyncpa [#allocation24], 1 }
0x13ef   :  { %3056 = vsyncpa [#allocation27], 1 }

</bundles_post_ra>
